<compile_context>
chip_gen: v7x
topology: tpu7x:2x2x1
jax: 0.10.0
libtpu: 0.0.40
codegen_flags: <defaults>
</compile_context>

<pallas_src>
import math
import functools

import jax
import jax.numpy as jnp
from jax.experimental import pallas as pl
from jax.experimental.pallas import tpu as pltpu


# ----------------------------------------------------------------------------
# small helpers (generation-aware VMEM budget, row-tile choice)
# ----------------------------------------------------------------------------
def _round_up(x, m):
    return ((x + m - 1) // m) * m


def _tpu_vmem_capacity_bytes():
    try:
        info = pltpu.get_tpu_info()
        cap = getattr(info, "vmem_capacity_bytes", None)
        if cap:
            return int(cap)
    except Exception:
        pass
    return 64 << 20  # conservative default (v7x has 64 MiB per TensorCore)


def _vmem_budget_and_limit():
    cap = _tpu_vmem_capacity_bytes()
    if cap >= (100 << 20):          # v5e / v6e: 128 MiB per TensorCore
        return 80 << 20, 100 << 20
    return 36 << 20, 46 << 20       # v7x: 64 MiB per TC, leave Mosaic headroom


def _choose_tile_p(P, row_bytes, requested=512, budget=36 << 20, min_steps=8):
    """Row-tile size: multiple of 16 (bf16 sublane tile), VMEM-safe, and small
    enough that the grid has >= min_steps steps (pipelining on both v7x TCs)."""
    tp = min(requested, _round_up(P, 16))
    if P > min_steps * 16:
        tp = min(tp, _round_up(-(-P // min_steps), 16))
    while tp > 32 and 3 * tp * row_bytes > budget:
        tp = _round_up(tp // 2, 16)
    return max(16, tp)


def _vmem_limit(estimate, clamp):
    return int(min(max(estimate + (8 << 20), 32 << 20), clamp))


# ----------------------------------------------------------------------------
# Pallas kernel: per-tap VPU expansion + bilinear/mask combine + conv matmul
# ----------------------------------------------------------------------------
def _deform_combine_kernel(c_ref, v00, v01, v10, v11, w_ref, b_ref, o_ref,
                           cols_ref):
    # c_ref : (tile_p, 4K) f32, packed [c00 | c01 | c10 | c11]
    #         (bilinear weight * validity * sigmoid(mask), per output pixel/tap)
    # vXX   : (tile_p, K*Cin) bf16 gathered corner values (k-major columns)
    # w_ref : (K*Cin, Np) bf16 conv weight, b_ref: (1, Np) f32 bias
    # cols_ref: (tile_p, K*Cin) bf16 VMEM scratch
    K = c_ref.shape[-1] // 4
    Cin = v00.shape[-1] // K
    c = c_ref[...]                                   # (tile_p, 4K) f32
    for k in range(K):                               # static unroll (K = kh*kw)
        sl = slice(k * Cin, (k + 1) * Cin)
        # lane-broadcast FMA on the VPU; f32 math, bf16 store
        chunk = (c[:, k:k + 1] * v00[:, sl]
                 + c[:, K + k:K + k + 1] * v01[:, sl]
                 + c[:, 2 * K + k:2 * K + k + 1] * v10[:, sl]
                 + c[:, 3 * K + k:3 * K + k + 1] * v11[:, sl])
        cols_ref[:, sl] = chunk.astype(cols_ref.dtype)
    acc = jnp.dot(cols_ref[...], w_ref[...], preferred_element_type=jnp.float32)
    o_ref[...] = (acc + b_ref[...]).astype(o_ref.dtype)


def deform_combine_matmul(c_all, v_corners, wmat, bias2, *, tile_p=512):
    """c_all: (P, 4K) f32;  v_corners: 4 x (P, K*Cin) bf16;
    wmat: (K*Cin, Np) bf16 (Np multiple of 128);  bias2: (1, Np) f32."""
    v00, v01, v10, v11 = v_corners
    P, CK = v00.shape
    K4 = c_all.shape[1]
    Np = wmat.shape[1]

    budget, clamp = _vmem_budget_and_limit()
    if budget >= (64 << 20):
        tile_p = max(tile_p, 1024)          # bigger tiles on 128 MiB VMEM chips
    row_bytes = 4 * CK * v00.dtype.itemsize + K4 * 4 + Np * 4
    tile_p = _choose_tile_p(P, row_bytes, requested=tile_p, budget=budget)
    const_bytes = 2 * (CK * Np * wmat.dtype.itemsize + Np * 4)
    scratch_bytes = tile_p * CK * 2
    vmem = _vmem_limit(2 * tile_p * row_bytes + const_bytes + scratch_bytes,
                       clamp)

    row_c = pl.BlockSpec((tile_p, K4), lambda i: (i, 0))
    row_v = pl.BlockSpec((tile_p, CK), lambda i: (i, 0))
    # NOTE: rows of the last (ragged) tile beyond P are garbage but every
    # in-kernel op is row-independent and those output rows are discarded.
    return pl.pallas_call(
        _deform_combine_kernel,
        out_shape=jax.ShapeDtypeStruct((P, Np), jnp.float32),
        grid=(pl.cdiv(P, tile_p),),
        in_specs=[row_c] + [row_v] * 4 + [
            pl.BlockSpec((CK, Np), lambda i: (0, 0)),
            pl.BlockSpec((1, Np), lambda i: (0, 0)),
        ],
        out_specs=pl.BlockSpec((tile_p, Np), lambda i: (i, 0)),
        scratch_shapes=[pltpu.VMEM((tile_p, CK), jnp.bfloat16)],
        compiler_params=pltpu.CompilerParams(
            dimension_semantics=("parallel",),
            vmem_limit_bytes=vmem),
    )(c_all, v00, v01, v10, v11, wmat, bias2)


# ----------------------------------------------------------------------------
# Forward pass (offset/mask conv + sampling math + gather are plain-JAX glue)
# ----------------------------------------------------------------------------
def dcn_forward(x, params, kernel_size=(3, 3), stride=1, padding=1, dilation=1):
    """Replicates DCN.forward (torchvision deform_conv2d, deformable_groups=1)."""
    N, Cin, H, W = x.shape
    kh, kw = kernel_size
    K = kh * kw
    Cout = params["w_conv"].shape[0]

    # --- offset/mask conv: tiny 3*K-output-channel conv, left to XLA ---------
    # (conv_offset_mask is a plain nn.Conv2d -> dilation 1; f32 for accurate
    #  sampling positions)
    om = jax.lax.conv_general_dilated(
        x, params["w_om"], window_strides=(stride, stride),
        padding=[(padding, padding), (padding, padding)],
        dimension_numbers=("NCHW", "OIHW", "NCHW"))
    om = om + params["b_om"][None, :, None, None]
    Ho, Wo = om.shape[2], om.shape[3]
    Ho_d = (H + 2 * padding - dilation * (kh - 1) - 1) // stride + 1
    Wo_d = (W + 2 * padding - dilation * (kw - 1) - 1) // stride + 1
    assert (Ho_d, Wo_d) == (Ho, Wo), "offset-conv / deform-conv output sizes must match"
    Po = Ho * Wo
    P = N * Po

    om_flat = om.transpose(0, 2, 3, 1).reshape(P, 3 * K)          # (P, 3K) f32
    # torchvision offset layout after chunk+cat: channel 2k = dy_k, 2k+1 = dx_k
    dy = om_flat[:, 0:2 * K:2]
    dx = om_flat[:, 1:2 * K:2]
    sig = jax.nn.sigmoid(om_flat[:, 2 * K:3 * K])                 # modulation

    # --- sampling positions & per-tap weights (small (P, K) f32 arrays) ------
    ho = jnp.arange(Ho, dtype=jnp.float32)
    wo = jnp.arange(Wo, dtype=jnp.float32)
    ki = jnp.arange(kh, dtype=jnp.float32)
    kj = jnp.arange(kw, dtype=jnp.float32)
    base_y = ho[:, None, None, None] * stride - padding + ki[None, None, :, None] * dilation
    base_x = wo[None, :, None, None] * stride - padding + kj[None, None, None, :] * dilation
    base_y = jnp.tile(jnp.broadcast_to(base_y, (Ho, Wo, kh, kw)).reshape(Po, K), (N, 1))
    base_x = jnp.tile(jnp.broadcast_to(base_x, (Ho, Wo, kh, kw)).reshape(Po, K), (N, 1))

    y = dy + base_y
    xs = dx + base_x
    y0f = jnp.floor(y)
    x0f = jnp.floor(xs)
    ly = y - y0f
    lx = xs - x0f
    hy = 1.0 - ly
    hx = 1.0 - lx
    y0 = y0f.astype(jnp.int32)
    x0 = x0f.astype(jnp.int32)
    y1 = y0 + 1
    x1 = x0 + 1

    def valid(iy, ix):
        return ((iy >= 0) & (iy <= H - 1) & (ix >= 0) & (ix <= W - 1)).astype(jnp.float32)

    c00 = hy * hx * valid(y0, x0) * sig
    c01 = hy * lx * valid(y0, x1) * sig
    c10 = ly * hx * valid(y1, x0) * sig
    c11 = ly * lx * valid(y1, x1) * sig
    c_all = jnp.concatenate([c00, c01, c10, c11], axis=1)          # (P, 4K) f32

    y0c = jnp.clip(y0, 0, H - 1)
    y1c = jnp.clip(y1, 0, H - 1)
    x0c = jnp.clip(x0, 0, W - 1)
    x1c = jnp.clip(x1, 0, W - 1)

    # --- corner gather (plain JAX; contiguous Cin rows, bf16) ----------------
    # TODO(synk): data-dependent gather stays in XLA; an in-kernel DMA gather
    # (memory_space=pl.ANY + batched make_async_copy) would remove this HBM
    # round trip of four (P, K*Cin) slabs.
    xb = x.astype(jnp.bfloat16)
    x_rows = xb.transpose(0, 2, 3, 1).reshape(N * H * W, Cin)      # (N*HW, Cin)
    n_off = jnp.repeat(jnp.arange(N, dtype=jnp.int32) * (H * W), Po)[:, None]

    def gather(iy, ix):
        idx = (n_off + iy * W + ix).reshape(-1)                    # (P*K,)
        return jnp.take(x_rows, idx, axis=0).reshape(P, K * Cin)   # k-major cols

    v00 = gather(y0c, x0c)
    v01 = gather(y0c, x1c)
    v10 = gather(y1c, x0c)
    v11 = gather(y1c, x1c)

    # --- deformable-conv matmul (Pallas, lane-dense output) ------------------
    Coutp = 128 if Cout <= 128 else _round_up(Cout, 256)           # v6e/v7x MXU
    wmat = params["w_conv"].transpose(2, 3, 1, 0).reshape(K * Cin, Cout)
    wmat = jnp.pad(wmat, ((0, 0), (0, Coutp - Cout))).astype(jnp.bfloat16)
    bias = jnp.pad(params["b_conv"], (0, Coutp - Cout)).reshape(1, Coutp)
    bias = bias.astype(jnp.float32)

    out_cols = deform_combine_matmul(c_all, (v00, v01, v10, v11), wmat, bias)
    out = out_cols[:, :Cout].reshape(N, Ho, Wo, Cout).transpose(0, 3, 1, 2)
    return out


# ----------------------------------------------------------------------------
# Parameters (mirror DCN.__init__ / reset_parameters / init_offset)
# ----------------------------------------------------------------------------
def make_params(key, in_channels, out_channels, kernel_size=(3, 3),
                deformable_groups=1, offset_init_scale=0.0):
    kh, kw = kernel_size
    K = kh * kw
    stdv = 1.0 / math.sqrt(in_channels * K)
    k1, k2, k3 = jax.random.split(key, 3)
    ch_om = deformable_groups * 3 * K
    # DCN.init_offset zeroes conv_offset_mask weight & bias; optional small
    # random init so the deformable path is exercised in tests.
    w_om = jnp.zeros((ch_om, in_channels, kh, kw), jnp.float32)
    b_om = jnp.zeros((ch_om,), jnp.float32)
    if offset_init_scale:
        w_om = offset_init_scale * jax.random.uniform(k2, w_om.shape, jnp.float32, -1.0, 1.0)
        b_om = offset_init_scale * jax.random.uniform(k3, b_om.shape, jnp.float32, -1.0, 1.0)
    return {
        # DCNv2.reset_parameters: weight ~ U(+/-stdv), bias = 0
        "w_conv": jax.random.uniform(k1, (out_channels, in_channels, kh, kw),
                                     jnp.float32, -stdv, stdv),
        "b_conv": jnp.zeros((out_channels,), jnp.float32),
        "w_om": w_om,
        "b_om": b_om,
    }


# ----------------------------------------------------------------------------
# Pure-JAX f32 reference (torchvision deform_conv2d semantics) for self-check
# ----------------------------------------------------------------------------
def _bilinear_sample_ref(x, py, px):
    N, Cin, H, W = x.shape
    y0 = jnp.floor(py)
    x0 = jnp.floor(px)
    ly = py - y0
    lx = px - x0
    hy = 1.0 - ly
    hx = 1.0 - lx
    y0 = y0.astype(jnp.int32)
    x0 = x0.astype(jnp.int32)

    def corner(iy, ix, w):
        ok = ((iy >= 0) & (iy <= H - 1) & (ix >= 0) & (ix <= W - 1)).astype(x.dtype)
        iyc = jnp.clip(iy, 0, H - 1)
        ixc = jnp.clip(ix, 0, W - 1)
        g = jax.vmap(lambda img, a, b: img[:, a, b])(x, iyc, ixc)   # (N, Cin, Ho, Wo)
        return g.transpose(0, 2, 3, 1) * (w * ok)[..., None]

    return (corner(y0, x0, hy * hx) + corner(y0, x0 + 1, hy * lx)
            + corner(y0 + 1, x0, ly * hx) + corner(y0 + 1, x0 + 1, ly * lx))


def dcn_reference(x, params, kernel_size=(3, 3), stride=1, padding=1, dilation=1):
    N, Cin, H, W = x.shape
    kh, kw = kernel_size
    K = kh * kw
    om = jax.lax.conv_general_dilated(
        x, params["w_om"], window_strides=(stride, stride),
        padding=[(padding, padding), (padding, padding)],
        dimension_numbers=("NCHW", "OIHW", "NCHW"))
    om = om + params["b_om"][None, :, None, None]
    o1, o2, mask = jnp.split(om, 3, axis=1)
    offset = jnp.concatenate([o1, o2], axis=1)
    mask = jax.nn.sigmoid(mask)
    Ho, Wo = om.shape[2], om.shape[3]
    w_conv = params["w_conv"]
    Cout = w_conv.shape[0]
    ys = jnp.arange(Ho, dtype=jnp.float32) * stride - padding
    xs = jnp.arange(Wo, dtype=jnp.float32) * stride - padding
    acc = jnp.zeros((N, Ho, Wo, Cout), jnp.float32)
    for k in range(K):
        i, j = k // kw, k % kw
        py = ys[None, :, None] + i * dilation + offset[:, 2 * k]
        px = xs[None, None, :] + j * dilation + offset[:, 2 * k + 1]
        val = _bilinear_sample_ref(x, py, px) * mask[:, k][..., None]
        acc = acc + jnp.einsum("nhwc,oc->nhwo", val, w_conv[:, :, i, j])
    acc = acc + params["b_conv"][None, None, None, :]
    return acc.transpose(0, 3, 1, 2)


# ----------------------------------------------------------------------------
if __name__ == "__main__":
    key = jax.random.PRNGKey(0)
    kx, kp = jax.random.split(key)

    N, Cin, H, W = 2, 4, 16, 16
    Cout = 8
    x = jax.random.normal(kx, (N, Cin, H, W), jnp.float32)

    # DCN inits conv_offset_mask to zero; use a small non-zero init so the
    # deformable sampling path is actually exercised numerically.
    params = make_params(kp, Cin, Cout, kernel_size=(3, 3), offset_init_scale=0.05)

    fwd = jax.jit(functools.partial(dcn_forward, kernel_size=(3, 3),
                                    stride=1, padding=1, dilation=1))
    out = jax.block_until_ready(fwd(x, params))
    assert out.shape == (N, Cout, H, W), out.shape
    assert bool(jnp.all(jnp.isfinite(out)))

    ref = dcn_reference(x, params, kernel_size=(3, 3), stride=1, padding=1, dilation=1)
    err = float(jnp.max(jnp.abs(out - ref)))
    assert err < 1e-1, f"max abs error vs f32 reference: {err}"

    print("KERNEL_OK")
</pallas_src>

<mosaic_0001>
module attributes {stable_mosaic.version = 11 : i64} {
  func.func @_deform_combine_kernel(%arg0: i32, %arg1: memref<64x36xf32, #tpu.memory_space<vmem>>, %arg2: memref<64x36xbf16, #tpu.memory_space<vmem>>, %arg3: memref<64x36xbf16, #tpu.memory_space<vmem>>, %arg4: memref<64x36xbf16, #tpu.memory_space<vmem>>, %arg5: memref<64x36xbf16, #tpu.memory_space<vmem>>, %arg6: memref<36x128xbf16, #tpu.memory_space<vmem>>, %arg7: memref<1x128xf32, #tpu.memory_space<vmem>>, %arg8: memref<64x128xf32, #tpu.memory_space<vmem>>, %arg9: memref<64x36xbf16, #tpu.memory_space<vmem>>) attributes {dimension_semantics = [#tpu.dimension_semantics<parallel>], iteration_bounds = array<i64: 8>, scalar_prefetch = 0 : i64, scratch_operands = 1 : i64, tpu.core_type = #tpu.core_type<tc>, window_params = [{transform_indices = @transform_0, window_bounds = array<i64: 64, 36>}, {transform_indices = @transform_1, window_bounds = array<i64: 64, 36>}, {transform_indices = @transform_2, window_bounds = array<i64: 64, 36>}, {transform_indices = @transform_3, window_bounds = array<i64: 64, 36>}, {transform_indices = @transform_4, window_bounds = array<i64: 64, 36>}, {pipeline_mode = #tpu.pipeline_mode<synchronous>, transform_indices = @transform_5, window_bounds = array<i64: 36, 128>}, {pipeline_mode = #tpu.pipeline_mode<synchronous>, transform_indices = @transform_6, window_bounds = array<i64: 1, 128>}, {transform_indices = @transform_7, window_bounds = array<i64: 64, 128>}]} {
    %c0 = arith.constant 0 : index
    %c0_0 = arith.constant 0 : index
    %0 = vector.load %arg1[%c0, %c0_0] : memref<64x36xf32, #tpu.memory_space<vmem>>, vector<64x36xf32>
    %1 = vector.extract_strided_slice %0 {offsets = [0, 0], sizes = [64, 1], strides = [1, 1]} : vector<64x36xf32> to vector<64x1xf32>
    %c0_1 = arith.constant 0 : index
    %c0_2 = arith.constant 0 : index
    %2 = vector.load %arg2[%c0_1, %c0_2] : memref<64x36xbf16, #tpu.memory_space<vmem>>, vector<64x4xbf16>
    %3 = arith.extf %2 : vector<64x4xbf16> to vector<64x4xf32>
    %4 = vector.broadcast %1 : vector<64x1xf32> to vector<64x4xf32>
    %5 = arith.mulf %4, %3 : vector<64x4xf32>
    %6 = vector.extract_strided_slice %0 {offsets = [0, 9], sizes = [64, 1], strides = [1, 1]} : vector<64x36xf32> to vector<64x1xf32>
    %c0_3 = arith.constant 0 : index
    %c0_4 = arith.constant 0 : index
    %7 = vector.load %arg3[%c0_3, %c0_4] : memref<64x36xbf16, #tpu.memory_space<vmem>>, vector<64x4xbf16>
    %8 = arith.extf %7 : vector<64x4xbf16> to vector<64x4xf32>
    %9 = vector.broadcast %6 : vector<64x1xf32> to vector<64x4xf32>
    %10 = arith.mulf %9, %8 : vector<64x4xf32>
    %11 = arith.addf %5, %10 : vector<64x4xf32>
    %12 = vector.extract_strided_slice %0 {offsets = [0, 18], sizes = [64, 1], strides = [1, 1]} : vector<64x36xf32> to vector<64x1xf32>
    %c0_5 = arith.constant 0 : index
    %c0_6 = arith.constant 0 : index
    %13 = vector.load %arg4[%c0_5, %c0_6] : memref<64x36xbf16, #tpu.memory_space<vmem>>, vector<64x4xbf16>
    %14 = arith.extf %13 : vector<64x4xbf16> to vector<64x4xf32>
    %15 = vector.broadcast %12 : vector<64x1xf32> to vector<64x4xf32>
    %16 = arith.mulf %15, %14 : vector<64x4xf32>
    %17 = arith.addf %11, %16 : vector<64x4xf32>
    %18 = vector.extract_strided_slice %0 {offsets = [0, 27], sizes = [64, 1], strides = [1, 1]} : vector<64x36xf32> to vector<64x1xf32>
    %c0_7 = arith.constant 0 : index
    %c0_8 = arith.constant 0 : index
    %19 = vector.load %arg5[%c0_7, %c0_8] : memref<64x36xbf16, #tpu.memory_space<vmem>>, vector<64x4xbf16>
    %20 = arith.extf %19 : vector<64x4xbf16> to vector<64x4xf32>
    %21 = vector.broadcast %18 : vector<64x1xf32> to vector<64x4xf32>
    %22 = arith.mulf %21, %20 : vector<64x4xf32>
    %23 = arith.addf %17, %22 : vector<64x4xf32>
    %24 = arith.truncf %23 : vector<64x4xf32> to vector<64x4xbf16>
    %c0_9 = arith.constant 0 : index
    %c0_10 = arith.constant 0 : index
    %25 = vector.load %arg9[%c0_9, %c0_10] : memref<64x36xbf16, #tpu.memory_space<vmem>>, vector<64x4xbf16>
    tpu.vector_store %arg9[%c0_9, %c0_10], %24 {strides = array<i32>} : memref<64x36xbf16, #tpu.memory_space<vmem>>, vector<64x4xbf16>,
    %26 = vector.extract_strided_slice %0 {offsets = [0, 1], sizes = [64, 1], strides = [1, 1]} : vector<64x36xf32> to vector<64x1xf32>
    %c0_11 = arith.constant 0 : index
    %c4 = arith.constant 4 : index
    %27 = vector.load %arg2[%c0_11, %c4] : memref<64x36xbf16, #tpu.memory_space<vmem>>, vector<64x4xbf16>
    %28 = arith.extf %27 : vector<64x4xbf16> to vector<64x4xf32>
    %29 = vector.broadcast %26 : vector<64x1xf32> to vector<64x4xf32>
    %30 = arith.mulf %29, %28 : vector<64x4xf32>
    %31 = vector.extract_strided_slice %0 {offsets = [0, 10], sizes = [64, 1], strides = [1, 1]} : vector<64x36xf32> to vector<64x1xf32>
    %c0_12 = arith.constant 0 : index
    %c4_13 = arith.constant 4 : index
    %32 = vector.load %arg3[%c0_12, %c4_13] : memref<64x36xbf16, #tpu.memory_space<vmem>>, vector<64x4xbf16>
    %33 = arith.extf %32 : vector<64x4xbf16> to vector<64x4xf32>
    %34 = vector.broadcast %31 : vector<64x1xf32> to vector<64x4xf32>
    %35 = arith.mulf %34, %33 : vector<64x4xf32>
    %36 = arith.addf %30, %35 : vector<64x4xf32>
    %37 = vector.extract_strided_slice %0 {offsets = [0, 19], sizes = [64, 1], strides = [1, 1]} : vector<64x36xf32> to vector<64x1xf32>
    %c0_14 = arith.constant 0 : index
    %c4_15 = arith.constant 4 : index
    %38 = vector.load %arg4[%c0_14, %c4_15] : memref<64x36xbf16, #tpu.memory_space<vmem>>, vector<64x4xbf16>
    %39 = arith.extf %38 : vector<64x4xbf16> to vector<64x4xf32>
    %40 = vector.broadcast %37 : vector<64x1xf32> to vector<64x4xf32>
    %41 = arith.mulf %40, %39 : vector<64x4xf32>
    %42 = arith.addf %36, %41 : vector<64x4xf32>
    %43 = vector.extract_strided_slice %0 {offsets = [0, 28], sizes = [64, 1], strides = [1, 1]} : vector<64x36xf32> to vector<64x1xf32>
    %c0_16 = arith.constant 0 : index
    %c4_17 = arith.constant 4 : index
    %44 = vector.load %arg5[%c0_16, %c4_17] : memref<64x36xbf16, #tpu.memory_space<vmem>>, vector<64x4xbf16>
    %45 = arith.extf %44 : vector<64x4xbf16> to vector<64x4xf32>
    %46 = vector.broadcast %43 : vector<64x1xf32> to vector<64x4xf32>
    %47 = arith.mulf %46, %45 : vector<64x4xf32>
    %48 = arith.addf %42, %47 : vector<64x4xf32>
    %49 = arith.truncf %48 : vector<64x4xf32> to vector<64x4xbf16>
    %c0_18 = arith.constant 0 : index
    %c4_19 = arith.constant 4 : index
    %50 = vector.load %arg9[%c0_18, %c4_19] : memref<64x36xbf16, #tpu.memory_space<vmem>>, vector<64x4xbf16>
    tpu.vector_store %arg9[%c0_18, %c4_19], %49 {strides = array<i32>} : memref<64x36xbf16, #tpu.memory_space<vmem>>, vector<64x4xbf16>,
    %51 = vector.extract_strided_slice %0 {offsets = [0, 2], sizes = [64, 1], strides = [1, 1]} : vector<64x36xf32> to vector<64x1xf32>
    %c0_20 = arith.constant 0 : index
    %c8 = arith.constant 8 : index
    %52 = vector.load %arg2[%c0_20, %c8] : memref<64x36xbf16, #tpu.memory_space<vmem>>, vector<64x4xbf16>
    %53 = arith.extf %52 : vector<64x4xbf16> to vector<64x4xf32>
    %54 = vector.broadcast %51 : vector<64x1xf32> to vector<64x4xf32>
    %55 = arith.mulf %54, %53 : vector<64x4xf32>
    %56 = vector.extract_strided_slice %0 {offsets = [0, 11], sizes = [64, 1], strides = [1, 1]} : vector<64x36xf32> to vector<64x1xf32>
    %c0_21 = arith.constant 0 : index
    %c8_22 = arith.constant 8 : index
    %57 = vector.load %arg3[%c0_21, %c8_22] : memref<64x36xbf16, #tpu.memory_space<vmem>>, vector<64x4xbf16>
    %58 = arith.extf %57 : vector<64x4xbf16> to vector<64x4xf32>
    %59 = vector.broadcast %56 : vector<64x1xf32> to vector<64x4xf32>
    %60 = arith.mulf %59, %58 : vector<64x4xf32>
    %61 = arith.addf %55, %60 : vector<64x4xf32>
    %62 = vector.extract_strided_slice %0 {offsets = [0, 20], sizes = [64, 1], strides = [1, 1]} : vector<64x36xf32> to vector<64x1xf32>
    %c0_23 = arith.constant 0 : index
    %c8_24 = arith.constant 8 : index
    %63 = vector.load %arg4[%c0_23, %c8_24] : memref<64x36xbf16, #tpu.memory_space<vmem>>, vector<64x4xbf16>
    %64 = arith.extf %63 : vector<64x4xbf16> to vector<64x4xf32>
    %65 = vector.broadcast %62 : vector<64x1xf32> to vector<64x4xf32>
    %66 = arith.mulf %65, %64 : vector<64x4xf32>
    %67 = arith.addf %61, %66 : vector<64x4xf32>
    %68 = vector.extract_strided_slice %0 {offsets = [0, 29], sizes = [64, 1], strides = [1, 1]} : vector<64x36xf32> to vector<64x1xf32>
    %c0_25 = arith.constant 0 : index
    %c8_26 = arith.constant 8 : index
    %69 = vector.load %arg5[%c0_25, %c8_26] : memref<64x36xbf16, #tpu.memory_space<vmem>>, vector<64x4xbf16>
    %70 = arith.extf %69 : vector<64x4xbf16> to vector<64x4xf32>
    %71 = vector.broadcast %68 : vector<64x1xf32> to vector<64x4xf32>
    %72 = arith.mulf %71, %70 : vector<64x4xf32>
    %73 = arith.addf %67, %72 : vector<64x4xf32>
    %74 = arith.truncf %73 : vector<64x4xf32> to vector<64x4xbf16>
    %c0_27 = arith.constant 0 : index
    %c8_28 = arith.constant 8 : index
    %75 = vector.load %arg9[%c0_27, %c8_28] : memref<64x36xbf16, #tpu.memory_space<vmem>>, vector<64x4xbf16>
    tpu.vector_store %arg9[%c0_27, %c8_28], %74 {strides = array<i32>} : memref<64x36xbf16, #tpu.memory_space<vmem>>, vector<64x4xbf16>,
    %76 = vector.extract_strided_slice %0 {offsets = [0, 3], sizes = [64, 1], strides = [1, 1]} : vector<64x36xf32> to vector<64x1xf32>
    %c0_29 = arith.constant 0 : index
    %c12 = arith.constant 12 : index
    %77 = vector.load %arg2[%c0_29, %c12] : memref<64x36xbf16, #tpu.memory_space<vmem>>, vector<64x4xbf16>
    %78 = arith.extf %77 : vector<64x4xbf16> to vector<64x4xf32>
    %79 = vector.broadcast %76 : vector<64x1xf32> to vector<64x4xf32>
    %80 = arith.mulf %79, %78 : vector<64x4xf32>
    %81 = vector.extract_strided_slice %0 {offsets = [0, 12], sizes = [64, 1], strides = [1, 1]} : vector<64x36xf32> to vector<64x1xf32>
    %c0_30 = arith.constant 0 : index
    %c12_31 = arith.constant 12 : index
    %82 = vector.load %arg3[%c0_30, %c12_31] : memref<64x36xbf16, #tpu.memory_space<vmem>>, vector<64x4xbf16>
    %83 = arith.extf %82 : vector<64x4xbf16> to vector<64x4xf32>
    %84 = vector.broadcast %81 : vector<64x1xf32> to vector<64x4xf32>
    %85 = arith.mulf %84, %83 : vector<64x4xf32>
    %86 = arith.addf %80, %85 : vector<64x4xf32>
    %87 = vector.extract_strided_slice %0 {offsets = [0, 21], sizes = [64, 1], strides = [1, 1]} : vector<64x36xf32> to vector<64x1xf32>
    %c0_32 = arith.constant 0 : index
    %c12_33 = arith.constant 12 : index
    %88 = vector.load %arg4[%c0_32, %c12_33] : memref<64x36xbf16, #tpu.memory_space<vmem>>, vector<64x4xbf16>
    %89 = arith.extf %88 : vector<64x4xbf16> to vector<64x4xf32>
    %90 = vector.broadcast %87 : vector<64x1xf32> to vector<64x4xf32>
    %91 = arith.mulf %90, %89 : vector<64x4xf32>
    %92 = arith.addf %86, %91 : vector<64x4xf32>
    %93 = vector.extract_strided_slice %0 {offsets = [0, 30], sizes = [64, 1], strides = [1, 1]} : vector<64x36xf32> to vector<64x1xf32>
    %c0_34 = arith.constant 0 : index
    %c12_35 = arith.constant 12 : index
    %94 = vector.load %arg5[%c0_34, %c12_35] : memref<64x36xbf16, #tpu.memory_space<vmem>>, vector<64x4xbf16>
    %95 = arith.extf %94 : vector<64x4xbf16> to vector<64x4xf32>
    %96 = vector.broadcast %93 : vector<64x1xf32> to vector<64x4xf32>
    %97 = arith.mulf %96, %95 : vector<64x4xf32>
    %98 = arith.addf %92, %97 : vector<64x4xf32>
    %99 = arith.truncf %98 : vector<64x4xf32> to vector<64x4xbf16>
    %c0_36 = arith.constant 0 : index
    %c12_37 = arith.constant 12 : index
    %100 = vector.load %arg9[%c0_36, %c12_37] : memref<64x36xbf16, #tpu.memory_space<vmem>>, vector<64x4xbf16>
    tpu.vector_store %arg9[%c0_36, %c12_37], %99 {strides = array<i32>} : memref<64x36xbf16, #tpu.memory_space<vmem>>, vector<64x4xbf16>,
    %101 = vector.extract_strided_slice %0 {offsets = [0, 4], sizes = [64, 1], strides = [1, 1]} : vector<64x36xf32> to vector<64x1xf32>
    %c0_38 = arith.constant 0 : index
    %c16 = arith.constant 16 : index
    %102 = vector.load %arg2[%c0_38, %c16] : memref<64x36xbf16, #tpu.memory_space<vmem>>, vector<64x4xbf16>
    %103 = arith.extf %102 : vector<64x4xbf16> to vector<64x4xf32>
    %104 = vector.broadcast %101 : vector<64x1xf32> to vector<64x4xf32>
    %105 = arith.mulf %104, %103 : vector<64x4xf32>
    %106 = vector.extract_strided_slice %0 {offsets = [0, 13], sizes = [64, 1], strides = [1, 1]} : vector<64x36xf32> to vector<64x1xf32>
    %c0_39 = arith.constant 0 : index
    %c16_40 = arith.constant 16 : index
    %107 = vector.load %arg3[%c0_39, %c16_40] : memref<64x36xbf16, #tpu.memory_space<vmem>>, vector<64x4xbf16>
    %108 = arith.extf %107 : vector<64x4xbf16> to vector<64x4xf32>
    %109 = vector.broadcast %106 : vector<64x1xf32> to vector<64x4xf32>
    %110 = arith.mulf %109, %108 : vector<64x4xf32>
    %111 = arith.addf %105, %110 : vector<64x4xf32>
    %112 = vector.extract_strided_slice %0 {offsets = [0, 22], sizes = [64, 1], strides = [1, 1]} : vector<64x36xf32> to vector<64x1xf32>
    %c0_41 = arith.constant 0 : index
    %c16_42 = arith.constant 16 : index
    %113 = vector.load %arg4[%c0_41, %c16_42] : memref<64x36xbf16, #tpu.memory_space<vmem>>, vector<64x4xbf16>
    %114 = arith.extf %113 : vector<64x4xbf16> to vector<64x4xf32>
    %115 = vector.broadcast %112 : vector<64x1xf32> to vector<64x4xf32>
    %116 = arith.mulf %115, %114 : vector<64x4xf32>
    %117 = arith.addf %111, %116 : vector<64x4xf32>
    %118 = vector.extract_strided_slice %0 {offsets = [0, 31], sizes = [64, 1], strides = [1, 1]} : vector<64x36xf32> to vector<64x1xf32>
    %c0_43 = arith.constant 0 : index
    %c16_44 = arith.constant 16 : index
    %119 = vector.load %arg5[%c0_43, %c16_44] : memref<64x36xbf16, #tpu.memory_space<vmem>>, vector<64x4xbf16>
    %120 = arith.extf %119 : vector<64x4xbf16> to vector<64x4xf32>
    %121 = vector.broadcast %118 : vector<64x1xf32> to vector<64x4xf32>
    %122 = arith.mulf %121, %120 : vector<64x4xf32>
    %123 = arith.addf %117, %122 : vector<64x4xf32>
    %124 = arith.truncf %123 : vector<64x4xf32> to vector<64x4xbf16>
    %c0_45 = arith.constant 0 : index
    %c16_46 = arith.constant 16 : index
    %125 = vector.load %arg9[%c0_45, %c16_46] : memref<64x36xbf16, #tpu.memory_space<vmem>>, vector<64x4xbf16>
    tpu.vector_store %arg9[%c0_45, %c16_46], %124 {strides = array<i32>} : memref<64x36xbf16, #tpu.memory_space<vmem>>, vector<64x4xbf16>,
    %126 = vector.extract_strided_slice %0 {offsets = [0, 5], sizes = [64, 1], strides = [1, 1]} : vector<64x36xf32> to vector<64x1xf32>
    %c0_47 = arith.constant 0 : index
    %c20 = arith.constant 20 : index
    %127 = vector.load %arg2[%c0_47, %c20] : memref<64x36xbf16, #tpu.memory_space<vmem>>, vector<64x4xbf16>
    %128 = arith.extf %127 : vector<64x4xbf16> to vector<64x4xf32>
    %129 = vector.broadcast %126 : vector<64x1xf32> to vector<64x4xf32>
    %130 = arith.mulf %129, %128 : vector<64x4xf32>
    %131 = vector.extract_strided_slice %0 {offsets = [0, 14], sizes = [64, 1], strides = [1, 1]} : vector<64x36xf32> to vector<64x1xf32>
    %c0_48 = arith.constant 0 : index
    %c20_49 = arith.constant 20 : index
    %132 = vector.load %arg3[%c0_48, %c20_49] : memref<64x36xbf16, #tpu.memory_space<vmem>>, vector<64x4xbf16>
    %133 = arith.extf %132 : vector<64x4xbf16> to vector<64x4xf32>
    %134 = vector.broadcast %131 : vector<64x1xf32> to vector<64x4xf32>
    %135 = arith.mulf %134, %133 : vector<64x4xf32>
    %136 = arith.addf %130, %135 : vector<64x4xf32>
    %137 = vector.extract_strided_slice %0 {offsets = [0, 23], sizes = [64, 1], strides = [1, 1]} : vector<64x36xf32> to vector<64x1xf32>
    %c0_50 = arith.constant 0 : index
    %c20_51 = arith.constant 20 : index
    %138 = vector.load %arg4[%c0_50, %c20_51] : memref<64x36xbf16, #tpu.memory_space<vmem>>, vector<64x4xbf16>
    %139 = arith.extf %138 : vector<64x4xbf16> to vector<64x4xf32>
    %140 = vector.broadcast %137 : vector<64x1xf32> to vector<64x4xf32>
    %141 = arith.mulf %140, %139 : vector<64x4xf32>
    %142 = arith.addf %136, %141 : vector<64x4xf32>
    %143 = vector.extract_strided_slice %0 {offsets = [0, 32], sizes = [64, 1], strides = [1, 1]} : vector<64x36xf32> to vector<64x1xf32>
    %c0_52 = arith.constant 0 : index
    %c20_53 = arith.constant 20 : index
    %144 = vector.load %arg5[%c0_52, %c20_53] : memref<64x36xbf16, #tpu.memory_space<vmem>>, vector<64x4xbf16>
    %145 = arith.extf %144 : vector<64x4xbf16> to vector<64x4xf32>
    %146 = vector.broadcast %143 : vector<64x1xf32> to vector<64x4xf32>
    %147 = arith.mulf %146, %145 : vector<64x4xf32>
    %148 = arith.addf %142, %147 : vector<64x4xf32>
    %149 = arith.truncf %148 : vector<64x4xf32> to vector<64x4xbf16>
    %c0_54 = arith.constant 0 : index
    %c20_55 = arith.constant 20 : index
    %150 = vector.load %arg9[%c0_54, %c20_55] : memref<64x36xbf16, #tpu.memory_space<vmem>>, vector<64x4xbf16>
    tpu.vector_store %arg9[%c0_54, %c20_55], %149 {strides = array<i32>} : memref<64x36xbf16, #tpu.memory_space<vmem>>, vector<64x4xbf16>,
    %151 = vector.extract_strided_slice %0 {offsets = [0, 6], sizes = [64, 1], strides = [1, 1]} : vector<64x36xf32> to vector<64x1xf32>
    %c0_56 = arith.constant 0 : index
    %c24 = arith.constant 24 : index
    %152 = vector.load %arg2[%c0_56, %c24] : memref<64x36xbf16, #tpu.memory_space<vmem>>, vector<64x4xbf16>
    %153 = arith.extf %152 : vector<64x4xbf16> to vector<64x4xf32>
    %154 = vector.broadcast %151 : vector<64x1xf32> to vector<64x4xf32>
    %155 = arith.mulf %154, %153 : vector<64x4xf32>
    %156 = vector.extract_strided_slice %0 {offsets = [0, 15], sizes = [64, 1], strides = [1, 1]} : vector<64x36xf32> to vector<64x1xf32>
    %c0_57 = arith.constant 0 : index
    %c24_58 = arith.constant 24 : index
    %157 = vector.load %arg3[%c0_57, %c24_58] : memref<64x36xbf16, #tpu.memory_space<vmem>>, vector<64x4xbf16>
    %158 = arith.extf %157 : vector<64x4xbf16> to vector<64x4xf32>
    %159 = vector.broadcast %156 : vector<64x1xf32> to vector<64x4xf32>
    %160 = arith.mulf %159, %158 : vector<64x4xf32>
    %161 = arith.addf %155, %160 : vector<64x4xf32>
    %162 = vector.extract_strided_slice %0 {offsets = [0, 24], sizes = [64, 1], strides = [1, 1]} : vector<64x36xf32> to vector<64x1xf32>
    %c0_59 = arith.constant 0 : index
    %c24_60 = arith.constant 24 : index
    %163 = vector.load %arg4[%c0_59, %c24_60] : memref<64x36xbf16, #tpu.memory_space<vmem>>, vector<64x4xbf16>
    %164 = arith.extf %163 : vector<64x4xbf16> to vector<64x4xf32>
    %165 = vector.broadcast %162 : vector<64x1xf32> to vector<64x4xf32>
    %166 = arith.mulf %165, %164 : vector<64x4xf32>
    %167 = arith.addf %161, %166 : vector<64x4xf32>
    %168 = vector.extract_strided_slice %0 {offsets = [0, 33], sizes = [64, 1], strides = [1, 1]} : vector<64x36xf32> to vector<64x1xf32>
    %c0_61 = arith.constant 0 : index
    %c24_62 = arith.constant 24 : index
    %169 = vector.load %arg5[%c0_61, %c24_62] : memref<64x36xbf16, #tpu.memory_space<vmem>>, vector<64x4xbf16>
    %170 = arith.extf %169 : vector<64x4xbf16> to vector<64x4xf32>
    %171 = vector.broadcast %168 : vector<64x1xf32> to vector<64x4xf32>
    %172 = arith.mulf %171, %170 : vector<64x4xf32>
    %173 = arith.addf %167, %172 : vector<64x4xf32>
    %174 = arith.truncf %173 : vector<64x4xf32> to vector<64x4xbf16>
    %c0_63 = arith.constant 0 : index
    %c24_64 = arith.constant 24 : index
    %175 = vector.load %arg9[%c0_63, %c24_64] : memref<64x36xbf16, #tpu.memory_space<vmem>>, vector<64x4xbf16>
    tpu.vector_store %arg9[%c0_63, %c24_64], %174 {strides = array<i32>} : memref<64x36xbf16, #tpu.memory_space<vmem>>, vector<64x4xbf16>,
    %176 = vector.extract_strided_slice %0 {offsets = [0, 7], sizes = [64, 1], strides = [1, 1]} : vector<64x36xf32> to vector<64x1xf32>
    %c0_65 = arith.constant 0 : index
    %c28 = arith.constant 28 : index
    %177 = vector.load %arg2[%c0_65, %c28] : memref<64x36xbf16, #tpu.memory_space<vmem>>, vector<64x4xbf16>
    %178 = arith.extf %177 : vector<64x4xbf16> to vector<64x4xf32>
    %179 = vector.broadcast %176 : vector<64x1xf32> to vector<64x4xf32>
    %180 = arith.mulf %179, %178 : vector<64x4xf32>
    %181 = vector.extract_strided_slice %0 {offsets = [0, 16], sizes = [64, 1], strides = [1, 1]} : vector<64x36xf32> to vector<64x1xf32>
    %c0_66 = arith.constant 0 : index
    %c28_67 = arith.constant 28 : index
    %182 = vector.load %arg3[%c0_66, %c28_67] : memref<64x36xbf16, #tpu.memory_space<vmem>>, vector<64x4xbf16>
    %183 = arith.extf %182 : vector<64x4xbf16> to vector<64x4xf32>
    %184 = vector.broadcast %181 : vector<64x1xf32> to vector<64x4xf32>
    %185 = arith.mulf %184, %183 : vector<64x4xf32>
    %186 = arith.addf %180, %185 : vector<64x4xf32>
    %187 = vector.extract_strided_slice %0 {offsets = [0, 25], sizes = [64, 1], strides = [1, 1]} : vector<64x36xf32> to vector<64x1xf32>
    %c0_68 = arith.constant 0 : index
    %c28_69 = arith.constant 28 : index
    %188 = vector.load %arg4[%c0_68, %c28_69] : memref<64x36xbf16, #tpu.memory_space<vmem>>, vector<64x4xbf16>
    %189 = arith.extf %188 : vector<64x4xbf16> to vector<64x4xf32>
    %190 = vector.broadcast %187 : vector<64x1xf32> to vector<64x4xf32>
    %191 = arith.mulf %190, %189 : vector<64x4xf32>
    %192 = arith.addf %186, %191 : vector<64x4xf32>
    %193 = vector.extract_strided_slice %0 {offsets = [0, 34], sizes = [64, 1], strides = [1, 1]} : vector<64x36xf32> to vector<64x1xf32>
    %c0_70 = arith.constant 0 : index
    %c28_71 = arith.constant 28 : index
    %194 = vector.load %arg5[%c0_70, %c28_71] : memref<64x36xbf16, #tpu.memory_space<vmem>>, vector<64x4xbf16>
    %195 = arith.extf %194 : vector<64x4xbf16> to vector<64x4xf32>
    %196 = vector.broadcast %193 : vector<64x1xf32> to vector<64x4xf32>
    %197 = arith.mulf %196, %195 : vector<64x4xf32>
    %198 = arith.addf %192, %197 : vector<64x4xf32>
    %199 = arith.truncf %198 : vector<64x4xf32> to vector<64x4xbf16>
    %c0_72 = arith.constant 0 : index
    %c28_73 = arith.constant 28 : index
    %200 = vector.load %arg9[%c0_72, %c28_73] : memref<64x36xbf16, #tpu.memory_space<vmem>>, vector<64x4xbf16>
    tpu.vector_store %arg9[%c0_72, %c28_73], %199 {strides = array<i32>} : memref<64x36xbf16, #tpu.memory_space<vmem>>, vector<64x4xbf16>,
    %201 = vector.extract_strided_slice %0 {offsets = [0, 8], sizes = [64, 1], strides = [1, 1]} : vector<64x36xf32> to vector<64x1xf32>
    %c0_74 = arith.constant 0 : index
    %c32 = arith.constant 32 : index
    %202 = vector.load %arg2[%c0_74, %c32] : memref<64x36xbf16, #tpu.memory_space<vmem>>, vector<64x4xbf16>
    %203 = arith.extf %202 : vector<64x4xbf16> to vector<64x4xf32>
    %204 = vector.broadcast %201 : vector<64x1xf32> to vector<64x4xf32>
    %205 = arith.mulf %204, %203 : vector<64x4xf32>
    %206 = vector.extract_strided_slice %0 {offsets = [0, 17], sizes = [64, 1], strides = [1, 1]} : vector<64x36xf32> to vector<64x1xf32>
    %c0_75 = arith.constant 0 : index
    %c32_76 = arith.constant 32 : index
    %207 = vector.load %arg3[%c0_75, %c32_76] : memref<64x36xbf16, #tpu.memory_space<vmem>>, vector<64x4xbf16>
    %208 = arith.extf %207 : vector<64x4xbf16> to vector<64x4xf32>
    %209 = vector.broadcast %206 : vector<64x1xf32> to vector<64x4xf32>
    %210 = arith.mulf %209, %208 : vector<64x4xf32>
    %211 = arith.addf %205, %210 : vector<64x4xf32>
    %212 = vector.extract_strided_slice %0 {offsets = [0, 26], sizes = [64, 1], strides = [1, 1]} : vector<64x36xf32> to vector<64x1xf32>
    %c0_77 = arith.constant 0 : index
    %c32_78 = arith.constant 32 : index
    %213 = vector.load %arg4[%c0_77, %c32_78] : memref<64x36xbf16, #tpu.memory_space<vmem>>, vector<64x4xbf16>
    %214 = arith.extf %213 : vector<64x4xbf16> to vector<64x4xf32>
    %215 = vector.broadcast %212 : vector<64x1xf32> to vector<64x4xf32>
    %216 = arith.mulf %215, %214 : vector<64x4xf32>
    %217 = arith.addf %211, %216 : vector<64x4xf32>
    %218 = vector.extract_strided_slice %0 {offsets = [0, 35], sizes = [64, 1], strides = [1, 1]} : vector<64x36xf32> to vector<64x1xf32>
    %c0_79 = arith.constant 0 : index
    %c32_80 = arith.constant 32 : index
    %219 = vector.load %arg5[%c0_79, %c32_80] : memref<64x36xbf16, #tpu.memory_space<vmem>>, vector<64x4xbf16>
    %220 = arith.extf %219 : vector<64x4xbf16> to vector<64x4xf32>
    %221 = vector.broadcast %218 : vector<64x1xf32> to vector<64x4xf32>
    %222 = arith.mulf %221, %220 : vector<64x4xf32>
    %223 = arith.addf %217, %222 : vector<64x4xf32>
    %224 = arith.truncf %223 : vector<64x4xf32> to vector<64x4xbf16>
    %c0_81 = arith.constant 0 : index
    %c32_82 = arith.constant 32 : index
    %225 = vector.load %arg9[%c0_81, %c32_82] : memref<64x36xbf16, #tpu.memory_space<vmem>>, vector<64x4xbf16>
    tpu.vector_store %arg9[%c0_81, %c32_82], %224 {strides = array<i32>} : memref<64x36xbf16, #tpu.memory_space<vmem>>, vector<64x4xbf16>,
    %c0_83 = arith.constant 0 : index
    %c0_84 = arith.constant 0 : index
    %226 = vector.load %arg9[%c0_83, %c0_84] : memref<64x36xbf16, #tpu.memory_space<vmem>>, vector<64x36xbf16>
    %c0_85 = arith.constant 0 : index
    %c0_86 = arith.constant 0 : index
    %227 = vector.load %arg6[%c0_85, %c0_86] : memref<36x128xbf16, #tpu.memory_space<vmem>>, vector<36x128xbf16>
    %cst = arith.constant dense<0.000000e+00> : vector<64x128xf32>
    %228 = tpu.matmul %226, %227, %cst {dimension_numbers = #tpu.dot_dimension_numbers<[1], [0], [0], [1], [0, 0, 1, 1], [], []>} : vector<64x36xbf16>, vector<36x128xbf16>, vector<64x128xf32> -> vector<64x128xf32>
    %c0_87 = arith.constant 0 : index
    %c0_88 = arith.constant 0 : index
    %229 = vector.load %arg7[%c0_87, %c0_88] : memref<1x128xf32, #tpu.memory_space<vmem>>, vector<1x128xf32>
    %230 = vector.broadcast %229 : vector<1x128xf32> to vector<64x128xf32>
    %231 = arith.addf %228, %230 : vector<64x128xf32>
    %c0_89 = arith.constant 0 : index
    %c0_90 = arith.constant 0 : index
    %232 = vector.load %arg8[%c0_89, %c0_90] : memref<64x128xf32, #tpu.memory_space<vmem>>, vector<64x128xf32>
    tpu.vector_store %arg8[%c0_89, %c0_90], %231 {strides = array<i32>} : memref<64x128xf32, #tpu.memory_space<vmem>>, vector<64x128xf32>,
    return
  }
  func.func @transform_0(%arg0: i32) -> (i32, i32) {
    %c0_i32 = arith.constant 0 : i32
    %c0_i32_0 = arith.constant 0 : i32
    return %arg0, %c0_i32 : i32, i32
  }
  func.func @transform_1(%arg0: i32) -> (i32, i32) {
    %c0_i32 = arith.constant 0 : i32
    %c0_i32_0 = arith.constant 0 : i32
    return %arg0, %c0_i32 : i32, i32
  }
  func.func @transform_2(%arg0: i32) -> (i32, i32) {
    %c0_i32 = arith.constant 0 : i32
    %c0_i32_0 = arith.constant 0 : i32
    return %arg0, %c0_i32 : i32, i32
  }
  func.func @transform_3(%arg0: i32) -> (i32, i32) {
    %c0_i32 = arith.constant 0 : i32
    %c0_i32_0 = arith.constant 0 : i32
    return %arg0, %c0_i32 : i32, i32
  }
  func.func @transform_4(%arg0: i32) -> (i32, i32) {
    %c0_i32 = arith.constant 0 : i32
    %c0_i32_0 = arith.constant 0 : i32
    return %arg0, %c0_i32 : i32, i32
  }
  func.func @transform_5(%arg0: i32) -> (i32, i32) {
    %c0_i32 = arith.constant 0 : i32
    %c0_i32_0 = arith.constant 0 : i32
    %c0_i32_1 = arith.constant 0 : i32
    return %c0_i32, %c0_i32_0 : i32, i32
  }
  func.func @transform_6(%arg0: i32) -> (i32, i32) {
    %c0_i32 = arith.constant 0 : i32
    %c0_i32_0 = arith.constant 0 : i32
    %c0_i32_1 = arith.constant 0 : i32
    return %c0_i32, %c0_i32_0 : i32, i32
  }
  func.func @transform_7(%arg0: i32) -> (i32, i32) {
    %c0_i32 = arith.constant 0 : i32
    %c0_i32_0 = arith.constant 0 : i32
    return %arg0, %c0_i32 : i32, i32
  }
}

</mosaic_0001>

<bundles_post_ra>
// kernel: dcn_forward.1
= control target key start
LH: loop header
LB: loop body
LE: loop exit
PB: predicated region body
PF: predicated region fallthrough
CT: control target
= control target key end

     0   :  { %s3899_s24 = smov 0   ;;  %s5499_s0 = inlined_call_operand.vmem [shape: f32[512,36], index: 0, kind: input, shape index: {}]   ;;  %s5500_s1 = inlined_call_operand.vmem [shape: bf16[512,36], index: 1, kind: input, shape index: {}]   ;;  %s5501_s2 = inlined_call_operand.vmem [shape: bf16[512,36], index: 2, kind: input, shape index: {}]   ;;  %s5502_s3 = inlined_call_operand.vmem [shape: bf16[512,36], index: 3, kind: input, shape index: {}]   ;;  %s5503_s4 = inlined_call_operand.vmem [shape: bf16[512,36], index: 4, kind: input, shape index: {}]   ;;  %s5504_s5 = inlined_call_operand.vmem [shape: bf16[36,128], index: 5, kind: input, shape index: {}]   ;;  %s5505_s6 = inlined_call_operand.vmem [shape: f32[1,128], index: 6, kind: input, shape index: {}]   ;;  %s5506_s7 = inlined_call_operand.vmem [shape: f32[512,128], index: 7, kind: output, shape index: {}]  }
   0x1 LB: > { %s2925_s25 = sadd.s32 4294967295, %s3821_s24   ;;  %p2929_p0 = scmp.ge.s32.totalorder %s3821_s24, 1  ;;  %s3821_s24 = sphi %s3899_s24, %s17_s24  }
   0x2   : > { %p282_p1 = scmp.lt.s32.totalorder %s3821_s24, 9 }
   0x4   : > { %p283_p2 = pnand %p2929_p0, %p282_p1 }
   0x6   : > { %286 = sbr.rel (%p283_p2) target bundleno = 1085 (0x43d), region = 48 }
   0xd   : > { %s2930_s26 = sshll.u32 %s2925_s25, 3  ;;  %v3823_v0 = vmov 0   ;;  %v3824_v9 = vmov 9   ;;  %v3825_v10 = vmov 18   ;;  %v3826_v11 = vmov 27  }
   0xe   : > { %3710 = vset.pattern.permute.xlu1 %v3823_v0  ;;  %3709 = vset.pattern.permute.xlu0 %v3823_v0  ;;  %p335_p3 = scmp.lt.s32.totalorder %s2930_s26, 63  ;;  %v3827_v12 = vmov 1   ;;  %v3828_v13 = vmov 10   ;;  %v3829_v14 = vmov 19   ;;  %v3830_v15 = vmov 28  }
   0xf   : > { %v3831_v16 = vmov 2   ;;  %v3832_v23 = vmov 11   ;;  %v5508_v32 = vmov 20   ;;  %v5507_v39 = vmov 29  }
  0x10   : > { %s5812_s26 = smov (!%p335_p3, %s2930_s26), 63  ;;  %vm639_vm0 = vcmask 31744   ;;  %vm896_vm1 = vcmask 64544   ;;  %vm1153_vm2 = vcmask 97344   ;;  %vm1410_vm3 = vcmask 130144  }
  0x11   : > { %s2931_s27 = sshll.u32 %s5812_s26, 3  ;;  %s2933_s8 = sshll.u32 %s5812_s26, 2  ;;  %vm1667_vm4 = vcmask 162944   ;;  %vm1924_vm5 = vcmask 195744   ;;  %vm2744_vm6 = vcmask 1041408   ;;  %vm2181_vm7 = vcmask 228544  }
  0x12   : > { %s3915_s30 = scalar_lea.vmem %s5499_s0, %s2931_s27  ;;  %s4065_s11 = scalar_lea.vmem %s5500_s1, %s2933_s8  ;;  %vm2438_vm8 = vcmask 261344   ;;  %vm2695_vm9 = vcmask 294144   ;;  %vm2731_vm10 = vcmask 293888  }
  0x13   : > { %v3918_v1 = vld [vmem:[%s3915_s30 + $0x10] sm:$0xff]  ;;  %v3921_v2 = vld [vmem:[%s3915_s30] sm:$0xff]  ;;  %v3926_v3 = vld [vmem:[%s3915_s30 + $0x18] sm:$0xff]  ;;  %s4071_s14 = scalar_lea.vmem %s5501_s2, %s2933_s8  ;;  %s4080_s17 = scalar_lea.vmem %s5502_s3, %s2933_s8 }
  0x14   : > { %5617 = vst [vmem:[#allocation3_spill] sm:$0xff] %v3918_v1  ;;  %407 = vperm.xlu1 %3710, %v3918_v1   ;;  %397 = vperm.xlu0 %3709, %v3921_v2   ;;  %5618 = vst [vmem:[#allocation4_spill] sm:$0xff] %v3926_v3  ;;  %v3929_v4 = vld [vmem:[%s3915_s30 + $0x8] sm:$0xff]  ;;  %v3937_v6 = vld [vmem:[%s3915_s30 + $0x20] sm:$0xff]  ;;  %s4098_s20 = scalar_lea.vmem %s5503_s4, %s2933_s8 }
  0x15   : > { %5619 = vst [vmem:[#allocation5_spill] sm:$0xff] %v3929_v4  ;;  %v3934_v5 = vld [vmem:[%s3915_s30 + $0x28] sm:$0xff]  ;;  %5621 = vst [vmem:[#allocation7_spill] sm:$0xff] %v3937_v6  ;;  %v3942_v7 = vld [vmem:[%s3915_s30 + $0x38] sm:$0xff] }
  0x16   : > { %5620 = vst [vmem:[#allocation6_spill] sm:$0xff] %v3934_v5  ;;  %5622 = vst [vmem:[#allocation8_spill] sm:$0xff] %v3942_v7  ;;  %v3945_v8 = vld [vmem:[%s3915_s30 + $0x30] sm:$0xff]  ;;  %v3528_v40 = vld [vmem:[%s4065_s11 + $0x8] sm:$0xff]  }
  0x17   : > { %v2953_v41 = vld [vmem:[%s4065_s11] sm:$0xff]   ;;  %v3529_v42 = vld [vmem:[%s4065_s11 + $0x10] sm:$0xff]   ;;  %v3530_v45 = vld [vmem:[%s4065_s11 + $0x18] sm:$0xff]   ;;  %v4101_v51 = vunpack.c.l.bf16 %v3528_v40  ;;  %v4103_v52 = vunpack.c.h.bf16 %v3528_v40 }
  0x18   : > { %412 = vperm.xlu1 %3710, %v3926_v3   ;;  %402 = vperm.xlu0 %3709, %v3929_v4   ;;  %v2969_v46 = vld [vmem:[%s4071_s14] sm:$0xff]   ;;  %v4089_v47 = vunpack.c.l.bf16 %v2953_v41  ;;  %v3531_v49 = vld [vmem:[%s4071_s14 + $0x8] sm:$0xff]   ;;  %v3532_v50 = vld [vmem:[%s4071_s14 + $0x10] sm:$0xff]   ;;  %v4105_v53 = vunpack.c.h.bf16 %v2953_v41  ;;  %v4107_v54 = vunpack.c.h.bf16 %v3529_v42  ;;  %v4110_v56 = vunpack.c.l.bf16 %v3529_v42 }
  0x19   : > { %v4091_v48 = vunpack.c.l.bf16 %v2969_v46  ;;  %v2985_v55 = vld [vmem:[%s4080_s17] sm:$0xff]   ;;  %v4112_v57 = vunpack.c.h.bf16 %v3530_v45  ;;  %v4114_v58 = vunpack.c.l.bf16 %v3530_v45  ;;  %v4116_v59 = vunpack.c.h.bf16 %v2969_v46  ;;  %v3533_v60 = vld [vmem:[%s4071_s14 + $0x18] sm:$0xff]   ;;  %v3534_v61 = vld [vmem:[%s4080_s17 + $0x8] sm:$0xff]  }
  0x1a   : > { %5623 = vst [vmem:[#allocation9_spill] sm:$0xff] %v4089_v47  ;;  %5625 = vst [vmem:[#allocation11_spill] sm:$0xff] %v4105_v53  ;;  %v3535_v62 = vld [vmem:[%s4080_s17 + $0x10] sm:$0xff]   ;;  %v4124_v0 = vunpack.c.l.bf16 %v3531_v49  ;;  %v3536_v40 = vld [vmem:[%s4080_s17 + $0x18] sm:$0xff]   ;;  %v4144_v42 = vunpack.c.l.bf16 %v3533_v60  ;;  %v4146_v45 = vunpack.c.h.bf16 %v3533_v60  ;;  %v4148_v46 = vunpack.c.l.bf16 %v3534_v61 }
  0x1b   : > { %5624 = vst [vmem:[#allocation10_spill] sm:$0xff] %v4091_v48  ;;  %5626 = vst [vmem:[#allocation12_spill] sm:$0xff] %v4116_v59  ;;  %v3537_v41 = vld [vmem:[%s4098_s20 + $0x8] sm:$0xff]   ;;  %v3538_v60 = vld [vmem:[%s4098_s20 + $0x10] sm:$0xff]  }
  0x1c   : > { %422 = vperm.xlu1 %3710, %v3934_v5   ;;  %417 = vperm.xlu0 %3709, %v3937_v6   ;;  %5627 = vst [vmem:[#allocation13_spill] sm:$0xff] %v4124_v0  ;;  %5631 = vst [vmem:[#allocation17_spill] sm:$0xff] %v4148_v46 }
  0x20   : > { %432 = vperm.xlu1 %3710, %v3942_v7   ;;  %427 = vperm.xlu0 %3709, %v3945_v8  }
  0x24   : > { %3712 = vset.pattern.permute.xlu1 %v3824_v9  ;;  %3711 = vset.pattern.permute.xlu0 %v3824_v9  ;;  %v4126_v9 = vunpack.c.h.bf16 %v3531_v49  ;;  %v4150_v49 = vunpack.c.l.bf16 %v3535_v62 }
  0x25   : > { %464 = vperm.xlu1 %3712, %v3929_v4   ;;  %460 = vperm.xlu0 %3711, %v3921_v2  }
  0x29   : > { %468 = vperm.xlu1 %3712, %v3918_v1   ;;  %472 = vperm.xlu0 %3711, %v3926_v3  }
  0x2d   : > { %476 = vperm.xlu1 %3712, %v3937_v6   ;;  %480 = vperm.xlu0 %3711, %v3934_v5  }
  0x31   : > { %484 = vperm.xlu1 %3712, %v3945_v8   ;;  %488 = vperm.xlu0 %3711, %v3942_v7  }
  0x35   : > { %3713 = vset.pattern.permute.xlu1 %v3825_v10  ;;  %3714 = vset.pattern.permute.xlu0 %v3825_v10  ;;  %v4128_v10 = vunpack.c.l.bf16 %v3532_v50 }
  0x36   : > { %524 = vperm.xlu1 %3713, %v3921_v2   ;;  %528 = vperm.xlu0 %3714, %v3929_v4  }
  0x3a   : > { %532 = vperm.xlu1 %3713, %v3918_v1   ;;  %540 = vperm.xlu0 %3714, %v3937_v6  }
  0x3e   : > { %536 = vperm.xlu1 %3713, %v3926_v3   ;;  %548 = vperm.xlu0 %3714, %v3945_v8  }
  0x42   : > { %544 = vperm.xlu1 %3713, %v3934_v5   ;;  %3715 = vset.pattern.permute.xlu0 %v3826_v11 }
  0x43   : > { %588 = vperm.xlu0 %3715, %v3921_v2  }
  0x46   : > { %552 = vperm.xlu1 %3713, %v3942_v7  }
  0x47   : > { %600 = vperm.xlu0 %3715, %v3926_v3  }
  0x4a   : > { %3716 = vset.pattern.permute.xlu1 %v3826_v11  ;;  %v4130_v11 = vunpack.c.h.bf16 %v3532_v50  ;;  %v4156_v50 = vunpack.c.h.bf16 %v3534_v61 }
  0x4b   : > { %592 = vperm.xlu1 %3716, %v3929_v4   ;;  %608 = vperm.xlu0 %3715, %v3934_v5  }
  0x4c   : > { %5628 = vst [vmem:[#allocation14_spill] sm:$0xff] %v4130_v11 }
  0x4f   : > { %596 = vperm.xlu1 %3716, %v3918_v1   ;;  %616 = vperm.xlu0 %3715, %v3942_v7  }
  0x53   : > { %604 = vperm.xlu1 %3716, %v3937_v6   ;;  %3718 = vset.pattern.permute.xlu0 %v3827_v12 }
  0x54   : > { %665 = vperm.xlu0 %3718, %v3929_v4  }
  0x57   : > { %612 = vperm.xlu1 %3716, %v3945_v8  }
  0x58   : > { %677 = vperm.xlu0 %3718, %v3937_v6  }
  0x5b   : > { %3717 = vset.pattern.permute.xlu1 %v3827_v12  ;;  %v3001_v12 = vld [vmem:[%s4098_s20] sm:$0xff]  }
  0x5c   : > { %661 = vperm.xlu1 %3717, %v3921_v2   ;;  %685 = vperm.xlu0 %3718, %v3945_v8  }
  0x60   : > { %669 = vperm.xlu1 %3717, %v3918_v1   ;;  %3719 = vset.pattern.permute.xlu0 %v3828_v13 }
  0x61   : > { %717 = vperm.xlu0 %3719, %v3921_v2  }
  0x64   : > { %673 = vperm.xlu1 %3717, %v3926_v3  }
  0x65   : > { %729 = vperm.xlu0 %3719, %v3926_v3  }
  0x68   : > { %681 = vperm.xlu1 %3717, %v3934_v5  }
  0x69   : > { %737 = vperm.xlu0 %3719, %v3934_v5  }
  0x6c   : > { %689 = vperm.xlu1 %3717, %v3942_v7  }
  0x6d   : > { %745 = vperm.xlu0 %3719, %v3942_v7  }
  0x70   : > { %3720 = vset.pattern.permute.xlu1 %v3828_v13 }
  0x71   : > { %721 = vperm.xlu1 %3720, %v3929_v4   ;;  %3722 = vset.pattern.permute.xlu0 %v3829_v14 }
  0x72   : > { %785 = vperm.xlu0 %3722, %v3929_v4  }
  0x75   : > { %725 = vperm.xlu1 %3720, %v3918_v1  }
  0x76   : > { %797 = vperm.xlu0 %3722, %v3937_v6  }
  0x79   : > { %733 = vperm.xlu1 %3720, %v3937_v6  }
  0x7a   : > { %805 = vperm.xlu0 %3722, %v3945_v8  }
  0x7d   : > { %741 = vperm.xlu1 %3720, %v3945_v8  }
  0x7e   : > { %3723 = vset.pattern.permute.xlu0 %v3830_v15 }
  0x7f   : > { %845 = vperm.xlu0 %3723, %v3921_v2  }
  0x81   : > { %3721 = vset.pattern.permute.xlu1 %v3829_v14 }
  0x82   : > { %781 = vperm.xlu1 %3721, %v3921_v2  }
  0x83   : > { %857 = vperm.xlu0 %3723, %v3926_v3  }
  0x86   : > { %789 = vperm.xlu1 %3721, %v3918_v1  }
  0x87   : > { %865 = vperm.xlu0 %3723, %v3934_v5  }
  0x8a   : > { %793 = vperm.xlu1 %3721, %v3926_v3  }
  0x8b   : > { %873 = vperm.xlu0 %3723, %v3942_v7  }
  0x8e   : > { %801 = vperm.xlu1 %3721, %v3934_v5  }
  0x8f   : > { %3726 = vset.pattern.permute.xlu0 %v3831_v16 }
  0x90   : > { %922 = vperm.xlu0 %3726, %v3929_v4  }
  0x92   : > { %809 = vperm.xlu1 %3721, %v3942_v7  }
  0x93   : > { %v4002_v17 = vpop.permute.xlu1 %407  ;;  %v4004_v18 = vpop.permute.xlu0 %397 }
  0x94   : > { %934 = vperm.xlu0 %3726, %v3937_v6   ;;  %v435_v14 = vmul.f32 %v4089_v47, %v4004_v18  ;;  %v4166_v47 = vunpack.c.h.bf16 %v3535_v62 }
  0x96   : > { %3724 = vset.pattern.permute.xlu1 %v3830_v15 }
  0x97   : > { %v4007_v19 = vpop.permute.xlu1 %412  ;;  %849 = vperm.xlu1 %3724, %v3929_v4   ;;  %v4010_v20 = vpop.permute.xlu0 %402 }
  0x98   : > { %942 = vperm.xlu0 %3726, %v3945_v8   ;;  %v436_v18 = vmul.f32 %v4105_v53, %v4010_v20  ;;  %v4170_v20 = vunpack.c.h.bf16 %v3537_v41 }
  0x9b   : > { %v4013_v21 = vpop.permute.xlu1 %422  ;;  %853 = vperm.xlu1 %3724, %v3918_v1   ;;  %v4016_v22 = vpop.permute.xlu0 %417 }
  0x9c   : > { %3727 = vset.pattern.permute.xlu0 %v3832_v23 }
  0x9d   : > { %974 = vperm.xlu0 %3727, %v3921_v2  }
  0x9f   : > { %v4019_v24 = vpop.permute.xlu1 %432  ;;  %861 = vperm.xlu1 %3724, %v3937_v6   ;;  %v4022_v25 = vpop.permute.xlu0 %427 }
  0xa1   : > { %986 = vperm.xlu0 %3727, %v3926_v3  }
  0xa3   : > { %869 = vperm.xlu1 %3724, %v3945_v8  }
  0xa4   : > { %v4026_v26 = vpop.permute.xlu1 %464  ;;  %v4028_v27 = vpop.permute.xlu0 %460 }
  0xa5   : > { %994 = vperm.xlu0 %3727, %v3934_v5   ;;  %v491_v15 = vmul.f32 %v4091_v48, %v4028_v27  ;;  %v492_v27 = vmul.f32 %v4116_v59, %v4026_v26  ;;  %v4168_v48 = vunpack.c.h.bf16 %v3536_v40  ;;  %v4176_v59 = vunpack.c.h.bf16 %v3001_v12 }
  0xa7   : > { %3725 = vset.pattern.permute.xlu1 %v3831_v16  ;;  %v4137_v16 = vunpack.c.l.bf16 %v2985_v55  ;;  %5634 = vst [vmem:[#allocation20_spill] sm:$0xff] %v4168_v48  ;;  %v500_v48 = vadd.f32 %v492_v27, %v436_v18 }
  0xa8   : > { %v4031_v28 = vpop.permute.xlu1 %468  ;;  %918 = vperm.xlu1 %3725, %v3921_v2   ;;  %v4034_v29 = vpop.permute.xlu0 %472 }
  0xa9   : > { %1002 = vperm.xlu0 %3727, %v3942_v7   ;;  %5629 = vst [vmem:[#allocation15_spill] sm:$0xff] %v4137_v16  ;;  %v493_v62 = vmul.f32 %v4124_v0, %v4031_v28 }
  0xac   : > { %v4037_v30 = vpop.permute.xlu1 %476  ;;  %926 = vperm.xlu1 %3725, %v3918_v1   ;;  %v4040_v31 = vpop.permute.xlu0 %480 }
  0xad   : > { %3730 = vset.pattern.permute.xlu0 %v5508_v32  ;;  %v4164_v32 = vunpack.c.l.bf16 %v3536_v40  ;;  %v4182_v40 = vunpack.c.h.bf16 %v3538_v60 }
  0xae   : > { %1042 = vperm.xlu0 %3730, %v3929_v4  }
  0xaf   : > { %5633 = vst [vmem:[#allocation19_spill] sm:$0xff] %v4164_v32 }
  0xb0   : > { %v4044_v33 = vpop.permute.xlu1 %484  ;;  %930 = vperm.xlu1 %3725, %v3926_v3   ;;  %v4047_v34 = vpop.permute.xlu0 %488 }
  0xb2   : > { %1054 = vperm.xlu0 %3730, %v3937_v6  }
  0xb4   : > { %938 = vperm.xlu1 %3725, %v3934_v5  }
  0xb5   : > { %v4051_v35 = vpop.permute.xlu1 %524  ;;  %v4053_v36 = vpop.permute.xlu0 %528 }
  0xb6   : > { %1062 = vperm.xlu0 %3730, %v3945_v8   ;;  %v555_v26 = vmul.f32 %v4137_v16, %v4051_v35 }
  0xb8   : > { %946 = vperm.xlu1 %3725, %v3942_v7  }
  0xb9   : > { %v4058_v37 = vpop.permute.xlu1 %532  ;;  %v4060_v38 = vpop.permute.xlu0 %540 }
  0xba   : > { %3731 = vset.pattern.permute.xlu0 %v5507_v39  ;;  %v557_v28 = vmul.f32 %v4148_v46, %v4058_v37  ;;  %v495_v37 = vmul.f32 %v4128_v10, %v4037_v30  ;;  %v496_v46 = vmul.f32 %v4130_v11, %v4040_v31  ;;  %v4216_v31 = vunpack.c.l.bf16 %v3538_v60 }
  0xbb   : > { %1102 = vperm.xlu0 %3731, %v3921_v2   ;;  %v498_v60 = vmul.f32 %v4146_v45, %v4047_v34  ;;  %v5639_v34 = vld [vmem:[#allocation20_spill] sm:$0xff] }
  0xbc   : > { %3728 = vset.pattern.permute.xlu1 %v3832_v23  ;;  %v4139_v23 = vunpack.c.h.bf16 %v2985_v55  ;;  %v4158_v55 = vunpack.c.l.bf16 %v3001_v12  ;;  %v437_v12 = vmul.f32 %v4101_v51, %v4002_v17  ;;  %v439_v17 = vmul.f32 %v4110_v56, %v4016_v22  ;;  %5637 = vst [vmem:[#allocation22_spill] sm:$0xff] %v4216_v31 }
  0xbd   : > { %978 = vperm.xlu1 %3728, %v3929_v4   ;;  %v4083_v43 = vpop.permute.xlu1 %536  ;;  %v4085_v44 = vpop.permute.xlu0 %548 }
  0xbe   : > { %5630 = vst [vmem:[#allocation16_spill] sm:$0xff] %v4139_v23  ;;  %5632 = vst [vmem:[#allocation18_spill] sm:$0xff] %v4158_v55  ;;  %v556_v61 = vmul.f32 %v4139_v23, %v4053_v36  ;;  %v4188_v36 = vunpack.c.l.bf16 %v3537_v41 }
  0xbf   : > { %1114 = vperm.xlu0 %3731, %v3926_v3   ;;  %v3539_v3 = vld [vmem:[%s4098_s20 + $0x18] sm:$0xff]  }
  0xc0   : > { %v4196_v27 = vunpack.c.h.bf16 %v3539_v3  ;;  %v564_v23 = vadd.f32 %v556_v61, %v500_v48  ;;  %v440_v61 = vmul.f32 %v4107_v54, %v4013_v21  ;;  %v441_v21 = vmul.f32 %v4114_v58, %v4022_v25 }
  0xc1   : > { %982 = vperm.xlu1 %3728, %v3918_v1   ;;  %v4122_v63 = vpop.permute.xlu1 %544 }
  0xc2   : > { %v589_v13 = vpop.permute.xlu0 %588  ;;  %5635 = vst [vmem:[#allocation21_spill] sm:$0xff] %v4196_v27 }
  0xc3   : > { %1122 = vperm.xlu0 %3731, %v3934_v5   ;;  %v499_v5 = vadd.f32 %v491_v15, %v435_v14  ;;  %v494_v14 = vmul.f32 %v4126_v9, %v4034_v29  ;;  %v619_v35 = vmul.f32 %v4158_v55, %v589_v13  ;;  %v438_v15 = vmul.f32 %v4103_v52, %v4007_v19 }
  0xc4   : > { %v558_v13 = vmul.f32 %v4156_v50, %v4083_v43  ;;  %v3835_v55 = vmov 3   ;;  %v501_v19 = vadd.f32 %v493_v62, %v437_v12  ;;  %v559_v62 = vmul.f32 %v4150_v49, %v4060_v38 }
  0xc5   : > { %990 = vperm.xlu1 %3728, %v3937_v6   ;;  %v4161_v39 = vpop.permute.xlu1 %552  ;;  %v563_v29 = vadd.f32 %v555_v26, %v499_v5  ;;  %v502_v5 = vadd.f32 %v494_v14, %v438_v15  ;;  %v5636_v26 = vmov 20   ;;  %v560_v14 = vmul.f32 %v4166_v47, %v4122_v63 }
  0xc6   : > { %v601_v53 = vpop.permute.xlu0 %600  ;;  %v565_v22 = vadd.f32 %v557_v28, %v501_v19  ;;  %v503_v15 = vadd.f32 %v495_v37, %v439_v17  ;;  %v504_v28 = vadd.f32 %v496_v46, %v440_v61  ;;  %v497_v38 = vmul.f32 %v4144_v42, %v4044_v33 }
  0xc7   : > { %1130 = vperm.xlu0 %3731, %v3942_v7   ;;  %v627_v48 = vadd.f32 %v619_v35, %v563_v29  ;;  %v622_v43 = vmul.f32 %v4170_v20, %v601_v53  ;;  %v566_v12 = vadd.f32 %v558_v13, %v502_v5  ;;  %v561_v46 = vmul.f32 %v4164_v32, %v4085_v44  ;;  %v5652_v32 = vld [vmem:[#allocation18_spill] sm:$0xff] }
  0xc8   : > { %v567_v25 = vadd.f32 %v559_v62, %v503_v15  ;;  %v4235_v17 = vunpack.c.l.bf16 %v3539_v3  ;;  %v568_v19 = vadd.f32 %v560_v14, %v504_v28  ;;  %v562_v37 = vmul.f32 %v5639_v34, %v4161_v39 }
  0xc9   : > { %998 = vperm.xlu1 %3728, %v3945_v8   ;;  %v630_v29 = vadd.f32 %v622_v43, %v566_v12  ;;  %v505_v43 = vadd.f32 %v497_v38, %v441_v21  ;;  %v3836_v14 = vmov 12  }
  0xca   : > { %v593_v0 = vpop.permute.xlu1 %592  ;;  %v609_v18 = vpop.permute.xlu0 %608  ;;  %5638 = vst [vmem:[#allocation23_spill] sm:$0xff] %v4235_v17 }
  0xcb   : > { %v620_v41 = vmul.f32 %v4176_v59, %v593_v0  ;;  %3734 = vset.pattern.permute.xlu0 %v3835_v55  ;;  %v624_v63 = vmul.f32 %v4182_v40, %v609_v18 }
  0xcc   : > { %1179 = vperm.xlu0 %3734, %v3929_v4  }
  0xcd   : > { %v628_v0 = vadd.f32 %v620_v41, %v564_v23  ;;  %3729 = vset.pattern.permute.xlu1 %v5636_v26  ;;  %v442_v41 = vmul.f32 %v4112_v57, %v4019_v24  ;;  %v5640_v26 = vld [vmem:[#allocation4_spill] sm:$0xff] }
  0xce   : > { %1038 = vperm.xlu1 %3729, %v3921_v2   ;;  %v597_v30 = vpop.permute.xlu1 %596  ;;  %v617_v35 = vpop.permute.xlu0 %616 }
  0xcf   : > { %v635_v53 = vpack.c.bf16 %v628_v0, %v627_v48  ;;  %v621_v23 = vmul.f32 %v4188_v36, %v597_v30  ;;  %v506_v24 = vadd.f32 %v498_v60, %v442_v41  ;;  %v632_v0 = vadd.f32 %v624_v63, %v568_v19 }
  0xd0   : > { %1191 = vperm.xlu0 %3734, %v3937_v6   ;;  %v626_v44 = vmul.f32 %v4196_v27, %v617_v35  ;;  %v5641_v35 = vld [vmem:[#allocation6_spill] sm:$0xff]  ;;  %v5649_v27 = vld [vmem:[#allocation9_spill] sm:$0xff] }
  0xd1   : > { %640 = vst.msk [vmem:[#allocation2] sm:$0xff] %vm639_vm0, %v635_v53  ;;  %v629_v13 = vadd.f32 %v621_v23, %v565_v22  ;;  %v569_v22 = vadd.f32 %v561_v46, %v505_v43  ;;  %v570_v39 = vadd.f32 %v562_v37, %v506_v24  ;;  %v5531_v46 = vmov 21  }
  0xd2   : > { %1046 = vperm.xlu1 %3729, %v3918_v1   ;;  %v605_v33 = vpop.permute.xlu1 %604  ;;  %v5530_v24 = vmov 30  }
  0xd3   : > { %v636_v5 = vpack.c.bf16 %v630_v29, %v629_v13  ;;  %v623_v18 = vmul.f32 %v4216_v31, %v605_v33  ;;  %v4240_v48 = vpop.permute.xlu0 %665  ;;  %v634_v53 = vadd.f32 %v626_v44, %v570_v39  ;;  %v5642_v29 = vmov 29  }
  0xd4   : > { %1199 = vperm.xlu0 %3734, %v3945_v8  }
  0xd5   : > { %641 = vst.msk [vmem:[#allocation2 + $0x8] sm:$0xff] %vm639_vm0, %v636_v5  ;;  %v631_v3 = vadd.f32 %v623_v18, %v567_v25 }
  0xd6   : > { %1050 = vperm.xlu1 %3729, %v5640_v26   ;;  %v613_v61 = vpop.permute.xlu1 %612 }
  0xd7   : > { %v637_v62 = vpack.c.bf16 %v632_v0, %v631_v3  ;;  %v625_v30 = vmul.f32 %v4235_v17, %v613_v61  ;;  %v4247_v12 = vpop.permute.xlu0 %677 }
  0xd8   : > { %3735 = vset.pattern.permute.xlu0 %v3836_v14 }
  0xd9   : > { %642 = vst.msk [vmem:[#allocation2 + $0x10] sm:$0xff] %vm639_vm0, %v637_v62  ;;  %v633_v23 = vadd.f32 %v625_v30, %v569_v22  ;;  %1231 = vperm.xlu0 %3735, %v3921_v2   ;;  %v5536_v30 = vmov 4  }
  0xda   : > { %1058 = vperm.xlu1 %3729, %v5641_v35  }
  0xdb   : > { %v638_v21 = vpack.c.bf16 %v634_v53, %v633_v23  ;;  %v4252_v15 = vpop.permute.xlu1 %661  ;;  %v4254_v28 = vpop.permute.xlu0 %685 }
  0xdd   : > { %643 = vst.msk [vmem:[#allocation2 + $0x18] sm:$0xff] %vm639_vm0, %v638_v21  ;;  %1243 = vperm.xlu0 %3735, %v5640_v26  }
  0xde   : > { %1066 = vperm.xlu1 %3729, %v3942_v7  }
  0xdf   : > { %v4259_v38 = vpop.permute.xlu1 %669 }
  0xe0   : > { %v718_v60 = vpop.permute.xlu0 %717 }
  0xe1   : > { %1251 = vperm.xlu0 %3735, %v5641_v35  }
  0xe2   : > { %3732 = vset.pattern.permute.xlu1 %v5642_v29  ;;  %v5645_v29 = vld [vmem:[#allocation10_spill] sm:$0xff] }
  0xe3   : > { %1106 = vperm.xlu1 %3732, %v3929_v4   ;;  %v674_v63 = vpop.permute.xlu1 %673 }
  0xe4   : > { %v730_v13 = vpop.permute.xlu0 %729 }
  0xe5   : > { %1259 = vperm.xlu0 %3735, %v3942_v7  }
  0xe7   : > { %1110 = vperm.xlu1 %3732, %v3918_v1   ;;  %v682_v41 = vpop.permute.xlu1 %681 }
  0xe8   : > { %v738_v25 = vpop.permute.xlu0 %737 }
  0xe9   : > { %3738 = vset.pattern.permute.xlu0 %v5531_v46  ;;  %v5646_v46 = vld [vmem:[#allocation11_spill] sm:$0xff] }
  0xea   : > { %1299 = vperm.xlu0 %3738, %v3929_v4   ;;  %v693_v17 = vmul.f32 %v5646_v46, %v4240_v48  ;;  %v697_v48 = vmul.f32 %v4107_v54, %v682_v41 }
  0xeb   : > { %1118 = vperm.xlu1 %3732, %v3937_v6   ;;  %v4269_v33 = vpop.permute.xlu1 %689 }
  0xec   : > { %v4271_v19 = vpop.permute.xlu0 %745 }
  0xee   : > { %1311 = vperm.xlu0 %3738, %v3937_v6  }
  0xef   : > { %1126 = vperm.xlu1 %3732, %v3945_v8  }
  0xf0   : > { %v722_v37 = vpop.permute.xlu1 %721 }
  0xf1   : > { %v786_v5 = vpop.permute.xlu0 %785 }
  0xf2   : > { %1319 = vperm.xlu0 %3738, %v3945_v8  }
  0xf3   : > { %3733 = vset.pattern.permute.xlu1 %v3835_v55 }
  0xf4   : > { %1175 = vperm.xlu1 %3733, %v3921_v2   ;;  %v726_v18 = vpop.permute.xlu1 %725 }
  0xf5   : > { %v4278_v43 = vpop.permute.xlu0 %797 }
  0xf6   : > { %3739 = vset.pattern.permute.xlu0 %v5530_v24  ;;  %v748_v24 = vmul.f32 %v5645_v29, %v718_v60  ;;  %v695_v60 = vmul.f32 %v4103_v52, %v674_v63  ;;  %v751_v29 = vmul.f32 %v4126_v9, %v730_v13  ;;  %v698_v63 = vmul.f32 %v4114_v58, %v4254_v28 }
  0xf7   : > { %1359 = vperm.xlu0 %3739, %v3921_v2  }
  0xf8   : > { %1183 = vperm.xlu1 %3733, %v3918_v1   ;;  %v734_v0 = vpop.permute.xlu1 %733  ;;  %v759_v41 = vadd.f32 %v751_v29, %v695_v60 }
  0xf9   : > { %v4283_v44 = vpop.permute.xlu0 %805 }
  0xfa   : > { %5643 = vst [vmem:[#allocation20_spill] sm:$0xff] %v4283_v44  ;;  %v5550_v44 = vmov 13  }
  0xfb   : > { %1371 = vperm.xlu0 %3739, %v5640_v26  }
  0xfc   : > { %1187 = vperm.xlu1 %3733, %v5640_v26   ;;  %v4287_v55 = vpop.permute.xlu1 %741 }
  0xfe   : > { %v846_v3 = vpop.permute.xlu0 %845 }
  0xff   : > { %1379 = vperm.xlu0 %3739, %v5641_v35  }
 0x100   : > { %1195 = vperm.xlu1 %3733, %v5641_v35  }
 0x101   : > { %v782_v61 = vpop.permute.xlu1 %781 }
 0x102   : > { %v858_v22 = vpop.permute.xlu0 %857  ;;  %v812_v31 = vmul.f32 %v4137_v16, %v782_v61  ;;  %v5651_v61 = vld [vmem:[#allocation13_spill] sm:$0xff] }
 0x103   : > { %1387 = vperm.xlu0 %3739, %v3942_v7   ;;  %v750_v16 = vmul.f32 %v5651_v61, %v726_v18 }
 0x104   : > { %1203 = vperm.xlu1 %3733, %v3942_v7   ;;  %v5647_v7 = vld [vmem:[#allocation12_spill] sm:$0xff] }
 0x105   : > { %v790_v39 = vpop.permute.xlu1 %789 }
 0x106   : > { %v4293_v62 = vpop.permute.xlu0 %865 }
 0x107   : > { %3742 = vset.pattern.permute.xlu0 %v5536_v30  ;;  %v749_v30 = vmul.f32 %v5647_v7, %v722_v37  ;;  %v5650_v7 = vld [vmem:[#allocation16_spill] sm:$0xff] }
 0x108   : > { %3736 = vset.pattern.permute.xlu1 %v3836_v14  ;;  %1436 = vperm.xlu0 %3742, %v3929_v4   ;;  %v813_v46 = vmul.f32 %v5650_v7, %v786_v5  ;;  %v5653_v5 = vld [vmem:[#allocation17_spill] sm:$0xff] }
 0x109   : > { %1235 = vperm.xlu1 %3736, %v3929_v4   ;;  %v794_v53 = vpop.permute.xlu1 %793  ;;  %v692_v4 = vmul.f32 %v5649_v27, %v4252_v15  ;;  %v757_v37 = vadd.f32 %v749_v30, %v693_v17  ;;  %v753_v15 = vmul.f32 %v4130_v11, %v738_v25  ;;  %v696_v17 = vmul.f32 %v4110_v56, %v4247_v12 }
 0x10a   : > { %v4298_v23 = vpop.permute.xlu0 %873  ;;  %v814_v18 = vmul.f32 %v5653_v5, %v790_v39  ;;  %v755_v39 = vmul.f32 %v4146_v45, %v4271_v19 }
 0x10b   : > { %5644 = vst [vmem:[#allocation4_spill] sm:$0xff] %v4298_v23  ;;  %v821_v25 = vadd.f32 %v813_v46, %v757_v37  ;;  %v761_v30 = vadd.f32 %v753_v15, %v697_v48  ;;  %v699_v46 = vmul.f32 %v4112_v57, %v4269_v33  ;;  %v881_v33 = vmul.f32 %v4182_v40, %v4293_v62 }
 0x10c   : > { %1448 = vperm.xlu0 %3742, %v3937_v6  }
 0x10d   : > { %1239 = vperm.xlu1 %3736, %v3918_v1   ;;  %v802_v21 = vpop.permute.xlu1 %801  ;;  %v756_v1 = vadd.f32 %v748_v24, %v692_v4  ;;  %v815_v4 = vmul.f32 %v4156_v50, %v794_v53 }
 0x10e   : > { %v817_v11 = vmul.f32 %v4166_v47, %v802_v21 }
 0x10f   : > { %v4306_v14 = vpop.permute.xlu0 %922  ;;  %v820_v27 = vadd.f32 %v812_v31, %v756_v1  ;;  %v694_v1 = vmul.f32 %v4101_v51, %v4259_v38  ;;  %v752_v31 = vmul.f32 %v4128_v10, %v734_v0  ;;  %v823_v28 = vadd.f32 %v815_v4, %v759_v41 }
 0x110   : > { %5648 = vst [vmem:[#allocation6_spill] sm:$0xff] %v4306_v14  ;;  %1456 = vperm.xlu0 %3742, %v3945_v8   ;;  %v5654_v0 = vmov 21   ;;  %v825_v37 = vadd.f32 %v817_v11, %v761_v30  ;;  %v763_v4 = vadd.f32 %v755_v39, %v699_v46  ;;  %v5662_v39 = vld [vmem:[#allocation23_spill] sm:$0xff] }
 0x111   : > { %1247 = vperm.xlu1 %3736, %v3937_v6   ;;  %v810_v23 = vpop.permute.xlu1 %809  ;;  %v876_v6 = vmul.f32 %v5652_v32, %v846_v3  ;;  %v758_v53 = vadd.f32 %v750_v16, %v694_v1  ;;  %v760_v29 = vadd.f32 %v752_v31, %v696_v17  ;;  %v5656_v17 = vld [vmem:[#allocation19_spill] sm:$0xff] }
 0x112   : > { %v819_v15 = vmul.f32 %v5639_v34, %v810_v23  ;;  %v5657_v31 = vld [vmem:[#allocation3_spill] sm:$0xff]  ;;  %v889_v23 = vadd.f32 %v881_v33, %v825_v37  ;;  %v5659_v30 = vld [vmem:[#allocation4_spill] sm:$0xff] }
 0x113   : > { %v4317_v14 = vpop.permute.xlu0 %934  ;;  %v884_v12 = vadd.f32 %v876_v6, %v820_v27  ;;  %v816_v6 = vmul.f32 %v4150_v49, %v4278_v43  ;;  %v754_v27 = vmul.f32 %v4144_v42, %v4287_v55  ;;  %v5655_v55 = vld [vmem:[#allocation20_spill] sm:$0xff]  ;;  %v5664_v37 = vld [vmem:[#allocation7_spill] sm:$0xff] }
 0x114   : > { %3743 = vset.pattern.permute.xlu0 %v5550_v44  ;;  %v879_v44 = vmul.f32 %v4170_v20, %v858_v22  ;;  %v822_v22 = vadd.f32 %v814_v18, %v758_v53  ;;  %v818_v1 = vmul.f32 %v5656_v17, %v5655_v55  ;;  %v5658_v18 = vld [vmem:[#allocation22_spill] sm:$0xff]  ;;  %v5660_v53 = vld [vmem:[#allocation21_spill] sm:$0xff] }
 0x115   : > { %1255 = vperm.xlu1 %3736, %v3945_v8   ;;  %1488 = vperm.xlu0 %3743, %v3921_v2   ;;  %v824_v41 = vadd.f32 %v816_v6, %v760_v29  ;;  %v762_v62 = vadd.f32 %v754_v27, %v698_v63 }
 0x116   : > { %v850_v13 = vpop.permute.xlu1 %849  ;;  %v887_v19 = vadd.f32 %v879_v44, %v823_v28 }
 0x117   : > { %v877_v24 = vmul.f32 %v4176_v59, %v850_v13  ;;  %v4335_v3 = vpop.permute.xlu0 %942  ;;  %v826_v46 = vadd.f32 %v818_v1, %v762_v62 }
 0x119   : > { %v885_v38 = vadd.f32 %v877_v24, %v821_v25  ;;  %3737 = vset.pattern.permute.xlu1 %v5654_v0  ;;  %1500 = vperm.xlu0 %3743, %v5640_v26   ;;  %v827_v24 = vadd.f32 %v819_v15, %v763_v4  ;;  %v5665_v4 = vmov 30  }
 0x11a   : > { %1295 = vperm.xlu1 %3737, %v3921_v2   ;;  %v854_v16 = vpop.permute.xlu1 %853 }
 0x11b   : > { %v892_v21 = vpack.c.bf16 %v885_v38, %v884_v12  ;;  %v878_v60 = vmul.f32 %v4188_v36, %v854_v16  ;;  %v883_v12 = vmul.f32 %v5660_v53, %v5659_v30  ;;  %v5661_v38 = vld [vmem:[#allocation8_spill] sm:$0xff]  ;;  %v5667_v30 = vmov 4  }
 0x11c   : > { %v4353_v48 = vpop.permute.xlu0 %974 }
 0x11d   : > { %897 = vst.msk [vmem:[#allocation2] sm:$0xff] %vm896_vm1, %v892_v21  ;;  %v886_v43 = vadd.f32 %v878_v60, %v822_v22  ;;  %1508 = vperm.xlu0 %3743, %v5641_v35   ;;  %v891_v16 = vadd.f32 %v883_v12, %v827_v24  ;;  %v5554_v22 = vmov 22   ;;  %v5663_v21 = vld [vmem:[#allocation5_spill] sm:$0xff] }
 0x11e   : > { %1303 = vperm.xlu1 %3737, %v5657_v31   ;;  %v862_v13 = vpop.permute.xlu1 %861 }
 0x11f   : > { %v893_v25 = vpack.c.bf16 %v887_v19, %v886_v43  ;;  %v880_v44 = vmul.f32 %v5658_v18, %v862_v13  ;;  %v5553_v13 = vmov 31   ;;  %v5677_v18 = vld [vmem:[#allocation12_spill] sm:$0xff] }
 0x120   : > { %v4362_v11 = vpop.permute.xlu0 %986 }
 0x121   : > { %898 = vst.msk [vmem:[#allocation2 + $0x8] sm:$0xff] %vm896_vm1, %v893_v25  ;;  %v888_v28 = vadd.f32 %v880_v44, %v824_v41  ;;  %1516 = vperm.xlu0 %3743, %v5661_v38  }
 0x122   : > { %1307 = vperm.xlu1 %3737, %v5640_v26   ;;  %v870_v0 = vpop.permute.xlu1 %869 }
 0x123   : > { %v894_v63 = vpack.c.bf16 %v889_v23, %v888_v28  ;;  %v882_v29 = vmul.f32 %v5662_v39, %v870_v0  ;;  %v5552_v0 = vmov 5   ;;  %v5674_v39 = vld [vmem:[#allocation11_spill] sm:$0xff] }
 0x124   : > { %v4370_v6 = vpop.permute.xlu0 %994 }
 0x125   : > { %899 = vst.msk [vmem:[#allocation2 + $0x10] sm:$0xff] %vm896_vm1, %v894_v63  ;;  %v890_v27 = vadd.f32 %v882_v29, %v826_v46  ;;  %3746 = vset.pattern.permute.xlu0 %v5554_v22 }
 0x126   : > { %1315 = vperm.xlu1 %3737, %v5641_v35   ;;  %1556 = vperm.xlu0 %3746, %v5663_v21  }
 0x127   : > { %v895_v60 = vpack.c.bf16 %v891_v16, %v890_v27  ;;  %v919_v33 = vpop.permute.xlu1 %918 }
 0x128   : > { %v4377_v19 = vpop.permute.xlu0 %1002 }
 0x129   : > { %900 = vst.msk [vmem:[#allocation2 + $0x18] sm:$0xff] %vm896_vm1, %v895_v60 }
 0x12a   : > { %1323 = vperm.xlu1 %3737, %v5661_v38   ;;  %1568 = vperm.xlu0 %3746, %v5664_v37  }
 0x12b   : > { %v4381_v15 = vpop.permute.xlu1 %926 }
 0x12d   : > { %v4383_v43 = vpop.permute.xlu0 %1042 }
 0x12e   : > { %3740 = vset.pattern.permute.xlu1 %v5665_v4  ;;  %1576 = vperm.xlu0 %3746, %v3945_v8   ;;  %v5555_v4 = vmov 14  }
 0x12f   : > { %1363 = vperm.xlu1 %3740, %v5663_v21   ;;  %v931_v55 = vpop.permute.xlu1 %930 }
 0x131   : > { %v4388_v1 = vpop.permute.xlu0 %1054 }
 0x132   : > { %3747 = vset.pattern.permute.xlu0 %v5553_v13  ;;  %v5672_v13 = vmov 13  }
 0x133   : > { %1367 = vperm.xlu1 %3740, %v5657_v31   ;;  %v4392_v41 = vpop.permute.xlu1 %938  ;;  %1616 = vperm.xlu0 %3747, %v3921_v2  }
 0x135   : > { %v4395_v62 = vpop.permute.xlu0 %1062 }
 0x136   : > { %5666 = vst [vmem:[#allocation16_spill] sm:$0xff] %v4395_v62 }
 0x137   : > { %1375 = vperm.xlu1 %3740, %v5664_v37   ;;  %v4398_v25 = vpop.permute.xlu1 %946  ;;  %1628 = vperm.xlu0 %3747, %v5640_v26  }
 0x13a   : > { %v1103_v44 = vpop.permute.xlu0 %1102 }
 0x13b   : > { %1383 = vperm.xlu1 %3740, %v3945_v8   ;;  %1636 = vperm.xlu0 %3747, %v5641_v35  }
 0x13c   : > { %v979_v23 = vpop.permute.xlu1 %978 }
 0x13e   : > { %v4403_v24 = vpop.permute.xlu0 %1114 }
 0x13f   : > { %3741 = vset.pattern.permute.xlu1 %v5667_v30  ;;  %1644 = vperm.xlu0 %3747, %v5661_v38  }
 0x140   : > { %1432 = vperm.xlu1 %3741, %v3921_v2   ;;  %v983_v12 = vpop.permute.xlu1 %982 }
 0x142   : > { %v4408_v28 = vpop.permute.xlu0 %1122 }
 0x143   : > { %3750 = vset.pattern.permute.xlu0 %v5552_v0 }
 0x144   : > { %1440 = vperm.xlu1 %3741, %v5657_v31   ;;  %v991_v46 = vpop.permute.xlu1 %990  ;;  %1693 = vperm.xlu0 %3750, %v5663_v21  }
 0x146   : > { %v4413_v63 = vpop.permute.xlu0 %1130 }
 0x147   : > { %5668 = vst [vmem:[#allocation13_spill] sm:$0xff] %v4413_v63 }
 0x148   : > { %1444 = vperm.xlu1 %3741, %v5640_v26   ;;  %v4416_v29 = vpop.permute.xlu1 %998  ;;  %1705 = vperm.xlu0 %3750, %v5664_v37  }
 0x14b   : > { %v4419_v16 = vpop.permute.xlu0 %1179 }
 0x14c   : > { %5669 = vst [vmem:[#allocation18_spill] sm:$0xff] %v4419_v16  ;;  %1452 = vperm.xlu1 %3741, %v5641_v35   ;;  %1713 = vperm.xlu0 %3750, %v3945_v8  }
 0x14d   : > { %v1039_v27 = vpop.permute.xlu1 %1038 }
 0x14f   : > { %v4423_v60 = vpop.permute.xlu0 %1191 }
 0x150   : > { %5670 = vst [vmem:[#allocation17_spill] sm:$0xff] %v4423_v60  ;;  %1460 = vperm.xlu1 %3741, %v5661_v38   ;;  %3751 = vset.pattern.permute.xlu0 %v5555_v4  ;;  %v5673_v4 = vld [vmem:[#allocation6_spill] sm:$0xff] }
 0x151   : > { %v1047_v30 = vpop.permute.xlu1 %1046  ;;  %1745 = vperm.xlu0 %3751, %v3921_v2   ;;  %v950_v53 = vmul.f32 %v5674_v39, %v5673_v4  ;;  %v5675_v2 = vld [vmem:[#allocation9_spill] sm:$0xff] }
 0x152   : > { %v949_v63 = vmul.f32 %v5675_v2, %v919_v33  ;;  %v952_v33 = vmul.f32 %v4103_v52, %v931_v55  ;;  %v5682_v2 = vld [vmem:[#allocation16_spill] sm:$0xff] }
 0x153   : > { %v4428_v0 = vpop.permute.xlu0 %1199 }
 0x154   : > { %5671 = vst [vmem:[#allocation20_spill] sm:$0xff] %v4428_v0  ;;  %3744 = vset.pattern.permute.xlu1 %v5672_v13  ;;  %v5676_v0 = vld [vmem:[#allocation10_spill] sm:$0xff] }
 0x155   : > { %1492 = vperm.xlu1 %3744, %v5663_v21   ;;  %v1051_v22 = vpop.permute.xlu1 %1050  ;;  %1757 = vperm.xlu0 %3751, %v5640_v26   ;;  %v1005_v13 = vmul.f32 %v5676_v0, %v4353_v48  ;;  %v1006_v21 = vmul.f32 %v5677_v18, %v979_v23  ;;  %v5678_v26 = vld [vmem:[#allocation15_spill] sm:$0xff]  ;;  %v1070_v48 = vmul.f32 %v5650_v7, %v4383_v43 }
 0x156   : > { %v1069_v62 = vmul.f32 %v5678_v26, %v1039_v27  ;;  %v953_v18 = vmul.f32 %v4110_v56, %v4317_v14  ;;  %v1007_v23 = vmul.f32 %v5651_v61, %v983_v12  ;;  %v1072_v52 = vmul.f32 %v4156_v50, %v1051_v22  ;;  %v5685_v26 = vld [vmem:[#allocation22_spill] sm:$0xff] }
 0x157   : > { %v1013_v39 = vadd.f32 %v1005_v13, %v949_v63  ;;  %v1014_v4 = vadd.f32 %v1006_v21, %v950_v53  ;;  %v951_v7 = vmul.f32 %v4101_v51, %v4381_v15  ;;  %v954_v56 = vmul.f32 %v4107_v54, %v4392_v41  ;;  %v4509_v13 = vld [vmem:[%s3915_s30 + $0x10] sm:$0xff] }
 0x158   : > { %v4433_v16 = vpop.permute.xlu0 %1231  ;;  %v1009_v61 = vmul.f32 %v4128_v10, %v991_v46  ;;  %v1071_v53 = vmul.f32 %v5653_v5, %v1047_v30  ;;  %v1012_v54 = vmul.f32 %v4146_v45, %v4377_v19  ;;  %v1073_v10 = vmul.f32 %v4150_v49, %v4388_v1 }
 0x159   : > { %1496 = vperm.xlu1 %3744, %v5657_v31   ;;  %v1059_v60 = vpop.permute.xlu1 %1058  ;;  %1765 = vperm.xlu0 %3751, %v5641_v35   ;;  %v1008_v35 = vmul.f32 %v4126_v9, %v4362_v11  ;;  %v1077_v0 = vadd.f32 %v1069_v62, %v1013_v39  ;;  %v1133_v9 = vmul.f32 %v5652_v32, %v1103_v44  ;;  %v5561_v11 = vmov 23   ;;  %v4472_v32 = vld [vmem:[%s3915_s30 + $0x8] sm:$0xff]  ;;  %v4490_v44 = vld [vmem:[%s3915_s30] sm:$0xff] }
 0x15a   : > { %5680 = vst [vmem:[#allocation3_spill] sm:$0xff] %v4472_v32  ;;  %v1078_v50 = vadd.f32 %v1070_v48, %v1014_v4  ;;  %v1015_v22 = vadd.f32 %v1007_v23, %v951_v7  ;;  %v1074_v55 = vmul.f32 %v4166_v47, %v1059_v60  ;;  %v5681_v5 = vmov 22   ;;  %v5687_v4 = vld [vmem:[#allocation21_spill] sm:$0xff] }
 0x15b   : > { %v1141_v15 = vadd.f32 %v1133_v9, %v1077_v0  ;;  %v956_v45 = vmul.f32 %v4112_v57, %v4398_v25  ;;  %v1017_v19 = vadd.f32 %v1009_v61, %v953_v18  ;;  %v1011_v47 = vmul.f32 %v4144_v42, %v4416_v29  ;;  %v5683_v42 = vld [vmem:[#allocation19_spill] sm:$0xff]  ;;  %v4523_v0 = vld [vmem:[%s3915_s30 + $0x18] sm:$0xff] }
 0x15c   : > { %v4443_v17 = vpop.permute.xlu0 %1243  ;;  %v1079_v1 = vadd.f32 %v1071_v53, %v1015_v22  ;;  %v1138_v25 = vmul.f32 %v4182_v40, %v4408_v28  ;;  %v1075_v29 = vmul.f32 %v5683_v42, %v5682_v2  ;;  %v4513_v40 = vld [vmem:[%s3915_s30 + $0x30] sm:$0xff]  ;;  %v5556_v42 = vmov 7  }
 0x15d   : > { %1504 = vperm.xlu1 %3744, %v5664_v37   ;;  %v1067_v31 = vpop.permute.xlu1 %1066  ;;  %1773 = vperm.xlu0 %3751, %v5661_v38   ;;  %v955_v37 = vmul.f32 %v4114_v58, %v4335_v3  ;;  %v5679_v58 = vld [vmem:[#allocation14_spill] sm:$0xff]  ;;  %v1020_v30 = vadd.f32 %v1012_v54, %v956_v45  ;;  %5684 = vst [vmem:[#allocation4_spill] sm:$0xff] %v4513_v40 }
 0x15e   : > { %v1010_v14 = vmul.f32 %v5679_v58, %v4370_v6  ;;  %v1136_v6 = vmul.f32 %v4170_v20, %v4403_v24  ;;  %v4494_v20 = vld [vmem:[%s3915_s30 + $0x20] sm:$0xff]  ;;  %v1076_v63 = vmul.f32 %v5639_v34, %v1067_v31  ;;  %v1081_v34 = vadd.f32 %v1073_v10, %v1017_v19 }
 0x15f   : > { %v1019_v28 = vadd.f32 %v1011_v47, %v955_v37  ;;  %v5560_v37 = vmov 32   ;;  %v5690_v10 = vmov 31  }
 0x160   : > { %v4458_v38 = vpop.permute.xlu0 %1251  ;;  %v1084_v39 = vadd.f32 %v1076_v63, %v1020_v30 }
 0x161   : > { %1512 = vperm.xlu1 %3744, %v3945_v8   ;;  %3754 = vset.pattern.permute.xlu0 %v5561_v11  ;;  %v1016_v8 = vadd.f32 %v1008_v35, %v952_v33  ;;  %v5686_v33 = vld [vmem:[#allocation13_spill] sm:$0xff] }
 0x162   : > { %v1107_v3 = vpop.permute.xlu1 %1106  ;;  %1813 = vperm.xlu0 %3754, %v4472_v32   ;;  %v1140_v48 = vmul.f32 %v5687_v4, %v5686_v33 }
 0x163   : > { %v1134_v51 = vmul.f32 %v4176_v59, %v1107_v3  ;;  %v1080_v43 = vadd.f32 %v1072_v52, %v1016_v8  ;;  %v1018_v59 = vadd.f32 %v1010_v14, %v954_v56  ;;  %v1083_v52 = vadd.f32 %v1075_v29, %v1019_v28  ;;  %v5688_v56 = vld [vmem:[#allocation23_spill] sm:$0xff]  ;;  %v3145_v29 = vld [vmem:[%s4065_s11] sm:$0xff]  }
 0x164   : > { %v4485_v62 = vpop.permute.xlu0 %1259  ;;  %v1148_v14 = vadd.f32 %v1140_v48, %v1084_v39  ;;  %v4533_v8 = vld [vmem:[%s3915_s30 + $0x28] sm:$0xff]  ;;  %v5699_v28 = vmov 14   ;;  %v4618_v33 = vunpack.c.h.bf16 %v3145_v29  ;;  %v3566_v48 = vld [vmem:[%s4065_s11 + $0x18] sm:$0xff]  }
 0x165   : > { %v1142_v41 = vadd.f32 %v1134_v51, %v1078_v50  ;;  %3745 = vset.pattern.permute.xlu1 %v5681_v5  ;;  %v1144_v12 = vadd.f32 %v1136_v6, %v1080_v43  ;;  %v1082_v46 = vadd.f32 %v1074_v55, %v1018_v59  ;;  %v4541_v51 = vld [vmem:[%s3915_s30 + $0x38] sm:$0xff] }
 0x166   : > { %1552 = vperm.xlu1 %3745, %v4490_v44   ;;  %v1111_v49 = vpop.permute.xlu1 %1110  ;;  %1825 = vperm.xlu0 %3754, %v4494_v20   ;;  %5689 = vst [vmem:[#allocation8_spill] sm:$0xff] %v4541_v51  ;;  %5701 = vst [vmem:[#allocation14_spill] sm:$0xff] %v4618_v33 }
 0x167   : > { %v1149_v24 = vpack.c.bf16 %v1142_v41, %v1141_v15  ;;  %v1135_v57 = vmul.f32 %v4188_v36, %v1111_v49  ;;  %v1146_v35 = vadd.f32 %v1138_v25, %v1082_v46  ;;  %v5559_v41 = vmov 6  }
 0x168   : > { %v5693_v49 = vmov 5  }
 0x169   : > { %1154 = vst.msk [vmem:[#allocation2] sm:$0xff] %vm1153_vm2, %v1149_v24  ;;  %v1143_v27 = vadd.f32 %v1135_v57, %v1079_v1  ;;  %v4504_v60 = vpop.permute.xlu0 %1299  ;;  %v5558_v24 = vmov 15  }
 0x16a   : > { %1560 = vperm.xlu1 %3745, %v4509_v13   ;;  %v1119_v36 = vpop.permute.xlu1 %1118  ;;  %1833 = vperm.xlu0 %3754, %v4513_v40  }
 0x16b   : > { %v1150_v21 = vpack.c.bf16 %v1144_v12, %v1143_v27  ;;  %v1137_v31 = vmul.f32 %v5685_v26, %v1119_v36  ;;  %v3161_v36 = vld [vmem:[%s4071_s14] sm:$0xff]   ;;  %v3565_v26 = vld [vmem:[%s4065_s11 + $0x10] sm:$0xff]  }
 0x16c   : > { %v4620_v4 = vunpack.c.l.bf16 %v3565_v26 }
 0x16d   : > { %1155 = vst.msk [vmem:[#allocation2 + $0x8] sm:$0xff] %vm1153_vm2, %v1150_v21  ;;  %v1145_v18 = vadd.f32 %v1137_v31, %v1081_v34  ;;  %v4520_v23 = vpop.permute.xlu0 %1311  ;;  %v3564_v34 = vld [vmem:[%s4065_s11 + $0x8] sm:$0xff]  }
 0x16e   : > { %1564 = vperm.xlu1 %3745, %v4523_v0   ;;  %v1127_v9 = vpop.permute.xlu1 %1126  ;;  %3755 = vset.pattern.permute.xlu0 %v5560_v37  ;;  %v3567_v31 = vld [vmem:[%s4071_s14 + $0x8] sm:$0xff]   ;;  %v3193_v37 = vld [vmem:[%s4098_s20] sm:$0xff]  }
 0x16f   : > { %v1151_v7 = vpack.c.bf16 %v1146_v35, %v1145_v18  ;;  %v1139_v58 = vmul.f32 %v5688_v56, %v1127_v9  ;;  %1873 = vperm.xlu0 %3755, %v4490_v44   ;;  %v3568_v35 = vld [vmem:[%s4071_s14 + $0x10] sm:$0xff]   ;;  %v4623_v18 = vunpack.c.l.bf16 %v3145_v29  ;;  %v3569_v9 = vld [vmem:[%s4071_s14 + $0x18] sm:$0xff]   ;;  %v4630_v56 = vunpack.c.l.bf16 %v3161_v36 }
 0x170   : > { %v4643_v29 = vunpack.c.h.bf16 %v3568_v35 }
 0x171   : > { %1156 = vst.msk [vmem:[#allocation2 + $0x10] sm:$0xff] %vm1153_vm2, %v1151_v7  ;;  %v1147_v61 = vadd.f32 %v1139_v58, %v1083_v52  ;;  %v4530_v3 = vpop.permute.xlu0 %1319  ;;  %5702 = vst [vmem:[#allocation16_spill] sm:$0xff] %v4623_v18  ;;  %v3177_v52 = vld [vmem:[%s4080_s17] sm:$0xff]   ;;  %v4628_v7 = vunpack.c.l.bf16 %v3566_v48  ;;  %v4632_v58 = vunpack.c.l.bf16 %v3564_v34 }
 0x172   : > { %1572 = vperm.xlu1 %3745, %v4533_v8   ;;  %5704 = vst [vmem:[#allocation22_spill] sm:$0xff] %v4630_v56  ;;  %5707 = vst [vmem:[#allocation23_spill] sm:$0xff] %v4643_v29 }
 0x173   : > { %v1152_v50 = vpack.c.bf16 %v1148_v14, %v1147_v61  ;;  %v4536_v53 = vpop.permute.xlu1 %1175  ;;  %1885 = vperm.xlu0 %3755, %v4523_v0   ;;  %5703 = vst [vmem:[#allocation19_spill] sm:$0xff] %v4628_v7  ;;  %v4634_v14 = vunpack.c.h.bf16 %v3161_v36  ;;  %v3571_v61 = vld [vmem:[%s4080_s17 + $0x10] sm:$0xff]   ;;  %v4652_v36 = vunpack.c.l.bf16 %v3177_v52 }
 0x175   : > { %1157 = vst.msk [vmem:[#allocation2 + $0x18] sm:$0xff] %vm1153_vm2, %v1152_v50  ;;  %5705 = vst [vmem:[#allocation13_spill] sm:$0xff] %v4634_v14  ;;  %v4637_v50 = vunpack.c.h.bf16 %v3564_v34  ;;  %v3570_v34 = vld [vmem:[%s4080_s17 + $0x8] sm:$0xff]  }
 0x176   : > { %1580 = vperm.xlu1 %3745, %v4541_v51   ;;  %v4544_v54 = vpop.permute.xlu0 %1359  ;;  %5709 = vst [vmem:[#allocation25_spill] sm:$0xff] %v4652_v36 }
 0x177   : > { %v4546_v22 = vpop.permute.xlu1 %1183  ;;  %1893 = vperm.xlu0 %3755, %v4533_v8  }
 0x17a   : > { %3748 = vset.pattern.permute.xlu1 %v5690_v10  ;;  %v4550_v6 = vpop.permute.xlu0 %1371  ;;  %v4639_v10 = vunpack.c.h.bf16 %v3567_v31 }
 0x17b   : > { %1620 = vperm.xlu1 %3748, %v4472_v32   ;;  %v4553_v15 = vpop.permute.xlu1 %1187  ;;  %1901 = vperm.xlu0 %3755, %v4541_v51  }
 0x17c   : > { %5706 = vst [vmem:[#allocation21_spill] sm:$0xff] %v4639_v10 }
 0x17e   : > { %v4556_v43 = vpop.permute.xlu0 %1379 }
 0x17f   : > { %1624 = vperm.xlu1 %3748, %v4509_v13   ;;  %v4559_v55 = vpop.permute.xlu1 %1195  ;;  %3758 = vset.pattern.permute.xlu0 %v5559_v41  ;;  %v3572_v41 = vld [vmem:[%s4080_s17 + $0x18] sm:$0xff]  }
 0x180   : > { %1950 = vperm.xlu0 %3758, %v4472_v32  }
 0x182   : > { %v4563_v5 = vpop.permute.xlu0 %1387 }
 0x183   : > { %5691 = vst [vmem:[#allocation5_spill] sm:$0xff] %v4563_v5  ;;  %1632 = vperm.xlu1 %3748, %v4494_v20   ;;  %v4566_v59 = vpop.permute.xlu1 %1203  ;;  %v4680_v5 = vunpack.c.l.bf16 %v3193_v37 }
 0x184   : > { %1962 = vperm.xlu0 %3758, %v4494_v20  }
 0x187   : > { %1640 = vperm.xlu1 %3748, %v4513_v40   ;;  %v4570_v45 = vpop.permute.xlu0 %1436 }
 0x188   : > { %5692 = vst [vmem:[#allocation7_spill] sm:$0xff] %v4570_v45  ;;  %v4572_v19 = vpop.permute.xlu1 %1235  ;;  %1970 = vperm.xlu0 %3758, %v4513_v40   ;;  %v1262_v45 = vmul.f32 %v4630_v56, %v4433_v16  ;;  %v4698_v56 = vunpack.c.h.bf16 %v3572_v41 }
 0x18b   : > { %3749 = vset.pattern.permute.xlu1 %v5693_v49  ;;  %v4576_v47 = vpop.permute.xlu0 %1448  ;;  %v4641_v49 = vunpack.c.h.bf16 %v3565_v26  ;;  %v4659_v26 = vunpack.c.l.bf16 %v3567_v31  ;;  %v1263_v31 = vmul.f32 %v4634_v14, %v4572_v19 }
 0x18c   : > { %5694 = vst [vmem:[#allocation6_spill] sm:$0xff] %v4576_v47  ;;  %1689 = vperm.xlu1 %3749, %v4490_v44   ;;  %v4579_v1 = vpop.permute.xlu1 %1239  ;;  %3759 = vset.pattern.permute.xlu0 %v5558_v24  ;;  %v4649_v24 = vunpack.c.h.bf16 %v3177_v52  ;;  %v5712_v47 = vld [vmem:[#allocation18_spill] sm:$0xff] }
 0x18d   : > { %2002 = vperm.xlu0 %3759, %v4490_v44   ;;  %v1207_v52 = vmul.f32 %v4618_v33, %v5712_v47  ;;  %v4685_v33 = vunpack.c.h.bf16 %v3570_v34 }
 0x18f   : > { %v4583_v57 = vpop.permute.xlu0 %1456  ;;  %5713 = vst [vmem:[#allocation18_spill] sm:$0xff] %v4685_v33 }
 0x190   : > { %5695 = vst [vmem:[#allocation11_spill] sm:$0xff] %v4583_v57  ;;  %1697 = vperm.xlu1 %3749, %v4509_v13   ;;  %v4586_v25 = vpop.permute.xlu1 %1247  ;;  %v3573_v57 = vld [vmem:[%s4098_s20 + $0x8] sm:$0xff]  }
 0x191   : > { %2014 = vperm.xlu0 %3759, %v4523_v0  }
 0x194   : > { %1701 = vperm.xlu1 %3749, %v4523_v0   ;;  %v4590_v12 = vpop.permute.xlu1 %1255  ;;  %v4592_v46 = vpop.permute.xlu0 %1488 }
 0x195   : > { %5696 = vst [vmem:[#allocation9_spill] sm:$0xff] %v4592_v46  ;;  %2022 = vperm.xlu0 %3759, %v4533_v8   ;;  %v4678_v46 = vunpack.c.l.bf16 %v3572_v41  ;;  %v4710_v41 = vunpack.c.l.bf16 %v3573_v57 }
 0x198   : > { %1709 = vperm.xlu1 %3749, %v4533_v8   ;;  %v4596_v63 = vpop.permute.xlu0 %1500 }
 0x199   : > { %5697 = vst [vmem:[#allocation10_spill] sm:$0xff] %v4596_v63  ;;  %v1296_v27 = vpop.permute.xlu1 %1295  ;;  %2030 = vperm.xlu0 %3759, %v4541_v51   ;;  %v1206_v63 = vmul.f32 %v4623_v18, %v4536_v53  ;;  %v4687_v53 = vunpack.c.h.bf16 %v3573_v57  ;;  %v4689_v18 = vunpack.c.h.bf16 %v3571_v61  ;;  %v1211_v57 = vmul.f32 %v4641_v49, %v4559_v55 }
 0x19a   : > { %v1326_v47 = vmul.f32 %v4652_v36, %v1296_v27  ;;  %v5578_v27 = vmov 16   ;;  %v1271_v36 = vadd.f32 %v1263_v31, %v1207_v52 }
 0x19c   : > { %1717 = vperm.xlu1 %3749, %v4541_v51   ;;  %v4600_v30 = vpop.permute.xlu0 %1508 }
 0x19d   : > { %5698 = vst [vmem:[#allocation12_spill] sm:$0xff] %v4600_v30  ;;  %v4602_v2 = vpop.permute.xlu1 %1303  ;;  %3763 = vset.pattern.permute.xlu0 %v5556_v42  ;;  %v4647_v42 = vunpack.c.h.bf16 %v3569_v9  ;;  %v4661_v30 = vunpack.c.l.bf16 %v3568_v35  ;;  %v4676_v35 = vunpack.c.l.bf16 %v3569_v9  ;;  %v1265_v9 = vmul.f32 %v4639_v10, %v4443_v17  ;;  %v5716_v10 = vld [vmem:[#allocation17_spill] sm:$0xff] }
 0x19e   : > { %2207 = vperm.xlu0 %3763, %v4472_v32   ;;  %v1264_v17 = vmul.f32 %v4659_v26, %v4579_v1  ;;  %v1208_v1 = vmul.f32 %v4632_v58, %v4546_v22  ;;  %v5718_v22 = vld [vmem:[#allocation20_spill] sm:$0xff] }
 0x19f   : > { %5708 = vst [vmem:[#allocation24_spill] sm:$0xff] %v4647_v42  ;;  %5711 = vst [vmem:[#allocation27_spill] sm:$0xff] %v4661_v30  ;;  %v1212_v55 = vmul.f32 %v4628_v7, %v5718_v22 }
 0x1a0   : > { %3752 = vset.pattern.permute.xlu1 %v5699_v28  ;;  %v4610_v21 = vpop.permute.xlu0 %1516  ;;  %v4645_v28 = vunpack.c.h.bf16 %v3566_v48  ;;  %v4663_v48 = vunpack.c.l.bf16 %v3571_v61  ;;  %v1209_v61 = vmul.f32 %v4637_v50, %v4553_v15  ;;  %v1390_v15 = vmul.f32 %v4680_v5, %v4544_v54 }
 0x1a1   : > { %5700 = vst [vmem:[#allocation15_spill] sm:$0xff] %v4610_v21  ;;  %1749 = vperm.xlu1 %3752, %v4472_v32   ;;  %v4616_v39 = vpop.permute.xlu1 %1307  ;;  %v4700_v32 = vunpack.c.h.bf16 %v3193_v37  ;;  %v1266_v54 = vmul.f32 %v4661_v30, %v4586_v25  ;;  %v1393_v25 = vmul.f32 %v4687_v53, %v4550_v6 }
 0x1a2   : > { %2211 = vperm.xlu0 %3763, %v4509_v13   ;;  %v1273_v31 = vadd.f32 %v1265_v9, %v1209_v61  ;;  %v5719_v61 = vmov 23  }
 0x1a3   : > { %5715 = vst [vmem:[#allocation29_spill] sm:$0xff] %v4700_v32 }
 0x1a5   : > { %1753 = vperm.xlu1 %3752, %v4509_v13   ;;  %v1316_v11 = vpop.permute.xlu1 %1315  ;;  %v4657_v21 = vpop.permute.xlu0 %1556 }
 0x1a6   : > { %5710 = vst [vmem:[#allocation26_spill] sm:$0xff] %v4657_v21  ;;  %2231 = vperm.xlu0 %3763, %v4541_v51   ;;  %v3574_v21 = vld [vmem:[%s4098_s20 + $0x10] sm:$0xff]   ;;  %v4682_v51 = vunpack.c.l.bf16 %v3570_v34  ;;  %v1270_v34 = vadd.f32 %v1262_v45, %v1206_v63  ;;  %v1210_v45 = vmul.f32 %v4620_v4, %v5716_v10 }
 0x1a7   : > { %v4696_v14 = vunpack.c.h.bf16 %v3574_v21  ;;  %v4712_v37 = vunpack.c.l.bf16 %v3574_v21  ;;  %v1267_v21 = vmul.f32 %v4643_v29, %v4458_v38  ;;  %v1272_v38 = vadd.f32 %v1264_v17, %v1208_v1 }
 0x1a8   : > { %v1334_v63 = vadd.f32 %v1326_v47, %v1270_v34  ;;  %v1328_v47 = vmul.f32 %v4682_v51, %v4602_v2  ;;  %v1274_v22 = vadd.f32 %v1266_v54, %v1210_v45 }
 0x1a9   : > { %1761 = vperm.xlu1 %3752, %v4494_v20   ;;  %v1324_v16 = vpop.permute.xlu1 %1323  ;;  %v4692_v19 = vpop.permute.xlu0 %1568 }
 0x1aa   : > { %5714 = vst [vmem:[#allocation28_spill] sm:$0xff] %v4692_v19  ;;  %3767 = vset.pattern.permute.xlu0 %v5578_v27  ;;  %v1327_v19 = vmul.f32 %v4649_v24, %v4504_v60  ;;  %v1329_v60 = vmul.f32 %v4685_v33, %v4616_v39  ;;  %v1269_v27 = vmul.f32 %v4647_v42, %v4485_v62 }
 0x1ab   : > { %2259 = vperm.xlu0 %3767, %v4490_v44   ;;  %v1330_v62 = vmul.f32 %v4663_v48, %v4520_v23 }
 0x1ac   : > { %v1335_v39 = vadd.f32 %v1327_v19, %v1271_v36  ;;  %v1337_v9 = vadd.f32 %v1329_v60, %v1273_v31  ;;  %v1331_v36 = vmul.f32 %v4689_v18, %v1316_v11  ;;  %v3575_v19 = vld [vmem:[%s4098_s20 + $0x18] sm:$0xff]   ;;  %v1268_v11 = vmul.f32 %v4676_v35, %v4590_v12 }
 0x1ad   : > { %1769 = vperm.xlu1 %3752, %v4513_v40   ;;  %v4721_v52 = vpop.permute.xlu0 %1576  ;;  %v4757_v45 = vunpack.c.h.bf16 %v3575_v19  ;;  %v1332_v12 = vmul.f32 %v4678_v46, %v4530_v3  ;;  %v4764_v31 = vunpack.c.l.bf16 %v3575_v19  ;;  %v5721_v3 = vld [vmem:[#allocation5_spill] sm:$0xff] }
 0x1ae   : > { %5717 = vst [vmem:[#allocation17_spill] sm:$0xff] %v4721_v52  ;;  %v1364_v10 = vpop.permute.xlu1 %1363  ;;  %v1398_v52 = vadd.f32 %v1390_v15, %v1334_v63  ;;  %v1336_v63 = vadd.f32 %v1328_v47, %v1272_v38  ;;  %v1401_v23 = vadd.f32 %v1393_v25, %v1337_v9  ;;  %v1276_v47 = vadd.f32 %v1268_v11, %v1212_v55  ;;  %v5720_v25 = vld [vmem:[#allocation3_spill] sm:$0xff] }
 0x1af   : > { %v1391_v34 = vmul.f32 %v4700_v32, %v1364_v10  ;;  %2279 = vperm.xlu0 %3767, %v4533_v8   ;;  %v1275_v10 = vadd.f32 %v1267_v21, %v1211_v57  ;;  %v1213_v32 = vmul.f32 %v4645_v28, %v4566_v59  ;;  %v1395_v59 = vmul.f32 %v4696_v14, %v4556_v43 }
 0x1b0   : > { %v1333_v57 = vmul.f32 %v4698_v56, %v1324_v16  ;;  %v1338_v43 = vadd.f32 %v1330_v62, %v1274_v22  ;;  %v5590_v16 = vmov 24   ;;  %v1397_v9 = vmul.f32 %v4757_v45, %v5721_v3 }
 0x1b1   : > { %v1399_v2 = vadd.f32 %v1391_v34, %v1335_v39  ;;  %3753 = vset.pattern.permute.xlu1 %v5719_v61  ;;  %v1339_v1 = vadd.f32 %v1331_v36, %v1275_v10  ;;  %v1277_v54 = vadd.f32 %v1269_v27, %v1213_v32  ;;  %v1340_v55 = vadd.f32 %v1332_v12, %v1276_v47 }
 0x1b2   : > { %1809 = vperm.xlu1 %3753, %v4490_v44   ;;  %v1368_v17 = vpop.permute.xlu1 %1367  ;;  %v4749_v6 = vpop.permute.xlu0 %1616  ;;  %v5586_v47 = vmov 17   ;;  %v5584_v3 = vmov 25  }
 0x1b3   : > { %v1406_v15 = vpack.c.bf16 %v1399_v2, %v1398_v52  ;;  %v1392_v60 = vmul.f32 %v4710_v41, %v1368_v17  ;;  %2271 = vperm.xlu0 %3767, %v4523_v0   ;;  %v1403_v32 = vadd.f32 %v1395_v59, %v1339_v1  ;;  %v1341_v27 = vadd.f32 %v1333_v57, %v1277_v54 }
 0x1b4   : > { %v5588_v59 = vmov 8  }
 0x1b5   : > { %1411 = vst.msk [vmem:[#allocation2] sm:$0xff] %vm1410_vm3, %v1406_v15  ;;  %v1400_v21 = vadd.f32 %v1392_v60, %v1336_v63  ;;  %v1405_v22 = vadd.f32 %v1397_v9, %v1341_v27  ;;  %v5722_v15 = vld [vmem:[#allocation8_spill] sm:$0xff] }
 0x1b6   : > { %1817 = vperm.xlu1 %3753, %v4509_v13   ;;  %v1376_v52 = vpop.permute.xlu1 %1375  ;;  %v4766_v39 = vpop.permute.xlu0 %1628 }
 0x1b7   : > { %v1407_v34 = vpack.c.bf16 %v1401_v23, %v1400_v21  ;;  %v1394_v38 = vmul.f32 %v4712_v37, %v1376_v52  ;;  %3769 = vset.pattern.permute.xlu0 %v5590_v16  ;;  %v5723_v23 = vmov 32  }
 0x1b8   : > { %2070 = vperm.xlu0 %3769, %v5720_v25  }
 0x1b9   : > { %1412 = vst.msk [vmem:[#allocation2 + $0x8] sm:$0xff] %vm1410_vm3, %v1407_v34  ;;  %v1402_v36 = vadd.f32 %v1394_v38, %v1338_v43  ;;  %v5727_v34 = vmov 6  }
 0x1ba   : > { %1821 = vperm.xlu1 %3753, %v4523_v0   ;;  %v1384_v19 = vpop.permute.xlu1 %1383  ;;  %v4776_v10 = vpop.permute.xlu0 %1636 }
 0x1bb   : > { %v1408_v2 = vpack.c.bf16 %v1403_v32, %v1402_v36  ;;  %v1396_v61 = vmul.f32 %v4764_v31, %v1384_v19 }
 0x1bc   : > { %2082 = vperm.xlu0 %3769, %v4494_v20  }
 0x1bd   : > { %1413 = vst.msk [vmem:[#allocation2 + $0x10] sm:$0xff] %vm1410_vm3, %v1408_v2  ;;  %v1404_v62 = vadd.f32 %v1396_v61, %v1340_v55  ;;  %v5582_v2 = vmov 33  }
 0x1be   : > { %1829 = vperm.xlu1 %3753, %v4533_v8   ;;  %v4783_v63 = vpop.permute.xlu0 %1644 }
 0x1bf   : > { %v1409_v17 = vpack.c.bf16 %v1405_v22, %v1404_v62  ;;  %v1433_v11 = vpop.permute.xlu1 %1432  ;;  %v5732_v62 = vmov 15  }
 0x1c0   : > { %2090 = vperm.xlu0 %3769, %v4513_v40  }
 0x1c1   : > { %1414 = vst.msk [vmem:[#allocation2 + $0x18] sm:$0xff] %vm1410_vm3, %v1409_v17 }
 0x1c2   : > { %1837 = vperm.xlu1 %3753, %v5722_v15  }
 0x1c3   : > { %v4786_v60 = vpop.permute.xlu1 %1440  ;;  %v4792_v57 = vpop.permute.xlu0 %1693 }
 0x1c4   : > { %3772 = vset.pattern.permute.xlu0 %v5588_v59  ;;  %5724 = vst [vmem:[#allocation20_spill] sm:$0xff] %v4792_v57  ;;  %v5736_v59 = vld [vmem:[#allocation16_spill] sm:$0xff]  ;;  %v5594_v57 = vmov 26  }
 0x1c5   : > { %2460 = vperm.xlu0 %3772, %v4490_v44   ;;  %v1463_v16 = vmul.f32 %v5736_v59, %v1433_v11  ;;  %v5743_v59 = vld [vmem:[#allocation26_spill] sm:$0xff] }
 0x1c6   : > { %3756 = vset.pattern.permute.xlu1 %v5723_v23 }
 0x1c7   : > { %1877 = vperm.xlu1 %3756, %v5720_v25   ;;  %v1445_v1 = vpop.permute.xlu1 %1444  ;;  %v4799_v54 = vpop.permute.xlu0 %1705 }
 0x1c8   : > { %5725 = vst [vmem:[#allocation5_spill] sm:$0xff] %v4799_v54  ;;  %v1466_v11 = vmul.f32 %v4637_v50, %v1445_v1 }
 0x1c9   : > { %2480 = vperm.xlu0 %3772, %v4533_v8  }
 0x1cb   : > { %1881 = vperm.xlu1 %3756, %v4509_v13   ;;  %v4796_v21 = vpop.permute.xlu1 %1452  ;;  %v4806_v52 = vpop.permute.xlu0 %1713 }
 0x1cc   : > { %5726 = vst [vmem:[#allocation30_spill] sm:$0xff] %v4806_v52  ;;  %v5738_v52 = vld [vmem:[#allocation14_spill] sm:$0xff] }
 0x1cd   : > { %2468 = vperm.xlu0 %3772, %v4509_v13  }
 0x1cf   : > { %1889 = vperm.xlu1 %3756, %v4494_v20   ;;  %v4802_v12 = vpop.permute.xlu1 %1460 }
 0x1d0   : > { %v4812_v32 = vpop.permute.xlu0 %1745 }
 0x1d1   : > { %2488 = vperm.xlu0 %3772, %v5722_v15   ;;  %5728 = vst [vmem:[#allocation31_spill] sm:$0xff] %v4812_v32 }
 0x1d3   : > { %1897 = vperm.xlu1 %3756, %v4513_v40  }
 0x1d4   : > { %v1493_v43 = vpop.permute.xlu1 %1492  ;;  %v4818_v9 = vpop.permute.xlu0 %1757 }
 0x1d5   : > { %3776 = vset.pattern.permute.xlu0 %v5586_v47  ;;  %5729 = vst [vmem:[#allocation32_spill] sm:$0xff] %v4818_v9  ;;  %v5740_v9 = vld [vmem:[#allocation25_spill] sm:$0xff] }
 0x1d6   : > { %2520 = vperm.xlu0 %3776, %v5720_v25  }
 0x1d7   : > { %3757 = vset.pattern.permute.xlu1 %v5727_v34 }
 0x1d8   : > { %1946 = vperm.xlu1 %3757, %v4490_v44   ;;  %v1497_v38 = vpop.permute.xlu1 %1496  ;;  %v4825_v55 = vpop.permute.xlu0 %1765 }
 0x1d9   : > { %5730 = vst [vmem:[#allocation33_spill] sm:$0xff] %v4825_v55  ;;  %v5739_v55 = vld [vmem:[#allocation13_spill] sm:$0xff] }
 0x1da   : > { %2528 = vperm.xlu0 %3776, %v4523_v0   ;;  %v1520_v54 = vmul.f32 %v5739_v55, %v1493_v43 }
 0x1dc   : > { %1954 = vperm.xlu1 %3757, %v4509_v13   ;;  %v1505_v27 = vpop.permute.xlu1 %1504  ;;  %v4830_v22 = vpop.permute.xlu0 %1773 }
 0x1dd   : > { %5731 = vst [vmem:[#allocation34_spill] sm:$0xff] %v4830_v22  ;;  %v5737_v22 = vld [vmem:[#allocation7_spill] sm:$0xff] }
 0x1de   : > { %3778 = vset.pattern.permute.xlu0 %v5584_v3  ;;  %v5735_v3 = vld [vmem:[#allocation22_spill] sm:$0xff] }
 0x1df   : > { %2327 = vperm.xlu0 %3778, %v5720_v25  }
 0x1e0   : > { %1958 = vperm.xlu1 %3757, %v4523_v0   ;;  %v4821_v36 = vpop.permute.xlu1 %1512 }
 0x1e1   : > { %v4837_v34 = vpop.permute.xlu0 %1813 }
 0x1e2   : > { %5733 = vst [vmem:[#allocation35_spill] sm:$0xff] %v4837_v34 }
 0x1e3   : > { %2335 = vperm.xlu0 %3778, %v4523_v0  }
 0x1e4   : > { %1966 = vperm.xlu1 %3757, %v4533_v8  }
 0x1e5   : > { %v1553_v19 = vpop.permute.xlu1 %1552  ;;  %v4854_v55 = vpop.permute.xlu0 %1825 }
 0x1e6   : > { %v1583_v32 = vmul.f32 %v5740_v9, %v1553_v19  ;;  %v5745_v19 = vld [vmem:[#allocation6_spill] sm:$0xff]  ;;  %v1647_v9 = vmul.f32 %v4680_v5, %v4749_v6 }
 0x1e7   : > { %3781 = vset.pattern.permute.xlu0 %v5582_v2  ;;  %v5734_v2 = vld [vmem:[#allocation9_spill] sm:$0xff] }
 0x1e8   : > { %1974 = vperm.xlu1 %3757, %v5722_v15   ;;  %2130 = vperm.xlu0 %3781, %v4490_v44   ;;  %v1519_v47 = vmul.f32 %v5735_v3, %v5734_v2  ;;  %v5741_v15 = vld [vmem:[#allocation10_spill] sm:$0xff]  ;;  %v5742_v2 = vld [vmem:[#allocation21_spill] sm:$0xff]  ;;  %5744 = vst [vmem:[#allocation9_spill] sm:$0xff] %v4854_v55 }
 0x1e9   : > { %v1561_v61 = vpop.permute.xlu1 %1560  ;;  %v1522_v3 = vmul.f32 %v5742_v2, %v5741_v15  ;;  %v5747_v2 = vld [vmem:[#allocation12_spill] sm:$0xff] }
 0x1ea   : > { %v1527_v34 = vadd.f32 %v1519_v47, %v1463_v16  ;;  %v5746_v47 = vld [vmem:[#allocation11_spill] sm:$0xff]  ;;  %v1524_v1 = vmul.f32 %v4643_v29, %v5747_v2  ;;  %v1585_v2 = vmul.f32 %v4682_v51, %v1561_v61 }
 0x1eb   : > { %v1469_v15 = vmul.f32 %v4628_v7, %v5746_v47  ;;  %v5749_v47 = vld [vmem:[#allocation29_spill] sm:$0xff]  ;;  %v5750_v7 = vld [vmem:[#allocation28_spill] sm:$0xff] }
 0x1ec   : > { %3760 = vset.pattern.permute.xlu1 %v5732_v62  ;;  %2150 = vperm.xlu0 %3781, %v4533_v8   ;;  %v1464_v62 = vmul.f32 %v5738_v52, %v5737_v22  ;;  %v1584_v22 = vmul.f32 %v4649_v24, %v5743_v59  ;;  %v1521_v52 = vmul.f32 %v4659_v26, %v1497_v38 }
 0x1ed   : > { %2006 = vperm.xlu1 %3760, %v5720_v25   ;;  %v1565_v17 = vpop.permute.xlu1 %1564  ;;  %v1591_v16 = vadd.f32 %v1583_v32, %v1527_v34  ;;  %v1468_v38 = vmul.f32 %v4641_v49, %v4796_v21  ;;  %v1523_v32 = vmul.f32 %v4661_v30, %v1505_v27  ;;  %v1587_v29 = vmul.f32 %v4663_v48, %v5750_v7 }
 0x1ee   : > { %v1528_v43 = vadd.f32 %v1520_v54, %v1464_v62  ;;  %v1586_v59 = vmul.f32 %v4685_v33, %v1565_v17  ;;  %v1465_v54 = vmul.f32 %v4632_v58, %v4786_v60  ;;  %v5748_v62 = vld [vmem:[#allocation15_spill] sm:$0xff]  ;;  %v1650_v60 = vmul.f32 %v4687_v53, %v4766_v39 }
 0x1ef   : > { %v1526_v6 = vmul.f32 %v4647_v42, %v5748_v62  ;;  %v1655_v62 = vadd.f32 %v1647_v9, %v1591_v16  ;;  %v5751_v30 = vmov 24   ;;  %v1532_v61 = vadd.f32 %v1524_v1, %v1468_v38 }
 0x1f0   : > { %2142 = vperm.xlu0 %3781, %v4523_v0   ;;  %v1592_v17 = vadd.f32 %v1584_v22, %v1528_v43  ;;  %v1529_v33 = vadd.f32 %v1521_v52, %v1465_v54  ;;  %v1470_v7 = vmul.f32 %v4645_v28, %v4802_v12  ;;  %v1525_v9 = vmul.f32 %v4676_v35, %v4821_v36  ;;  %v5752_v54 = vld [vmem:[#allocation17_spill] sm:$0xff] }
 0x1f1   : > { %2010 = vperm.xlu1 %3760, %v4509_v13   ;;  %v1573_v23 = vpop.permute.xlu1 %1572  ;;  %v1652_v22 = vmul.f32 %v4696_v14, %v4776_v10  ;;  %v5605_v12 = vmov 34  }
 0x1f2   : > { %v1588_v21 = vmul.f32 %v4689_v18, %v1573_v23  ;;  %v1593_v23 = vadd.f32 %v1585_v2, %v1529_v33  ;;  %v1589_v33 = vmul.f32 %v4678_v46, %v5752_v54  ;;  %v1533_v10 = vadd.f32 %v1525_v9, %v1469_v15 }
 0x1f4   : > { %3784 = vset.pattern.permute.xlu0 %v5594_v57  ;;  %v1467_v57 = vmul.f32 %v4620_v4, %v5745_v19  ;;  %v1530_v19 = vadd.f32 %v1522_v3, %v1466_v11  ;;  %v4883_v3 = vpop.permute.xlu0 %1833  ;;  %v1596_v16 = vadd.f32 %v1588_v21, %v1532_v61 }
 0x1f5   : > { %2018 = vperm.xlu1 %3760, %v4494_v20   ;;  %v1581_v25 = vpop.permute.xlu1 %1580  ;;  %2580 = vperm.xlu0 %3784, %v4490_v44  }
 0x1f6   : > { %v1594_v42 = vadd.f32 %v1586_v59, %v1530_v19  ;;  %v1531_v52 = vadd.f32 %v1523_v32, %v1467_v57  ;;  %v1590_v1 = vmul.f32 %v4698_v56, %v1581_v25  ;;  %v1534_v59 = vadd.f32 %v1526_v6, %v1470_v7 }
 0x1f7   : > { %v1660_v19 = vadd.f32 %v1652_v22, %v1596_v16 }
 0x1f8   : > { %v1658_v43 = vadd.f32 %v1650_v60, %v1594_v42  ;;  %v1595_v38 = vadd.f32 %v1587_v29, %v1531_v52  ;;  %v4902_v32 = vpop.permute.xlu0 %1873  ;;  %v1598_v6 = vadd.f32 %v1590_v1, %v1534_v59  ;;  %v1597_v60 = vadd.f32 %v1589_v33, %v1533_v10  ;;  %v5754_v52 = vld [vmem:[#allocation8_spill] sm:$0xff] }
 0x1f9   : > { %2026 = vperm.xlu1 %3760, %v4513_v40   ;;  %2600 = vperm.xlu0 %3784, %v4533_v8  }
 0x1fa   : > { %v1621_v34 = vpop.permute.xlu1 %1620 }
 0x1fb   : > { %v1648_v55 = vmul.f32 %v5749_v47, %v1621_v34  ;;  %v1654_v34 = vmul.f32 %v4757_v45, %v4783_v63  ;;  %v5753_v63 = vmov 7  }
 0x1fd   : > { %v1656_v27 = vadd.f32 %v1648_v55, %v1592_v17  ;;  %3761 = vset.pattern.permute.xlu1 %v5751_v30  ;;  %2592 = vperm.xlu0 %3784, %v4523_v0  }
 0x1fe   : > { %2066 = vperm.xlu1 %3761, %v4490_v44   ;;  %v1625_v39 = vpop.permute.xlu1 %1624 }
 0x1ff   : > { %v1663_v11 = vpack.c.bf16 %v1656_v27, %v1655_v62  ;;  %v1649_v55 = vmul.f32 %v4710_v41, %v1625_v39  ;;  %v1662_v62 = vadd.f32 %v1654_v34, %v1598_v6  ;;  %v4911_v27 = vpop.permute.xlu0 %1885 }
 0x201   : > { %1668 = vst.msk [vmem:[#allocation2] sm:$0xff] %vm1667_vm4, %v1663_v11  ;;  %v1657_v57 = vadd.f32 %v1649_v55, %v1593_v23  ;;  %3787 = vset.pattern.permute.xlu0 %v5605_v12  ;;  %v5604_v23 = vmov 35   ;;  %v5755_v55 = vld [vmem:[#allocation3_spill] sm:$0xff] }
 0x202   : > { %2074 = vperm.xlu1 %3761, %v4509_v13   ;;  %v1633_v36 = vpop.permute.xlu1 %1632  ;;  %2387 = vperm.xlu0 %3787, %v4490_v44  }
 0x203   : > { %v1664_v42 = vpack.c.bf16 %v1658_v43, %v1657_v57  ;;  %v1651_v25 = vmul.f32 %v4712_v37, %v1633_v36  ;;  %v4921_v9 = vpop.permute.xlu0 %1893  ;;  %v5756_v43 = vmov 16  }
 0x205   : > { %1669 = vst.msk [vmem:[#allocation2 + $0x8] sm:$0xff] %vm1667_vm4, %v1664_v42  ;;  %v1659_v2 = vadd.f32 %v1651_v25, %v1595_v38 }
 0x206   : > { %2078 = vperm.xlu1 %3761, %v4523_v0   ;;  %v1641_v17 = vpop.permute.xlu1 %1640  ;;  %2407 = vperm.xlu0 %3787, %v4533_v8  }
 0x207   : > { %v1665_v15 = vpack.c.bf16 %v1660_v19, %v1659_v2  ;;  %v1653_v29 = vmul.f32 %v4764_v31, %v1641_v17  ;;  %v4926_v22 = vpop.permute.xlu0 %1901  ;;  %v5763_v17 = vmov 8  }
 0x209   : > { %1670 = vst.msk [vmem:[#allocation2 + $0x10] sm:$0xff] %vm1667_vm4, %v1665_v15  ;;  %v1661_v21 = vadd.f32 %v1653_v29, %v1597_v60  ;;  %v5764_v60 = vld [vmem:[#allocation20_spill] sm:$0xff]  ;;  %v5765_v29 = vld [vmem:[#allocation14_spill] sm:$0xff] }
 0x20a   : > { %3762 = vset.pattern.permute.xlu1 %v5753_v63  ;;  %2395 = vperm.xlu0 %3787, %v4509_v13  }
 0x20b   : > { %v1666_v61 = vpack.c.bf16 %v1662_v62, %v1661_v21  ;;  %2203 = vperm.xlu1 %3762, %v4490_v44   ;;  %v1690_v7 = vpop.permute.xlu1 %1689  ;;  %v4933_v57 = vpop.permute.xlu0 %1950  ;;  %v1721_v62 = vmul.f32 %v5765_v29, %v5764_v60  ;;  %v5767_v21 = vld [vmem:[#allocation22_spill] sm:$0xff] }
 0x20c   : > { %5757 = vst [vmem:[#allocation7_spill] sm:$0xff] %v4933_v57 }
 0x20d   : > { %1671 = vst.msk [vmem:[#allocation2 + $0x18] sm:$0xff] %vm1667_vm4, %v1666_v61  ;;  %v5768_v61 = vld [vmem:[#allocation16_spill] sm:$0xff] }
 0x20e   : > { %2415 = vperm.xlu0 %3787, %v5754_v52  }
 0x20f   : > { %2219 = vperm.xlu1 %3762, %v4494_v20   ;;  %v4919_v39 = vpop.permute.xlu1 %1697  ;;  %v4939_v54 = vpop.permute.xlu0 %1962 }
 0x210   : > { %5758 = vst [vmem:[#allocation10_spill] sm:$0xff] %v4939_v54 }
 0x212   : > { %3790 = vset.pattern.permute.xlu0 %v5604_v23  ;;  %v5769_v23 = vld [vmem:[#allocation13_spill] sm:$0xff] }
 0x213   : > { %2223 = vperm.xlu1 %3762, %v4533_v8   ;;  %v1702_v11 = vpop.permute.xlu1 %1701  ;;  %2648 = vperm.xlu0 %3790, %v5755_v55   ;;  %v4943_v36 = vpop.permute.xlu0 %1970 }
 0x214   : > { %5759 = vst [vmem:[#allocation26_spill] sm:$0xff] %v4943_v36 }
 0x217   : > { %3764 = vset.pattern.permute.xlu1 %v5756_v43  ;;  %v1710_v16 = vpop.permute.xlu1 %1709  ;;  %2652 = vperm.xlu0 %3790, %v4509_v13   ;;  %v4946_v38 = vpop.permute.xlu0 %2002 }
 0x218   : > { %2263 = vperm.xlu1 %3764, %v5755_v55   ;;  %5760 = vst [vmem:[#allocation6_spill] sm:$0xff] %v4946_v38  ;;  %v5771_v38 = vld [vmem:[#allocation25_spill] sm:$0xff] }
 0x21b   : > { %v4931_v1 = vpop.permute.xlu1 %1717  ;;  %2668 = vperm.xlu0 %3790, %v4513_v40   ;;  %v4950_v34 = vpop.permute.xlu0 %2014 }
 0x21c   : > { %2275 = vperm.xlu1 %3764, %v4494_v20   ;;  %5761 = vst [vmem:[#allocation11_spill] sm:$0xff] %v4950_v34  ;;  %v5772_v34 = vld [vmem:[#allocation32_spill] sm:$0xff] }
 0x21f   : > { %v4954_v6 = vpop.permute.xlu0 %2022 }
 0x220   : > { %3765 = vset.pattern.permute.xlu1 %v5751_v30  ;;  %v1750_v59 = vpop.permute.xlu1 %1749  ;;  %5762 = vst [vmem:[#allocation12_spill] sm:$0xff] %v4954_v6 }
 0x221   : > { %2086 = vperm.xlu1 %3765, %v4533_v8   ;;  %v1777_v12 = vmul.f32 %v5769_v23, %v1750_v59  ;;  %v5775_v23 = vmov 17   ;;  %v5776_v59 = vld [vmem:[#allocation5_spill] sm:$0xff] }
 0x223   : > { %v4964_v54 = vpop.permute.xlu0 %2030 }
 0x224   : > { %v1754_v33 = vpop.permute.xlu1 %1753  ;;  %5770 = vst [vmem:[#allocation15_spill] sm:$0xff] %v4964_v54 }
 0x225   : > { %3766 = vset.pattern.permute.xlu1 %v5753_v63 }
 0x226   : > { %2215 = vperm.xlu1 %3766, %v4523_v0  }
 0x228   : > { %v1762_v10 = vpop.permute.xlu1 %1761 }
 0x22a   : > { %2227 = vperm.xlu1 %3766, %v4513_v40  }
 0x22c   : > { %v1770_v42 = vpop.permute.xlu1 %1769 }
 0x22e   : > { %3768 = vset.pattern.permute.xlu1 %v5756_v43  ;;  %v1720_v43 = vmul.f32 %v5768_v61, %v1690_v7  ;;  %v1778_v7 = vmul.f32 %v4659_v26, %v1754_v33  ;;  %v1724_v61 = vmul.f32 %v4620_v4, %v5776_v59  ;;  %v1722_v26 = vmul.f32 %v4632_v58, %v4919_v39  ;;  %v5784_v59 = vld [vmem:[#allocation24_spill] sm:$0xff] }
 0x22f   : > { %2267 = vperm.xlu1 %3768, %v4509_v13   ;;  %v5766_v13 = vld [vmem:[#allocation31_spill] sm:$0xff]  ;;  %v1907_v58 = vmul.f32 %v4687_v53, %v4911_v27 }
 0x230   : > { %v1776_v63 = vmul.f32 %v5767_v21, %v5766_v13  ;;  %v1723_v13 = vmul.f32 %v4637_v50, %v1702_v11  ;;  %v1785_v21 = vadd.f32 %v1777_v12, %v1721_v62  ;;  %v1725_v12 = vmul.f32 %v4641_v49, %v1710_v16  ;;  %v5780_v11 = vld [vmem:[#allocation27_spill] sm:$0xff] }
 0x231   : > { %v1810_v25 = vpop.permute.xlu1 %1809  ;;  %v1780_v33 = vmul.f32 %v5780_v11, %v1762_v10  ;;  %v1786_v39 = vadd.f32 %v1778_v7, %v1722_v26  ;;  %v1782_v11 = vmul.f32 %v4676_v35, %v1770_v42 }
 0x232   : > { %v1840_v57 = vmul.f32 %v5771_v38, %v1810_v25  ;;  %v1784_v29 = vadd.f32 %v1776_v63, %v1720_v43  ;;  %v1904_v38 = vmul.f32 %v4680_v5, %v4902_v32  ;;  %v5783_v43 = vld [vmem:[#allocation34_spill] sm:$0xff] }
 0x233   : > { %2283 = vperm.xlu1 %3768, %v4513_v40   ;;  %v5774_v40 = vld [vmem:[#allocation35_spill] sm:$0xff] }
 0x234   : > { %v1841_v60 = vmul.f32 %v4649_v24, %v5774_v40  ;;  %v1848_v25 = vadd.f32 %v1840_v57, %v1784_v29  ;;  %v5778_v40 = vld [vmem:[#allocation33_spill] sm:$0xff]  ;;  %v5779_v24 = vld [vmem:[#allocation23_spill] sm:$0xff] }
 0x235   : > { %v1818_v19 = vpop.permute.xlu1 %1817  ;;  %v1781_v50 = vmul.f32 %v5779_v24, %v5778_v40  ;;  %v5782_v29 = vld [vmem:[#allocation19_spill] sm:$0xff] }
 0x236   : > { %v1842_v5 = vmul.f32 %v4682_v51, %v1818_v19  ;;  %v1849_v32 = vadd.f32 %v1841_v60, %v1785_v21  ;;  %v1912_v16 = vadd.f32 %v1904_v38, %v1848_v25  ;;  %v5785_v51 = vld [vmem:[#allocation9_spill] sm:$0xff]  ;;  %v1727_v21 = vmul.f32 %v4645_v28, %v4931_v1 }
 0x237   : > { %2287 = vperm.xlu1 %3768, %v5754_v52   ;;  %v1789_v19 = vadd.f32 %v1781_v50, %v1725_v12  ;;  %v1788_v60 = vadd.f32 %v1780_v33, %v1724_v61  ;;  %v1846_v1 = vmul.f32 %v4678_v46, %v4883_v3 }
 0x238   : > { %v1850_v53 = vadd.f32 %v1842_v5, %v1786_v39  ;;  %v5028_v5 = vld [vmem:[%s3915_s30] sm:$0xff] }
 0x239   : > { %v1822_v2 = vpop.permute.xlu1 %1821 }
 0x23b   : > { %3770 = vset.pattern.permute.xlu1 %v5763_v17 }
 0x23c   : > { %2464 = vperm.xlu1 %3770, %v5755_v55   ;;  %v5773_v55 = vld [vmem:[#allocation21_spill] sm:$0xff] }
 0x23d   : > { %v1830_v15 = vpop.permute.xlu1 %1829  ;;  %v1779_v36 = vmul.f32 %v5773_v55, %v5772_v34  ;;  %v5777_v34 = vld [vmem:[#allocation18_spill] sm:$0xff]  ;;  %v4980_v55 = vpop.permute.xlu0 %2207 }
 0x23e   : > { %v1843_v54 = vmul.f32 %v5777_v34, %v1822_v2  ;;  %v5781_v2 = vld [vmem:[#allocation30_spill] sm:$0xff]  ;;  %v1783_v34 = vmul.f32 %v5784_v59, %v5783_v43  ;;  %v1845_v10 = vmul.f32 %v4689_v18, %v1830_v15 }
 0x23f   : > { %v1787_v63 = vadd.f32 %v1779_v36, %v1723_v13 }
 0x240   : > { %2476 = vperm.xlu1 %3770, %v4494_v20   ;;  %v1853_v7 = vadd.f32 %v1845_v10, %v1789_v19  ;;  %v1791_v42 = vadd.f32 %v1783_v34, %v1727_v21  ;;  %v5070_v10 = vld [vmem:[%s4080_s17 + $0x18] sm:$0xff]  }
 0x241   : > { %v1838_v6 = vpop.permute.xlu1 %1837  ;;  %v1851_v40 = vadd.f32 %v1843_v54, %v1787_v63  ;;  %v5004_v27 = vpop.permute.xlu0 %2211 }
 0x243   : > { %v1915_v15 = vadd.f32 %v1907_v58, %v1851_v40  ;;  %v5787_v58 = vld [vmem:[#allocation4_spill] sm:$0xff] }
 0x244   : > { %3771 = vset.pattern.permute.xlu1 %v5775_v23 }
 0x245   : > { %2516 = vperm.xlu1 %3771, %v4490_v44   ;;  %v1726_v44 = vmul.f32 %v5782_v29, %v5781_v2 }
 0x246   : > { %v1878_v62 = vpop.permute.xlu1 %1877 }
 0x247   : > { %v1905_v57 = vmul.f32 %v5749_v47, %v1878_v62  ;;  %v1844_v47 = vmul.f32 %v4663_v48, %v5785_v51  ;;  %v1847_v48 = vmul.f32 %v4698_v56, %v1838_v6  ;;  %v1790_v38 = vadd.f32 %v1782_v11, %v1726_v44  ;;  %v5017_v6 = vpop.permute.xlu0 %2231 }
 0x248   : > { %v5789_v11 = vmov 33  }
 0x249   : > { %v1913_v36 = vadd.f32 %v1905_v57, %v1849_v32  ;;  %2532 = vperm.xlu1 %3771, %v4494_v20   ;;  %v1909_v20 = vmul.f32 %v4696_v14, %v4921_v9  ;;  %v1911_v14 = vmul.f32 %v4757_v45, %v4926_v22  ;;  %v1855_v56 = vadd.f32 %v1847_v48, %v1791_v42  ;;  %v5035_v32 = vld [vmem:[%s3915_s30 + $0x20] sm:$0xff] }
 0x24a   : > { %v1882_v13 = vpop.permute.xlu1 %1881  ;;  %v1854_v12 = vadd.f32 %v1846_v1, %v1790_v38  ;;  %v5786_v22 = vmov 25   ;;  %v5791_v1 = vld [vmem:[#allocation21_spill] sm:$0xff] }
 0x24b   : > { %v1920_v54 = vpack.c.bf16 %v1913_v36, %v1912_v16  ;;  %v1906_v18 = vmul.f32 %v4710_v41, %v1882_v13  ;;  %v1852_v41 = vadd.f32 %v1844_v47, %v1788_v60  ;;  %v1917_v9 = vadd.f32 %v1909_v20, %v1853_v7  ;;  %v5025_v62 = vpop.permute.xlu0 %2259  ;;  %v5788_v47 = vld [vmem:[#allocation26_spill] sm:$0xff]  ;;  %v5103_v7 = vld [vmem:[%s4080_s17 + $0x8] sm:$0xff]  }
 0x24c   : > { %v1919_v33 = vadd.f32 %v1911_v14, %v1855_v56  ;;  %v1983_v19 = vmul.f32 %v5782_v29, %v5788_v47 }
 0x24d   : > { %1925 = vst.msk [vmem:[#allocation2] sm:$0xff] %vm1924_vm5, %v1920_v54  ;;  %v1914_v28 = vadd.f32 %v1906_v18, %v1850_v53  ;;  %2536 = vperm.xlu1 %3771, %v4533_v8   ;;  %v5084_v53 = vld [vmem:[%s3915_s30 + $0x8] sm:$0xff] }
 0x24e   : > { %v1890_v61 = vpop.permute.xlu1 %1889  ;;  %v5090_v18 = vld [vmem:[%s4065_s11 + $0x8] sm:$0xff]  }
 0x24f   : > { %v1921_v25 = vpack.c.bf16 %v1915_v15, %v1914_v28  ;;  %v1908_v50 = vmul.f32 %v4712_v37, %v1890_v61  ;;  %v5040_v57 = vpop.permute.xlu0 %2279  ;;  %v5097_v15 = vunpack.c.h.bf16 %v5090_v18  ;;  %v5790_v28 = vld [vmem:[#allocation11_spill] sm:$0xff]  ;;  %v5110_v61 = vld [vmem:[%s4071_s14] sm:$0xff]  }
 0x250   : > { %v2036_v42 = vmul.f32 %v5791_v1, %v5790_v28  ;;  %v3483_v1 = vunpack.c.h.bf16 %v5110_v61 }
 0x251   : > { %1926 = vst.msk [vmem:[#allocation2 + $0x8] sm:$0xff] %vm1924_vm5, %v1921_v25  ;;  %v1916_v26 = vadd.f32 %v1908_v50, %v1852_v41  ;;  %3773 = vset.pattern.permute.xlu1 %v5751_v30  ;;  %v5114_v25 = vunpack.c.h.bf16 %v5103_v7  ;;  %v5119_v41 = vld [vmem:[%s4065_s11] sm:$0xff]   ;;  %v5613_v50 = vunpack.c.l.bf16 %v5110_v61 }
 0x252   : > { %2094 = vperm.xlu1 %3773, %v5754_v52   ;;  %v1898_v46 = vpop.permute.xlu1 %1897 }
 0x253   : > { %v1922_v3 = vpack.c.bf16 %v1917_v9, %v1916_v26  ;;  %v1910_v37 = vmul.f32 %v4764_v31, %v1898_v46  ;;  %v5043_v44 = vpop.permute.xlu0 %2271  ;;  %v3466_v26 = vunpack.c.l.bf16 %v5119_v41 }
 0x255   : > { %1927 = vst.msk [vmem:[#allocation2 + $0x10] sm:$0xff] %vm1924_vm5, %v1922_v3  ;;  %v1918_v45 = vadd.f32 %v1910_v37, %v1854_v12  ;;  %v2290_v12 = vmul.f32 %v5613_v50, %v5025_v62  ;;  %v5133_v37 = vld [vmem:[%s4071_s14 + $0x10] sm:$0xff]   ;;  %v5222_v50 = vld [vmem:[%s4071_s14 + $0x18] sm:$0xff]  }
 0x256   : > { %3774 = vset.pattern.permute.xlu1 %v5786_v22 }
 0x257   : > { %v1923_v63 = vpack.c.bf16 %v1919_v33, %v1918_v45  ;;  %2323 = vperm.xlu1 %3774, %v5028_v5   ;;  %v5031_v30 = vpop.permute.xlu1 %1946  ;;  %v5052_v39 = vpop.permute.xlu0 %2070 }
 0x259   : > { %1928 = vst.msk [vmem:[#allocation2 + $0x18] sm:$0xff] %vm1924_vm5, %v1923_v63  ;;  %v5608_v63 = vunpack.c.h.bf16 %v5133_v37 }
 0x25b   : > { %2339 = vperm.xlu1 %3774, %v5035_v32   ;;  %v5038_v31 = vpop.permute.xlu1 %1954 }
 0x25f   : > { %2343 = vperm.xlu1 %3774, %v4533_v8   ;;  %v1959_v2 = vpop.permute.xlu1 %1958  ;;  %v5058_v8 = vld [vmem:[%s3915_s30 + $0x10] sm:$0xff] }
 0x260   : > { %v1980_v38 = vmul.f32 %v5097_v15, %v1959_v2 }
 0x262   : > { %v2044_v9 = vadd.f32 %v2036_v42, %v1980_v38 }
 0x263   : > { %3775 = vset.pattern.permute.xlu1 %v5763_v17  ;;  %v5046_v43 = vpop.permute.xlu1 %1966  ;;  %v5061_v17 = vpop.permute.xlu0 %2082 }
 0x264   : > { %2472 = vperm.xlu1 %3775, %v4523_v0   ;;  %v5066_v0 = vld [vmem:[%s3915_s30 + $0x30] sm:$0xff] }
 0x267   : > { %v5049_v34 = vpop.permute.xlu1 %1974  ;;  %v2091_v51 = vpop.permute.xlu0 %2090 }
 0x268   : > { %2484 = vperm.xlu1 %3775, %v5787_v58  }
 0x26b   : > { %v5087_v54 = vpop.permute.xlu0 %2460 }
 0x26c   : > { %3777 = vset.pattern.permute.xlu1 %v5775_v23  ;;  %v5055_v16 = vpop.permute.xlu1 %2006  ;;  %v5075_v23 = vunpack.c.l.bf16 %v5070_v10 }
 0x26d   : > { %2524 = vperm.xlu1 %3777, %v5058_v8  }
 0x26e   : > { %v2103_v60 = vmul.f32 %v5075_v23, %v2091_v51  ;;  %v5147_v51 = vld [vmem:[%s4065_s11 + $0x10] sm:$0xff]  }
 0x26f   : > { %v5609_v62 = vunpack.c.h.bf16 %v5147_v51 }
 0x270   : > { %v5063_v40 = vpop.permute.xlu1 %2010 }
 0x271   : > { %2540 = vperm.xlu1 %3777, %v5066_v0  }
 0x274   : > { %v5072_v36 = vpop.permute.xlu1 %2018 }
 0x275   : > { %2544 = vperm.xlu1 %3777, %v5754_v52  }
 0x278   : > { %v2027_v21 = vpop.permute.xlu1 %2026 }
 0x279   : > { %v2039_v13 = vmul.f32 %v4676_v35, %v2027_v21  ;;  %3779 = vset.pattern.permute.xlu1 %v5789_v11  ;;  %v5100_v35 = vpop.permute.xlu0 %2480  ;;  %v2295_v21 = vmul.f32 %v5608_v63, %v5040_v57  ;;  %v1982_v63 = vmul.f32 %v4641_v49, %v5046_v43 }
 0x27a   : > { %2134 = vperm.xlu1 %3779, %v5084_v53  }
 0x27b   : > { %v2047_v52 = vadd.f32 %v2039_v13, %v1983_v19  ;;  %v5792_v19 = vmov 26  }
 0x27d   : > { %v5092_v20 = vpop.permute.xlu1 %2066  ;;  %v5094_v29 = vadd.f32 %v2103_v60, %v2047_v52  ;;  %v5124_v46 = vpop.permute.xlu0 %2468  ;;  %v3403_v60 = vunpack.c.h.bf16 %v5119_v41 }
 0x27e   : > { %2146 = vperm.xlu1 %3779, %v5035_v32  }
 0x27f   : > { %v2235_v57 = vmul.f32 %v3403_v60, %v4980_v55 }
 0x281   : > { %v5105_v48 = vpop.permute.xlu1 %2074  ;;  %v5142_v2 = vpop.permute.xlu0 %2488 }
 0x282   : > { %3780 = vset.pattern.permute.xlu1 %v5786_v22  ;;  %v5138_v22 = vld [vmem:[%s3915_s30 + $0x38] sm:$0xff] }
 0x283   : > { %2331 = vperm.xlu1 %3780, %v5058_v8  }
 0x285   : > { %v2079_v14 = vpop.permute.xlu1 %2078  ;;  %v5156_v52 = vpop.permute.xlu0 %2520 }
 0x286   : > { %v2100_v56 = vmul.f32 %v5114_v25, %v2079_v14  ;;  %v5611_v14 = vunpack.c.l.bf16 %v5147_v51 }
 0x287   : > { %2347 = vperm.xlu1 %3780, %v5066_v0  }
 0x288   : > { %v5127_v3 = vadd.f32 %v2100_v56, %v2044_v9  ;;  %v5610_v56 = vunpack.c.l.bf16 %v5133_v37 }
 0x28a   : > { %v2204_v33 = vpop.permute.xlu1 %2203 }
 0x28b   : > { %v2234_v45 = vmul.f32 %v3466_v26, %v2204_v33  ;;  %2351 = vperm.xlu1 %3780, %v5138_v22  }
 0x28d   : > { %v5144_v58 = vadd.f32 %v2290_v12, %v2234_v45  ;;  %v5172_v12 = vpop.permute.xlu0 %2528 }
 0x28e   : > { %v2220_v47 = vpop.permute.xlu1 %2219 }
 0x28f   : > { %3782 = vset.pattern.permute.xlu1 %v5792_v19  ;;  %v2238_v55 = vmul.f32 %v5611_v14, %v2220_v47 }
 0x290   : > { %2584 = vperm.xlu1 %3782, %v5084_v53  }
 0x292   : > { %v2224_v13 = vpop.permute.xlu1 %2223 }
 0x293   : > { %v2239_v28 = vmul.f32 %v5609_v62, %v2224_v13  ;;  %v5197_v62 = vpop.permute.xlu0 %2327 }
 0x294   : > { %2596 = vperm.xlu1 %3782, %v5035_v32  }
 0x295   : > { %v5162_v42 = vadd.f32 %v2295_v21, %v2239_v28  ;;  %v5178_v21 = vld [vmem:[%s4080_s17 + $0x10] sm:$0xff]  }
 0x296   : > { %v5793_v28 = vld [vmem:[#allocation12_spill] sm:$0xff] }
 0x297   : > { %v2264_v38 = vpop.permute.xlu1 %2263 }
 0x298   : > { %v2291_v9 = vmul.f32 %v3483_v1, %v2264_v38  ;;  %3783 = vset.pattern.permute.xlu1 %v5789_v11  ;;  %v2038_v11 = vmul.f32 %v5779_v24, %v5793_v28  ;;  %v5187_v38 = vld [vmem:[%s4071_s14 + $0x8] sm:$0xff]  }
 0x299   : > { %2138 = vperm.xlu1 %3783, %v5058_v8   ;;  %v5612_v47 = vunpack.c.h.bf16 %v5187_v38 }
 0x29a   : > { %v5175_v33 = vadd.f32 %v2291_v9, %v2235_v57  ;;  %v5193_v57 = vunpack.c.h.bf16 %v5178_v21 }
 0x29b   : > { %v2276_v45 = vpop.permute.xlu1 %2275  ;;  %v2293_v43 = vmul.f32 %v5612_v47, %v5043_v44  ;;  %v5614_v44 = vunpack.c.l.bf16 %v5187_v38  ;;  %v5219_v47 = vld [vmem:[%s4065_s11 + $0x18] sm:$0xff]  }
 0x29c   : > { %v2294_v13 = vmul.f32 %v5610_v56, %v2276_v45  ;;  %v2046_v56 = vadd.f32 %v2038_v11, %v1982_v63 }
 0x29d   : > { %2154 = vperm.xlu1 %3783, %v5066_v0  }
 0x29e   : > { %v5195_v9 = vadd.f32 %v2294_v13, %v2238_v55  ;;  %v2336_v55 = vpop.permute.xlu0 %2335  ;;  %v5794_v13 = vmov 34  }
 0x29f   : > { %v2357_v14 = vmul.f32 %v5114_v25, %v2336_v55 }
 0x2a0   : > { %v2087_v45 = vpop.permute.xlu1 %2086 }
 0x2a1   : > { %v2102_v24 = vmul.f32 %v5193_v57, %v2087_v45  ;;  %2158 = vperm.xlu1 %3783, %v5138_v22  }
 0x2a3   : > { %v5202_v49 = vadd.f32 %v2102_v24, %v2046_v56  ;;  %v5215_v24 = vunpack.c.l.bf16 %v5090_v18  ;;  %v5615_v18 = vunpack.c.l.bf16 %v5222_v50 }
 0x2a5   : > { %3785 = vset.pattern.permute.xlu1 %v5794_v13  ;;  %v2216_v28 = vpop.permute.xlu1 %2215  ;;  %v2236_v55 = vmul.f32 %v5215_v24, %v5004_v27 }
 0x2a6   : > { %v2237_v63 = vmul.f32 %v5097_v15, %v2216_v28  ;;  %2391 = vperm.xlu1 %3785, %v5084_v53   ;;  %v3415_v28 = vunpack.c.h.bf16 %v5219_v47 }
 0x2a8   : > { %v2301_v11 = vadd.f32 %v2293_v43, %v2237_v63  ;;  %v3414_v43 = vunpack.c.l.bf16 %v5219_v47 }
 0x2a9   : > { %v2228_v45 = vpop.permute.xlu1 %2227 }
 0x2aa   : > { %2403 = vperm.xlu1 %3785, %v5035_v32   ;;  %v5212_v56 = vadd.f32 %v2357_v14, %v2301_v11  ;;  %v2240_v27 = vmul.f32 %v3414_v43, %v2228_v45 }
 0x2ae   : > { %3786 = vset.pattern.permute.xlu1 %v5792_v19  ;;  %v2268_v53 = vpop.permute.xlu1 %2267 }
 0x2af   : > { %v2292_v14 = vmul.f32 %v5614_v44, %v2268_v53  ;;  %2588 = vperm.xlu1 %3786, %v5058_v8   ;;  %v5616_v53 = vunpack.c.h.bf16 %v5222_v50  ;;  %v2241_v8 = vmul.f32 %v3415_v28, %v5017_v6 }
 0x2b1   : > { %v5233_v63 = vadd.f32 %v2292_v14, %v2236_v55 }
 0x2b2   : > { %v2284_v11 = vpop.permute.xlu1 %2283 }
 0x2b3   : > { %v2296_v19 = vmul.f32 %v5615_v18, %v2284_v11  ;;  %2604 = vperm.xlu1 %3786, %v5066_v0   ;;  %v2548_v11 = vmul.f32 %v3483_v1, %v5156_v52  ;;  %v5796_v1 = vunpack.c.l.bf16 %v5110_v61 }
 0x2b5   : > { %v5244_v44 = vadd.f32 %v2296_v19, %v2240_v27  ;;  %v3808_v27 = vld [vmem:[%s3915_s30 + $0x18] sm:$0xff] }
 0x2b6   : > { %v2288_v55 = vpop.permute.xlu1 %2287 }
 0x2b7   : > { %v2297_v14 = vmul.f32 %v5616_v53, %v2288_v55  ;;  %2608 = vperm.xlu1 %3786, %v5138_v22  }
 0x2b9   : > { %v5249_v45 = vadd.f32 %v2297_v14, %v2241_v8  ;;  %v2491_v8 = vmul.f32 %v3466_v26, %v5087_v54  ;;  %v5795_v14 = vmov 35   ;;  %v3809_v54 = vld [vmem:[%s4065_s11 + $0x18] sm:$0xff]   ;;  %v5799_v26 = vunpack.c.h.bf16 %v5147_v51 }
 0x2ba   : > { %v3351_v41 = vunpack.c.h.bf16 %v3809_v54  ;;  %v5307_v54 = vunpack.c.l.bf16 %v5178_v21 }
 0x2bb   : > { %3788 = vset.pattern.permute.xlu1 %v5794_v13  ;;  %v2465_v18 = vpop.permute.xlu1 %2464  ;;  %v2496_v61 = vmul.f32 %v5799_v26, %v5100_v35 }
 0x2bc   : > { %v2492_v6 = vmul.f32 %v3403_v60, %v2465_v18  ;;  %2399 = vperm.xlu1 %3788, %v3808_v27  }
 0x2be   : > { %v5258_v19 = vadd.f32 %v2548_v11, %v2492_v6  ;;  %v5797_v11 = vunpack.c.l.bf16 %v5147_v51  ;;  %v3791_v51 = vld [vmem:[%s5504_s5] sm:$0xff]  }
 0x2bf   : > { %v2477_v55 = vpop.permute.xlu1 %2476  ;;  %3643 = vmatprep.subr.bf16.mxu0 %v3791_v51  ;;  %3657 = vmatprep.subr.bf16.mxu1 %v3791_v51 }
 0x2c0   : > { %2411 = vperm.xlu1 %3788, %v5066_v0   ;;  %v2495_v6 = vmul.f32 %v5797_v11, %v2477_v55  ;;  %v5798_v0 = vunpack.c.l.bf16 %v5133_v37  ;;  %v5801_v55 = vld [vmem:[#allocation15_spill] sm:$0xff]  ;;  %3644 = vmatpush3.bf16.msra.mxu0 %v3791_v51 }
 0x2c1   : > { %3660 = vmatpush3.bf16.msra.mxu1 %v3791_v51 }
 0x2c4   : > { %3789 = vset.pattern.permute.xlu1 %v5795_v14  ;;  %v2517_v52 = vpop.permute.xlu1 %2516 }
 0x2c5   : > { %v2547_v13 = vmul.f32 %v5796_v1, %v2517_v52  ;;  %2644 = vperm.xlu1 %3789, %v5028_v5   ;;  %v3810_v1 = vld [vmem:[%s3915_s30 + $0x28] sm:$0xff] }
 0x2c7   : > { %v5268_v60 = vadd.f32 %v2547_v13, %v2491_v8  ;;  %v5800_v8 = vunpack.c.h.bf16 %v5133_v37  ;;  %v2040_v13 = vmul.f32 %v5784_v59, %v5801_v55 }
 0x2c8   : > { %v2533_v18 = vpop.permute.xlu1 %2532 }
 0x2c9   : > { %v2551_v53 = vmul.f32 %v5798_v0, %v2533_v18  ;;  %2660 = vperm.xlu1 %3789, %v5035_v32   ;;  %v1984_v32 = vmul.f32 %v3351_v41, %v5049_v34  ;;  %v5288_v18 = vunpack.c.h.bf16 %v5070_v10  ;;  %v3792_v10 = vld [vmem:[%s5504_s5 + $0x8] sm:$0xff]  }
 0x2ca   : > { %3645 = vmatprep.subr.bf16.mxu0 %v3792_v10  ;;  %3658 = vmatprep.subr.bf16.mxu1 %v3792_v10 }
 0x2cb   : > { %v5279_v14 = vadd.f32 %v2551_v53, %v2495_v6  ;;  %v2048_v37 = vadd.f32 %v2040_v13, %v1984_v32  ;;  %v3369_v6 = vld [vmem:[%s4080_s17] sm:$0xff]   ;;  %3646 = vmatpush3.bf16.msra.mxu0 %v3792_v10  ;;  %3661 = vmatpush3.bf16.msra.mxu1 %v3792_v10 }
 0x2cc   : > { %v2537_v5 = vpop.permute.xlu1 %2536  ;;  %v5299_v34 = vunpack.c.l.bf16 %v3369_v6  ;;  %v3811_v10 = vld [vmem:[%s4065_s11] sm:$0xff]   ;;  %s368_s11 = scalar_lea.vmem %s5506_s7, %s2931_s27 }
 0x2cd   : > { %v2552_v52 = vmul.f32 %v5800_v8, %v2537_v5  ;;  %2664 = vperm.xlu1 %3789, %v3810_v1   ;;  %v5802_v1 = vunpack.c.h.bf16 %v5187_v38 }
 0x2cf   : > { %v5290_v11 = vadd.f32 %v2552_v52, %v2496_v61  ;;  %v2550_v55 = vmul.f32 %v5802_v1, %v5172_v12  ;;  %v5805_v1 = vld [vmem:[#allocation7_spill] sm:$0xff] }
 0x2d1   : > { %2656 = vperm.xlu1 %3789, %v3808_v27   ;;  %v2095_v35 = vpop.permute.xlu1 %2094 }
 0x2d2   : > { %v2104_v53 = vmul.f32 %v5288_v18, %v2095_v35 }
 0x2d4   : > { %v5297_v59 = vadd.f32 %v2104_v53, %v2048_v37  ;;  %v5803_v53 = vunpack.c.l.bf16 %v5187_v38 }
 0x2d5   : > { %2672 = vperm.xlu1 %3789, %v5138_v22   ;;  %v3793_v22 = vld [vmem:[%s5504_s5 + $0x10] ss:$0 sps:$4 sm:$0x33]  }
 0x2d6   : > { %v2324_v27 = vpop.permute.xlu1 %2323  ;;  %3663 = vmatprep.subr.msk.bf16.mxu0 %vm2744_vm6, %v3793_v22  ;;  %v2746_v5 = vsel %vm2744_vm6, %v3793_v22, 0  ;;  %3664 = vmatprep.subr.msk.bf16.mxu1 %vm2744_vm6, %v3793_v22 }
 0x2d7   : > { %v2354_v0 = vmul.f32 %v5299_v34, %v2324_v27  ;;  %3648 = vmatpush3.bf16.msra.mxu0 %v2746_v5  ;;  %3662 = vmatpush3.bf16.msra.mxu1 %v2746_v5  ;;  %v3338_v27 = vunpack.c.l.bf16 %v3811_v10 }
 0x2d9   : > { %v5310_v41 = vadd.f32 %v2354_v0, %v5144_v58  ;;  %v3812_v0 = vld [vmem:[%s4071_s14] sm:$0xff]  }
 0x2da   : > { %v2340_v26 = vpop.permute.xlu1 %2339  ;;  %v3355_v22 = vunpack.c.h.bf16 %v3812_v0 }
 0x2db   : > { %v2358_v61 = vmul.f32 %v5307_v54, %v2340_v26 }
 0x2dd   : > { %v5317_v21 = vadd.f32 %v2358_v61, %v5195_v9  ;;  %v2493_v9 = vmul.f32 %v5215_v24, %v5124_v46  ;;  %v5337_v61 = vunpack.c.h.bf16 %v3369_v6  ;;  %v2034_v6 = vmul.f32 %v3355_v22, %v5055_v16  ;;  %v3610_v16 = vld [vmem:[%s4098_s20 + $0x10] sm:$0xff]  }
 0x2de   : > { %v2344_v58 = vpop.permute.xlu1 %2343  ;;  %v5810_v22 = vunpack.c.h.bf16 %v5222_v50 }
 0x2df   : > { %v2359_v8 = vmul.f32 %v5193_v57, %v2344_v58  ;;  %v3385_v58 = vld [vmem:[%s4098_s20] sm:$0xff]  }
 0x2e1   : > { %v5321_v52 = vadd.f32 %v2359_v8, %v5162_v42  ;;  %v5804_v8 = vunpack.c.l.bf16 %v5222_v50 }
 0x2e3   : > { %v2473_v13 = vpop.permute.xlu1 %2472 }
 0x2e4   : > { %v2494_v32 = vmul.f32 %v5097_v15, %v2473_v13  ;;  %v3813_v15 = vld [vmem:[%s4071_s14 + $0x10] sm:$0xff]  }
 0x2e5   : > { %v3362_v5 = vunpack.c.l.bf16 %v3813_v15 }
 0x2e6   : > { %v5327_v35 = vadd.f32 %v2550_v55, %v2494_v32  ;;  %v5806_v55 = vld [vmem:[#allocation14_spill] sm:$0xff] }
 0x2e7   : > { %v2485_v51 = vpop.permute.xlu1 %2484  ;;  %v1978_v13 = vmul.f32 %v5806_v55, %v5805_v1  ;;  %v5807_v32 = vld [vmem:[#allocation6_spill] sm:$0xff] }
 0x2e8   : > { %v2497_v46 = vmul.f32 %v3414_v43, %v2485_v51  ;;  %v2097_v43 = vmul.f32 %v5299_v34, %v5092_v20  ;;  %v5358_v51 = vunpack.c.l.bf16 %v3385_v58 }
 0x2ec   : > { %v2525_v37 = vpop.permute.xlu1 %2524 }
 0x2ed   : > { %v2549_v42 = vmul.f32 %v5803_v53, %v2525_v37  ;;  %v5808_v37 = vld [vmem:[#allocation22_spill] sm:$0xff]  ;;  %v1977_v53 = vmul.f32 %v3338_v27, %v5031_v30  ;;  %v2098_v30 = vmul.f32 %v5337_v61, %v5052_v39  ;;  %v2131_v27 = vpop.permute.xlu0 %2130  ;;  %v2101_v39 = vmul.f32 %v5307_v54, %v5061_v17 }
 0x2ee   : > { %v2161_v1 = vmul.f32 %v5358_v51, %v2131_v27 }
 0x2ef   : > { %v5335_v26 = vadd.f32 %v2549_v42, %v2493_v9  ;;  %v2033_v9 = vmul.f32 %v5808_v37, %v5807_v32  ;;  %v2498_v42 = vmul.f32 %v3415_v28, %v5142_v2  ;;  %v2042_v28 = vadd.f32 %v2034_v6, %v1978_v13 }
 0x2f0   : > { %v2541_v12 = vpop.permute.xlu1 %2540  ;;  %v5378_v13 = vunpack.c.l.bf16 %v3610_v16 }
 0x2f1   : > { %v2553_v38 = vmul.f32 %v5804_v8, %v2541_v12  ;;  %v5809_v12 = vld [vmem:[#allocation10_spill] sm:$0xff]  ;;  %v2041_v2 = vadd.f32 %v2033_v9, %v1977_v53  ;;  %v5368_v8 = vunpack.c.h.bf16 %v3385_v58  ;;  %v2106_v50 = vadd.f32 %v2098_v30, %v2042_v28  ;;  %v3609_v28 = vld [vmem:[%s4098_s20 + $0x8] sm:$0xff]  }
 0x2f2   : > { %v1981_v15 = vmul.f32 %v4620_v4, %v5809_v12  ;;  %v5373_v4 = vunpack.c.h.bf16 %v3610_v16  ;;  %v3814_v16 = vld [vmem:[%s4071_s14 + $0x8] sm:$0xff]  }
 0x2f3   : > { %v5354_v10 = vadd.f32 %v2553_v38, %v2497_v46  ;;  %v2037_v46 = vmul.f32 %v3362_v5, %v5072_v36  ;;  %v2105_v38 = vadd.f32 %v2097_v43, %v2041_v2  ;;  %v2151_v36 = vpop.permute.xlu0 %2150 }
 0x2f4   : > { %v2545_v0 = vpop.permute.xlu1 %2544  ;;  %v2166_v58 = vmul.f32 %v5373_v4, %v2151_v36 }
 0x2f5   : > { %v2554_v47 = vmul.f32 %v5810_v22, %v2545_v0  ;;  %v2045_v32 = vadd.f32 %v2037_v46, %v1981_v15  ;;  %v2169_v5 = vadd.f32 %v2161_v1, %v2105_v38  ;;  %v3358_v22 = vunpack.c.l.bf16 %v3814_v16 }
 0x2f6   : > { %v2174_v43 = vadd.f32 %v2166_v58, %v5202_v49  ;;  %v5392_v46 = vunpack.c.l.bf16 %v5103_v7  ;;  %v5395_v38 = vunpack.c.h.bf16 %v3609_v28  ;;  %v5408_v7 = vunpack.c.l.bf16 %v3609_v28 }
 0x2f7   : > { %v5370_v20 = vadd.f32 %v2554_v47, %v2498_v42  ;;  %v2109_v42 = vadd.f32 %v2101_v39, %v2045_v32  ;;  %v2143_v47 = vpop.permute.xlu0 %2142  ;;  %v2035_v49 = vmul.f32 %v3358_v22, %v5063_v40 }
 0x2f8   : > { %v2099_v32 = vmul.f32 %v5392_v46, %v5105_v48 }
 0x2f9   : > { %v2135_v55 = vpop.permute.xlu1 %2134 }
 0x2fa   : > { %v2162_v37 = vmul.f32 %v5368_v8, %v2135_v55  ;;  %v1979_v55 = vmul.f32 %v5215_v24, %v5038_v31 }
 0x2fb   : > { %v5397_v1 = vpop.permute.xlu0 %2580 }
 0x2fc   : > { %v2170_v9 = vadd.f32 %v2162_v37, %v2106_v50  ;;  %v2043_v50 = vadd.f32 %v2035_v49, %v1979_v55  ;;  %v2164_v37 = vmul.f32 %v5395_v38, %v2143_v47 }
 0x2fd   : > { %v2147_v53 = vpop.permute.xlu1 %2146 }
 0x2fe   : > { %v2177_v6 = vpack.c.bf16 %v2170_v9, %v2169_v5  ;;  %v2165_v17 = vmul.f32 %v5378_v13, %v2147_v53  ;;  %v2107_v5 = vadd.f32 %v2099_v32, %v2043_v50  ;;  %v3623_v9 = vld [vmem:[%s4098_s20 + $0x18] sm:$0xff]   ;;  %v2172_v53 = vadd.f32 %v2164_v37, %v5127_v3 }
 0x2ff   : > { %v5406_v36 = vpop.permute.xlu0 %2600  ;;  %v5415_v24 = vunpack.c.l.bf16 %v3623_v9  ;;  %v2355_v3 = vmul.f32 %v5337_v61, %v5197_v62 }
 0x300   : > { %2182 = vst.msk [vmem:[#allocation2] sm:$0xff] %vm2181_vm7, %v2177_v6  ;;  %v2173_v0 = vadd.f32 %v2165_v17, %v2109_v42  ;;  %v5417_v17 = vunpack.c.h.bf16 %v3623_v9 }
 0x301   : > { %v2363_v50 = vadd.f32 %v2355_v3, %v5175_v33 }
 0x302   : > { %v2179_v12 = vpack.c.bf16 %v2174_v43, %v2173_v0  ;;  %v2332_v15 = vpop.permute.xlu1 %2331 }
 0x303   : > { %v5413_v6 = vpop.permute.xlu0 %2592 }
 0x304   : > { %2184 = vst.msk [vmem:[#allocation2 + $0x10] sm:$0xff] %vm2181_vm7, %v2179_v12 }
 0x306   : > { %v5385_v30 = vpop.permute.xlu1 %2347 }
 0x307   : > { %v2388_v12 = vpop.permute.xlu0 %2387 }
 0x308   : > { %v2418_v28 = vmul.f32 %v5358_v51, %v2388_v12 }
 0x30a   : > { %v2352_v27 = vpop.permute.xlu1 %2351 }
 0x30b   : > { %v2408_v49 = vpop.permute.xlu0 %2407 }
 0x30f   : > { %v5388_v2 = vpop.permute.xlu1 %2584 }
 0x313   : > { %v5399_v39 = vpop.permute.xlu1 %2596 }
 0x318   : > { %v2139_v40 = vpop.permute.xlu1 %2138 }
 0x319   : > { %v2163_v58 = vmul.f32 %v5408_v7, %v2139_v40  ;;  %v2426_v40 = vadd.f32 %v2418_v28, %v5310_v41  ;;  %v2356_v41 = vmul.f32 %v5392_v46, %v2332_v15 }
 0x31b   : > { %v2171_v31 = vadd.f32 %v2163_v58, %v2107_v5  ;;  %v2423_v5 = vmul.f32 %v5373_v4, %v2408_v49 }
 0x31c   : > { %v2155_v48 = vpop.permute.xlu1 %2154 }
 0x31d   : > { %v2178_v42 = vpack.c.bf16 %v2172_v53, %v2171_v31  ;;  %v2167_v43 = vmul.f32 %v5415_v24, %v2155_v48  ;;  %v2431_v9 = vadd.f32 %v2423_v5, %v5321_v52 }
 0x31f   : > { %2183 = vst.msk [vmem:[#allocation2 + $0x8] sm:$0xff] %vm2181_vm7, %v2178_v42  ;;  %v2175_v22 = vadd.f32 %v2167_v43, %v5094_v29  ;;  %v2396_v42 = vpop.permute.xlu0 %2395 }
 0x320   : > { %v2159_v0 = vpop.permute.xlu1 %2158  ;;  %v2420_v12 = vmul.f32 %v5408_v7, %v2396_v42 }
 0x321   : > { %v2168_v16 = vmul.f32 %v5417_v17, %v2159_v0  ;;  %v2364_v0 = vadd.f32 %v2356_v41, %v5233_v63  ;;  %v2612_v63 = vmul.f32 %v5337_v61, %v5388_v2 }
 0x323   : > { %v2176_v47 = vadd.f32 %v2168_v16, %v5297_v59  ;;  %v2361_v16 = vmul.f32 %v5288_v18, %v2352_v27  ;;  %v2416_v52 = vpop.permute.xlu0 %2415  ;;  %v2620_v5 = vadd.f32 %v2612_v63, %v5258_v19  ;;  %v2615_v19 = vmul.f32 %v5307_v54, %v5399_v39 }
 0x324   : > { %v2425_v15 = vmul.f32 %v5417_v17, %v2416_v52 }
 0x325   : > { %v2180_v55 = vpack.c.bf16 %v2176_v47, %v2175_v22  ;;  %v2392_v32 = vpop.permute.xlu1 %2391  ;;  %v2428_v47 = vadd.f32 %v2420_v12, %v2364_v0  ;;  %v2369_v28 = vadd.f32 %v2361_v16, %v5249_v45  ;;  %v2623_v41 = vadd.f32 %v2615_v19, %v5279_v14 }
 0x326   : > { %v2419_v37 = vmul.f32 %v5368_v8, %v2392_v32 }
 0x327   : > { %2185 = vst.msk [vmem:[#allocation2 + $0x18] sm:$0xff] %vm2181_vm7, %v2180_v55  ;;  %v2649_v32 = vpop.permute.xlu0 %2648 }
 0x328   : > { %v2427_v62 = vadd.f32 %v2419_v37, %v2363_v50 }
 0x329   : > { %v2404_v29 = vpop.permute.xlu1 %2403 }
 0x32a   : > { %v2434_v58 = vpack.c.bf16 %v2427_v62, %v2426_v40  ;;  %v2422_v59 = vmul.f32 %v5378_v13, %v2404_v29  ;;  %v2433_v40 = vadd.f32 %v2425_v15, %v2369_v28 }
 0x32c   : > { %2439 = vst.msk [vmem:[#allocation2] sm:$0xff] %vm2438_vm8, %v2434_v58  ;;  %v2430_v33 = vadd.f32 %v2422_v59, %v5317_v21  ;;  %v2360_v21 = vmul.f32 %v5075_v23, %v5385_v30  ;;  %v2611_v30 = vmul.f32 %v5299_v34, %v5397_v1  ;;  %v2616_v1 = vmul.f32 %v5193_v57, %v5406_v36 }
 0x32e   : > { %v2436_v53 = vpack.c.bf16 %v2431_v9, %v2430_v33  ;;  %v2589_v31 = vpop.permute.xlu1 %2588  ;;  %v2368_v27 = vadd.f32 %v2360_v21, %v5244_v44  ;;  %v2619_v2 = vadd.f32 %v2611_v30, %v5268_v60  ;;  %v2624_v33 = vadd.f32 %v2616_v1, %v5290_v11 }
 0x32f   : > { %v2613_v9 = vmul.f32 %v5392_v46, %v2589_v31 }
 0x330   : > { %2441 = vst.msk [vmem:[#allocation2 + $0x10] sm:$0xff] %vm2438_vm8, %v2436_v53  ;;  %v2614_v53 = vmul.f32 %v5114_v25, %v5413_v6 }
 0x331   : > { %v2621_v39 = vadd.f32 %v2613_v9, %v5335_v26 }
 0x332   : > { %v2605_v48 = vpop.permute.xlu1 %2604  ;;  %v2622_v25 = vadd.f32 %v2614_v53, %v5327_v35 }
 0x333   : > { %v2617_v46 = vmul.f32 %v5075_v23, %v2605_v48 }
 0x336   : > { %v2609_v43 = vpop.permute.xlu1 %2608 }
 0x337   : > { %v2618_v11 = vmul.f32 %v5288_v18, %v2609_v43 }
 0x339   : > { %v2626_v18 = vadd.f32 %v2618_v11, %v5370_v20  ;;  %v2942_v20 = vld [vmem:[%s5505_s6] ss:$0 sm:$0xff] }
 0x33b   : > { %v2400_v3 = vpop.permute.xlu1 %2399 }
 0x33c   : > { %v2421_v22 = vmul.f32 %v5395_v38, %v2400_v3 }
 0x33e   : > { %v2429_v49 = vadd.f32 %v2421_v22, %v5212_v56  ;;  %v2676_v56 = vmul.f32 %v5368_v8, %v2649_v32  ;;  %v2653_v8 = vpop.permute.xlu0 %2652 }
 0x33f   : > { %v2412_v55 = vpop.permute.xlu1 %2411  ;;  %v2677_v54 = vmul.f32 %v5408_v7, %v2653_v8  ;;  %v2625_v7 = vadd.f32 %v2617_v46, %v5354_v10 }
 0x340   : > { %v2435_v50 = vpack.c.bf16 %v2429_v49, %v2428_v47  ;;  %v2424_v37 = vmul.f32 %v5415_v24, %v2412_v55  ;;  %v2684_v29 = vadd.f32 %v2676_v56, %v2620_v5 }
 0x342   : > { %2440 = vst.msk [vmem:[#allocation2 + $0x8] sm:$0xff] %vm2438_vm8, %v2435_v50  ;;  %v2432_v45 = vadd.f32 %v2424_v37, %v2368_v27  ;;  %v2669_v42 = vpop.permute.xlu0 %2668 }
 0x343   : > { %v2681_v26 = vmul.f32 %v5415_v24, %v2669_v42 }
 0x344   : > { %v2437_v62 = vpack.c.bf16 %v2433_v40, %v2432_v45  ;;  %v2645_v61 = vpop.permute.xlu1 %2644 }
 0x345   : > { %v2675_v44 = vmul.f32 %v5358_v51, %v2645_v61  ;;  %v2689_v12 = vadd.f32 %v2681_v26, %v2625_v7 }
 0x346   : > { %2442 = vst.msk [vmem:[#allocation2 + $0x18] sm:$0xff] %vm2438_vm8, %v2437_v62 }
 0x347   : > { %v2683_v58 = vadd.f32 %v2675_v44, %v2619_v2 }
 0x348   : > { %v2661_v34 = vpop.permute.xlu1 %2660 }
 0x349   : > { %v2691_v59 = vpack.c.bf16 %v2684_v29, %v2683_v58  ;;  %v2679_v60 = vmul.f32 %v5378_v13, %v2661_v34 }
 0x34b   : > { %2696 = vst.msk [vmem:[#allocation2] sm:$0xff] %vm2695_vm9, %v2691_v59  ;;  %v2687_v36 = vadd.f32 %v2679_v60, %v2623_v41 }
 0x34c   : > { %v2665_v51 = vpop.permute.xlu1 %2664 }
 0x34d   : > { %v2680_v57 = vmul.f32 %v5373_v4, %v2665_v51  ;;  %v2685_v4 = vadd.f32 %v2677_v54, %v2621_v39 }
 0x34f   : > { %v2688_v31 = vadd.f32 %v2680_v57, %v2624_v33 }
 0x350   : > { %v2657_v13 = vpop.permute.xlu1 %2656 }
 0x351   : > { %v2693_v0 = vpack.c.bf16 %v2688_v31, %v2687_v36  ;;  %v2678_v14 = vmul.f32 %v5395_v38, %v2657_v13 }
 0x352   : > { %v2700_v6 = vld [vmem:[#allocation2] sm:$0xff] }
 0x353   : > { %2698 = vst.msk [vmem:[#allocation2 + $0x10] sm:$0xff] %vm2695_vm9, %v2693_v0  ;;  %v2686_v23 = vadd.f32 %v2678_v14, %v2622_v25  ;;  %3649 = vmatprep.mubr.msk.bf16.mxu0 %vm2731_vm10, %v2700_v6 }
 0x354   : > { %v2673_v48 = vpop.permute.xlu1 %2672 }
 0x355   : > { %v2692_v43 = vpack.c.bf16 %v2686_v23, %v2685_v4  ;;  %v2682_v35 = vmul.f32 %v5417_v17, %v2673_v48 }
 0x357   : > { %2697 = vst.msk [vmem:[#allocation2 + $0x8] sm:$0xff] %vm2695_vm9, %v2692_v43  ;;  %v2690_v38 = vadd.f32 %v2682_v35, %v2626_v18 }
 0x359   : > { %v2694_v16 = vpack.c.bf16 %v2690_v38, %v2689_v12 }
 0x35a   : > { %v2702_v10 = vld [vmem:[#allocation2 + $0x10] sm:$0xff] }
 0x35b   : > { %2699 = vst.msk [vmem:[#allocation2 + $0x18] sm:$0xff] %vm2695_vm9, %v2694_v16  ;;  %3653 = vmatprep.mubr.msk.bf16.mxu1 %vm2731_vm10, %v2702_v10 }
 0x35e   : > { %v2701_v24 = vld [vmem:[#allocation2 + $0x8] sm:$0xff] }
 0x35f   : > { %3650 = vmatmul.mubr.msk.bf16.vlgmr.msra.gmra.mrb[0].mxu0 %vm2731_vm10, %v2701_v24 }
 0x362   : > { %v2703_v52 = vld [vmem:[#allocation2 + $0x18] sm:$0xff] }
 0x363   : > { %3654 = vmatmul.mubr.msk.bf16.vlgmr.msra.gmra.mrb[0].mxu1 %vm2731_vm10, %v2703_v52 }
 0x432   : > { %v3651_v17 = vpop.f32.mrb[0].mxu0 }
 0x433   : > { %v2791_v3 = vadd.f32 %v3651_v17, %v2942_v20  ;;  %v2782_v21 = vpop.f32.mrb[1].mxu0 }
 0x434   : > { %v2783_v22 = vadd.f32 %v2942_v20, %v2782_v21  ;;  %v3652_v47 = vpop.f32.mrb[2].mxu0 }
 0x435   : > { %2815 = vst [vmem:[%s368_s11 + $0x10] sm:$0xff] %v2791_v3  ;;  %v2794_v28 = vadd.f32 %v3652_v47, %v2942_v20  ;;  %v2785_v15 = vpop.f32.mrb[3].mxu0 }
 0x436   : > { %2813 = vst [vmem:[%s368_s11] sm:$0xff] %v2783_v22  ;;  %v2786_v49 = vadd.f32 %v2942_v20, %v2785_v15  ;;  %v3655_v63 = vpop.f32.mrb[0].mxu1 }
 0x437   : > { %2816 = vst [vmem:[%s368_s11 + $0x18] sm:$0xff] %v2794_v28  ;;  %v2807_v55 = vadd.f32 %v3655_v63, %v2942_v20  ;;  %v2798_v27 = vpop.f32.mrb[1].mxu1 }
 0x438   : > { %2814 = vst [vmem:[%s368_s11 + $0x8] sm:$0xff] %v2786_v49  ;;  %v2799_v32 = vadd.f32 %v2942_v20, %v2798_v27  ;;  %v3656_v50 = vpop.f32.mrb[2].mxu1 }
 0x439   : > { %2819 = vst [vmem:[%s368_s11 + $0x30] sm:$0xff] %v2807_v55  ;;  %v2810_v37 = vadd.f32 %v3656_v50, %v2942_v20  ;;  %v2801_v30 = vpop.f32.mrb[3].mxu1 }
 0x43a   : > { %2817 = vst [vmem:[%s368_s11 + $0x20] sm:$0xff] %v2799_v32  ;;  %v2802_v40 = vadd.f32 %v2942_v20, %v2801_v30 }
 0x43b   : > { %2820 = vst [vmem:[%s368_s11 + $0x38] sm:$0xff] %v2810_v37 }
 0x43c   : > { %2818 = vst [vmem:[%s368_s11 + $0x28] sm:$0xff] %v2802_v40 }
 0x43d PF: > { %s17_s24 = sadd.s32 1, %s3821_s24  }
 0x43e   : > { %p14_p4 = scmp.ge.s32.totalorder %s17_s24, 10  }
 0x440   :  { %16 = sbr.rel (!%p14_p4) target bundleno = 1 (0x1), region = 90 }

</bundles_post_ra>
